<compile_context>
chip_gen: v6e
topology: v6e:2x2x1
jax: 0.10.0
libtpu: 0.0.40
codegen_flags: <defaults>
</compile_context>

<pallas_src>
import functools

import jax
import jax.numpy as jnp
import numpy as np
from jax.experimental import pallas as pl
from jax.experimental.pallas import tpu as pltpu


def _sigmoid_eup(x):
    # sigmoid(x) == 0.5 * tanh(0.5 * x) + 0.5  -> one EUP transcendental instead of two.
    return 0.5 * jnp.tanh(0.5 * x) + 0.5


# ----------------------------------------------------------------------------- kernel
def _bilstm_chunk_kernel(pf_ref, pb_ref, whh_f_ref, whh_b_ref, *refs,
                         hidden_size, chunk, seq_len, padded_len, write_seq, unroll):
    """One chunk of `chunk` timesteps for BOTH directions of a bidirectional LSTM layer.

    Grid axis 0 iterates sequentially ("arbitrary") over time chunks.  Forward direction
    consumes chunk `ci` in natural order; backward direction consumes chunk `nc-1-ci`
    (selected by the index_map) walked in reverse local order.  Gate pre-activations
    (x @ W_ih^T + b) are precomputed outside the kernel.
    """
    if write_seq:
        hf_seq_ref, hb_seq_ref, h_last_ref, hf_sc, cf_sc, hb_sc, cb_sc = refs
    else:
        h_last_ref, hf_sc, cf_sc, hb_sc, cb_sc = refs
        hf_seq_ref = hb_seq_ref = None

    ci = pl.program_id(0)
    nc = pl.num_programs(0)
    H = hidden_size
    need_mask = padded_len != seq_len  # static Python bool

    @pl.when(ci == 0)
    def _():
        hf_sc[...] = jnp.zeros_like(hf_sc)
        cf_sc[...] = jnp.zeros_like(cf_sc)
        hb_sc[...] = jnp.zeros_like(hb_sc)
        cb_sc[...] = jnp.zeros_like(cb_sc)

    # Resident recurrent weights, loaded once per chunk (loop invariant).
    whh_f = whh_f_ref[...]
    whh_b = whh_b_ref[...]

    def cell(pre, h_prev, c_prev, whh):
        # PyTorch gate layout along the 4H axis: [i, f, g, o].
        g = pre + jnp.dot(h_prev, whh, preferred_element_type=jnp.float32)
        i_g = _sigmoid_eup(g[:, 0 * H:1 * H])
        f_g = _sigmoid_eup(g[:, 1 * H:2 * H])
        g_g = jnp.tanh(g[:, 2 * H:3 * H])
        o_g = _sigmoid_eup(g[:, 3 * H:4 * H])
        c_new = f_g * c_prev + i_g * g_g
        h_new = o_g * jnp.tanh(c_new)
        return h_new, c_new

    def step(i, carry):
        hf, cf, hb, cb = carry

        # ---- forward direction: local index i, global time ci*chunk + i -------------
        pre_f = pf_ref[i].astype(jnp.float32)                       # (B, 4H)
        hf_new, cf_new = cell(pre_f, hf, cf, whh_f)
        if need_mask:
            valid_f = (ci * chunk + i) < seq_len
            hf_new = jnp.where(valid_f, hf_new, hf)
            cf_new = jnp.where(valid_f, cf_new, cf)
        if write_seq:
            hf_seq_ref[i] = hf_new.astype(hf_seq_ref.dtype)

        # ---- backward direction: local index chunk-1-i (time reversed) --------------
        j = chunk - 1 - i
        pre_b = pb_ref[j].astype(jnp.float32)                       # (B, 4H)
        hb_new, cb_new = cell(pre_b, hb, cb, whh_b)
        if need_mask:
            valid_b = ((nc - 1 - ci) * chunk + j) < seq_len
            hb_new = jnp.where(valid_b, hb_new, hb)
            cb_new = jnp.where(valid_b, cb_new, cb)
        if write_seq:
            hb_seq_ref[j] = hb_new.astype(hb_seq_ref.dtype)

        return hf_new, cf_new, hb_new, cb_new

    carry0 = (hf_sc[...], cf_sc[...], hb_sc[...], cb_sc[...])
    hf, cf, hb, cb = jax.lax.fori_loop(0, chunk, step, carry0, unroll=unroll)

    # Persist the carry across grid chunks (one store per chunk, not per timestep).
    hf_sc[...] = hf
    cf_sc[...] = cf
    hb_sc[...] = hb
    cb_sc[...] = cb

    @pl.when(ci == nc - 1)
    def _():
        # Single lane-dense (B, 2H) store: concat(h_fwd_last, h_bwd_last).
        h_last_ref[...] = jnp.concatenate([hf, hb], axis=-1).astype(h_last_ref.dtype)


def bilstm_layer_pallas(pre_f, pre_b, whh_f_t, whh_b_t, *, chunk=32, unroll=8,
                        write_seq=True, io_dtype=jnp.float32, vmem_limit_bytes=None):
    """Run both directions of one bidirectional LSTM layer from precomputed preacts.

    pre_f / pre_b  : (T, B, 4H)  gate pre-activations x @ W_ih^T + (b_ih + b_hh)
    whh_f_t/whh_b_t: (H, 4H)     transposed recurrent weights (f32)
    Returns (hf_seq (T,B,H) | None, hb_seq (T,B,H) | None, h_last (B, 2H) f32).
    hb_seq is in NATURAL time order (hb_seq[t] = backward hidden after seeing x[T-1..t]).
    """
    T, B, G = pre_f.shape
    H = whh_f_t.shape[0]
    assert G == 4 * H

    chunk = max(1, min(chunk, T))
    n_chunks = pl.cdiv(T, chunk)
    t_pad = n_chunks * chunk
    if t_pad != T:
        pad = ((0, t_pad - T), (0, 0), (0, 0))
        pre_f = jnp.pad(pre_f, pad)
        pre_b = jnp.pad(pre_b, pad)

    kernel = functools.partial(_bilstm_chunk_kernel, hidden_size=H, chunk=chunk,
                               seq_len=T, padded_len=t_pad, write_seq=write_seq,
                               unroll=min(unroll, chunk))

    in_specs = [
        pl.BlockSpec((chunk, B, G), lambda c: (c, 0, 0)),                         # pre_f
        pl.BlockSpec((chunk, B, G), lambda c, n=n_chunks: (n - 1 - c, 0, 0)),     # pre_b (rev)
        pl.BlockSpec((H, G), lambda c: (0, 0), pipeline_mode=pl.Buffered(1)),     # W_hh_f^T
        pl.BlockSpec((H, G), lambda c: (0, 0), pipeline_mode=pl.Buffered(1)),     # W_hh_b^T
    ]
    out_specs = []
    out_shapes = []
    if write_seq:
        out_specs += [
            pl.BlockSpec((chunk, B, H), lambda c: (c, 0, 0)),                     # hf_seq
            pl.BlockSpec((chunk, B, H), lambda c, n=n_chunks: (n - 1 - c, 0, 0)),  # hb_seq (rev)
        ]
        out_shapes += [jax.ShapeDtypeStruct((t_pad, B, H), io_dtype),
                       jax.ShapeDtypeStruct((t_pad, B, H), io_dtype)]
    out_specs += [pl.BlockSpec((B, 2 * H), lambda c: (0, 0))]                     # h_last
    out_shapes += [jax.ShapeDtypeStruct((B, 2 * H), jnp.float32)]

    grid_spec = pltpu.PrefetchScalarGridSpec(
        num_scalar_prefetch=0,
        grid=(n_chunks,),
        in_specs=in_specs,
        out_specs=out_specs,
        scratch_shapes=[pltpu.VMEM((B, H), jnp.float32)] * 4,                     # hf, cf, hb, cb
    )

    outs = pl.pallas_call(
        kernel,
        out_shape=tuple(out_shapes),
        grid_spec=grid_spec,
        compiler_params=pltpu.CompilerParams(
            dimension_semantics=("arbitrary",),
            vmem_limit_bytes=vmem_limit_bytes),
    )(pre_f.astype(io_dtype), pre_b.astype(io_dtype),
      whh_f_t.astype(jnp.float32), whh_b_t.astype(jnp.float32))

    if write_seq:
        hf_seq, hb_seq, h_last = outs
        if t_pad != T:
            hf_seq = hf_seq[:T]
            hb_seq = hb_seq[:T]
        return hf_seq, hb_seq, h_last
    (h_last,) = outs
    return None, None, h_last


# --------------------------------------------------------------------------- module fwd
def encoder_for_classification_forward(x_btd, params, num_layers, hidden_size, *,
                                        chunk=32, unroll=8, io_dtype=jnp.float32,
                                        vmem_limit_bytes=None):
    """Pallas equivalent of EncoderForClassification.forward.

    x_btd : (B, T, input_dim)   (batch_first, as in the PyTorch module)
    returns hidden_cat : (B, 2*hidden_size) == cat(hidden[-2], hidden[-1], dim=1)
    """
    H = hidden_size
    x_tbd = jnp.transpose(x_btd, (1, 0, 2)).astype(jnp.float32)   # time-major (T, B, D)
    T, B, _ = x_tbd.shape

    # Pad the batch (sublane) dim to a multiple of 8; padded rows never mix with real ones.
    b_pad = -(-B // 8) * 8
    if b_pad != B:
        x_tbd = jnp.pad(x_tbd, ((0, 0), (0, b_pad - B), (0, 0)))

    hf_seq = hb_seq = None
    h_last = None
    for layer in range(num_layers):
        w_ih_f, w_hh_f, b_ih_f, b_hh_f = [jnp.asarray(p, jnp.float32) for p in params[(layer, 0)]]
        w_ih_b, w_hh_b, b_ih_b, b_hh_b = [jnp.asarray(p, jnp.float32) for p in params[(layer, 1)]]
        bias_f = (b_ih_f + b_hh_f).reshape(1, 1, 4 * H)
        bias_b = (b_ih_b + b_hh_b).reshape(1, 1, 4 * H)

        if layer == 0:
            # Hoisted input projection: one big (T*B, D) @ (D, 4H) matmul in XLA.
            pre_f = jnp.einsum('tbd,dg->tbg', x_tbd, w_ih_f.T,
                               preferred_element_type=jnp.float32) + bias_f
            pre_b = jnp.einsum('tbd,dg->tbg', x_tbd, w_ih_b.T,
                               preferred_element_type=jnp.float32) + bias_b
        else:
            # Fold the concat([h_f, h_b]) into the projection:
            #   concat @ W^T == h_f @ W[:, :H]^T + h_b @ W[:, H:]^T
            pre_f = (jnp.einsum('tbh,hg->tbg', hf_seq, w_ih_f[:, :H].T,
                                preferred_element_type=jnp.float32)
                     + jnp.einsum('tbh,hg->tbg', hb_seq, w_ih_f[:, H:].T,
                                  preferred_element_type=jnp.float32) + bias_f)
            pre_b = (jnp.einsum('tbh,hg->tbg', hf_seq, w_ih_b[:, :H].T,
                                preferred_element_type=jnp.float32)
                     + jnp.einsum('tbh,hg->tbg', hb_seq, w_ih_b[:, H:].T,
                                  preferred_element_type=jnp.float32) + bias_b)

        write_seq = layer < num_layers - 1   # top layer's sequence outputs are never used
        hf_seq, hb_seq, h_last = bilstm_layer_pallas(
            pre_f, pre_b, w_hh_f.T, w_hh_b.T, chunk=chunk, unroll=unroll,
            write_seq=write_seq, io_dtype=io_dtype, vmem_limit_bytes=vmem_limit_bytes)

    return h_last[:B]                                              # (B, 2H)


# ----------------------------------------------------------------------- pure-JAX reference
def _lstm_layer_ref(x_tbd, w_ih, w_hh, b_ih, b_hh):
    H = w_hh.shape[1]
    B = x_tbd.shape[1]

    def step(carry, x_t):
        h, c = carry
        gates = x_t @ w_ih.T + h @ w_hh.T + b_ih + b_hh
        i = jax.nn.sigmoid(gates[:, 0 * H:1 * H])
        f = jax.nn.sigmoid(gates[:, 1 * H:2 * H])
        g = jnp.tanh(gates[:, 2 * H:3 * H])
        o = jax.nn.sigmoid(gates[:, 3 * H:4 * H])
        c = f * c + i * g
        h = o * jnp.tanh(c)
        return (h, c), h

    init = (jnp.zeros((B, H), jnp.float32), jnp.zeros((B, H), jnp.float32))
    (h_last, _), h_seq = jax.lax.scan(step, init, x_tbd)
    return h_seq, h_last


def encoder_ref(x_btd, params, num_layers):
    x_tbd = jnp.transpose(x_btd, (1, 0, 2)).astype(jnp.float32)
    layer_in = x_tbd
    h_last_f = h_last_b = None
    for layer in range(num_layers):
        hseq_f, h_last_f = _lstm_layer_ref(layer_in, *params[(layer, 0)])
        hseq_b_rev, h_last_b = _lstm_layer_ref(layer_in[::-1], *params[(layer, 1)])
        layer_in = jnp.concatenate([hseq_f, hseq_b_rev[::-1]], axis=-1)
    return jnp.concatenate([h_last_f, h_last_b], axis=1)


# -------------------------------------------------------------------------------- init
def init_params(key, input_dim, hidden_size, num_layers):
    """Deterministic init matching PyTorch bidirectional LSTM parameter shapes."""
    params = {}
    scale = 1.0 / np.sqrt(hidden_size)
    for layer in range(num_layers):
        in_dim = input_dim if layer == 0 else 2 * hidden_size
        for direction in range(2):
            key, k0, k1, k2, k3 = jax.random.split(key, 5)
            w_ih = jax.random.uniform(k0, (4 * hidden_size, in_dim),
                                      jnp.float32, -scale, scale)
            w_hh = jax.random.uniform(k1, (4 * hidden_size, hidden_size),
                                      jnp.float32, -scale, scale)
            b_ih = jax.random.uniform(k2, (4 * hidden_size,), jnp.float32, -scale, scale)
            b_hh = jax.random.uniform(k3, (4 * hidden_size,), jnp.float32, -scale, scale)
            params[(layer, direction)] = (w_ih, w_hh, b_ih, b_hh)
    return params


# -------------------------------------------------------------------------------- main
if __name__ == "__main__":
    input_dim = 8
    hidden_size = 32
    num_layers = 2
    batch = 2
    seq_len = 8

    key = jax.random.PRNGKey(0)
    key, kx, kp = jax.random.split(key, 3)
    x = jax.random.normal(kx, (batch, seq_len, input_dim), jnp.float32)  # (B, T, D)
    params = init_params(kp, input_dim, hidden_size, num_layers)

    ref = jax.block_until_ready(encoder_ref(x, params, num_layers))

    # f32 activation-storage path: tight match against the f32 reference.
    fwd_f32 = jax.jit(functools.partial(encoder_for_classification_forward,
                                        num_layers=num_layers, hidden_size=hidden_size,
                                        io_dtype=jnp.float32))
    out_f32 = jax.block_until_ready(fwd_f32(x, params))
    assert out_f32.shape == (batch, 2 * hidden_size), out_f32.shape
    np.testing.assert_allclose(np.asarray(out_f32), np.asarray(ref), rtol=1e-4, atol=1e-5)

    # bf16 activation-storage path (halves HBM/VMEM traffic between layers); gate math
    # and accumulation stay f32, so only storage rounding differs -> looser tolerance.
    fwd_bf16 = jax.jit(functools.partial(encoder_for_classification_forward,
                                         num_layers=num_layers, hidden_size=hidden_size,
                                         io_dtype=jnp.bfloat16))
    out_bf16 = jax.block_until_ready(fwd_bf16(x, params))
    assert out_bf16.shape == (batch, 2 * hidden_size), out_bf16.shape
    np.testing.assert_allclose(np.asarray(out_bf16), np.asarray(ref), rtol=5e-2, atol=5e-2)

    print("KERNEL_OK")
</pallas_src>

<mosaic_0001>
module attributes {stable_mosaic.version = 11 : i64} {
  func.func @_bilstm_chunk_kernel(%arg0: i32, %arg1: memref<8x8x128xf32, #tpu.memory_space<vmem>>, %arg2: memref<8x8x128xf32, #tpu.memory_space<vmem>>, %arg3: memref<32x128xf32, #tpu.memory_space<vmem>>, %arg4: memref<32x128xf32, #tpu.memory_space<vmem>>, %arg5: memref<8x64xf32, #tpu.memory_space<vmem>>, %arg6: memref<8x32xf32, #tpu.memory_space<vmem>>, %arg7: memref<8x32xf32, #tpu.memory_space<vmem>>, %arg8: memref<8x32xf32, #tpu.memory_space<vmem>>, %arg9: memref<8x32xf32, #tpu.memory_space<vmem>>) attributes {dimension_semantics = [#tpu.dimension_semantics<arbitrary>], iteration_bounds = array<i64: 1>, scalar_prefetch = 0 : i64, scratch_operands = 4 : i64, tpu.core_type = #tpu.core_type<tc>, window_params = [{transform_indices = @transform_0, window_bounds = array<i64: 8, 8, 128>}, {transform_indices = @transform_1, window_bounds = array<i64: 8, 8, 128>}, {pipeline_mode = #tpu.pipeline_mode<synchronous>, transform_indices = @transform_2, window_bounds = array<i64: 32, 128>}, {pipeline_mode = #tpu.pipeline_mode<synchronous>, transform_indices = @transform_3, window_bounds = array<i64: 32, 128>}, {pipeline_mode = #tpu.pipeline_mode<synchronous>, transform_indices = @transform_4, window_bounds = array<i64: 8, 64>}]} {
    %c0_i32 = arith.constant 0 : i32
    %0 = arith.cmpi eq, %arg0, %c0_i32 : i32
    %1 = arith.extui %0 : i1 to i32
    %c0_i32_0 = arith.constant 0 : i32
    %2 = arith.cmpi ne, %1, %c0_i32_0 : i32
    scf.if %2 {
      %cst_222 = arith.constant 0.000000e+00 : f32
      %600 = vector.broadcast %cst_222 : f32 to vector<8x32xf32>
      %c0_223 = arith.constant 0 : index
      %c0_224 = arith.constant 0 : index
      %601 = vector.load %arg6[%c0_223, %c0_224] : memref<8x32xf32, #tpu.memory_space<vmem>>, vector<8x32xf32>
      tpu.vector_store %arg6[%c0_223, %c0_224], %600 {strides = array<i32>} : memref<8x32xf32, #tpu.memory_space<vmem>>, vector<8x32xf32>,
      %cst_225 = arith.constant 0.000000e+00 : f32
      %602 = vector.broadcast %cst_225 : f32 to vector<8x32xf32>
      %c0_226 = arith.constant 0 : index
      %c0_227 = arith.constant 0 : index
      %603 = vector.load %arg7[%c0_226, %c0_227] : memref<8x32xf32, #tpu.memory_space<vmem>>, vector<8x32xf32>
      tpu.vector_store %arg7[%c0_226, %c0_227], %602 {strides = array<i32>} : memref<8x32xf32, #tpu.memory_space<vmem>>, vector<8x32xf32>,
      %cst_228 = arith.constant 0.000000e+00 : f32
      %604 = vector.broadcast %cst_228 : f32 to vector<8x32xf32>
      %c0_229 = arith.constant 0 : index
      %c0_230 = arith.constant 0 : index
      %605 = vector.load %arg8[%c0_229, %c0_230] : memref<8x32xf32, #tpu.memory_space<vmem>>, vector<8x32xf32>
      tpu.vector_store %arg8[%c0_229, %c0_230], %604 {strides = array<i32>} : memref<8x32xf32, #tpu.memory_space<vmem>>, vector<8x32xf32>,
      %cst_231 = arith.constant 0.000000e+00 : f32
      %606 = vector.broadcast %cst_231 : f32 to vector<8x32xf32>
      %c0_232 = arith.constant 0 : index
      %c0_233 = arith.constant 0 : index
      %607 = vector.load %arg9[%c0_232, %c0_233] : memref<8x32xf32, #tpu.memory_space<vmem>>, vector<8x32xf32>
      tpu.vector_store %arg9[%c0_232, %c0_233], %606 {strides = array<i32>} : memref<8x32xf32, #tpu.memory_space<vmem>>, vector<8x32xf32>,
    } else {
    }
    %c0 = arith.constant 0 : index
    %c0_1 = arith.constant 0 : index
    %3 = vector.load %arg3[%c0, %c0_1] : memref<32x128xf32, #tpu.memory_space<vmem>>, vector<32x128xf32>
    %c0_2 = arith.constant 0 : index
    %c0_3 = arith.constant 0 : index
    %4 = vector.load %arg4[%c0_2, %c0_3] : memref<32x128xf32, #tpu.memory_space<vmem>>, vector<32x128xf32>
    %c0_4 = arith.constant 0 : index
    %c0_5 = arith.constant 0 : index
    %5 = vector.load %arg6[%c0_4, %c0_5] : memref<8x32xf32, #tpu.memory_space<vmem>>, vector<8x32xf32>
    %c0_6 = arith.constant 0 : index
    %c0_7 = arith.constant 0 : index
    %6 = vector.load %arg7[%c0_6, %c0_7] : memref<8x32xf32, #tpu.memory_space<vmem>>, vector<8x32xf32>
    %c0_8 = arith.constant 0 : index
    %c0_9 = arith.constant 0 : index
    %7 = vector.load %arg8[%c0_8, %c0_9] : memref<8x32xf32, #tpu.memory_space<vmem>>, vector<8x32xf32>
    %c0_10 = arith.constant 0 : index
    %c0_11 = arith.constant 0 : index
    %8 = vector.load %arg9[%c0_10, %c0_11] : memref<8x32xf32, #tpu.memory_space<vmem>>, vector<8x32xf32>
    %c0_i32_12 = arith.constant 0 : i32
    %9 = arith.index_cast %c0_i32_12 : i32 to index
    %c0_13 = arith.constant 0 : index
    %c0_14 = arith.constant 0 : index
    %10 = vector.load %arg1[%9, %c0_13, %c0_14] : memref<8x8x128xf32, #tpu.memory_space<vmem>>, vector<1x8x128xf32>
    %11 = vector.shape_cast %10 : vector<1x8x128xf32> to vector<8x128xf32>
    %cst = arith.constant dense<0.000000e+00> : vector<8x128xf32>
    %12 = tpu.matmul %5, %3, %cst {dimension_numbers = #tpu.dot_dimension_numbers<[1], [0], [0], [1], [0, 0, 1, 1], [], []>} : vector<8x32xf32>, vector<32x128xf32>, vector<8x128xf32> -> vector<8x128xf32>
    %13 = arith.addf %11, %12 : vector<8x128xf32>
    %14 = vector.extract_strided_slice %13 {offsets = [0, 0], sizes = [8, 32], strides = [1, 1]} : vector<8x128xf32> to vector<8x32xf32>
    %cst_15 = arith.constant 5.000000e-01 : f32
    %15 = vector.broadcast %cst_15 : f32 to vector<8x32xf32>
    %16 = arith.mulf %15, %14 : vector<8x32xf32>
    %17 = math.tanh %16 : vector<8x32xf32>
    %cst_16 = arith.constant 5.000000e-01 : f32
    %18 = vector.broadcast %cst_16 : f32 to vector<8x32xf32>
    %19 = arith.mulf %18, %17 : vector<8x32xf32>
    %cst_17 = arith.constant 5.000000e-01 : f32
    %20 = vector.broadcast %cst_17 : f32 to vector<8x32xf32>
    %21 = arith.addf %19, %20 : vector<8x32xf32>
    %22 = vector.extract_strided_slice %13 {offsets = [0, 32], sizes = [8, 32], strides = [1, 1]} : vector<8x128xf32> to vector<8x32xf32>
    %cst_18 = arith.constant 5.000000e-01 : f32
    %23 = vector.broadcast %cst_18 : f32 to vector<8x32xf32>
    %24 = arith.mulf %23, %22 : vector<8x32xf32>
    %25 = math.tanh %24 : vector<8x32xf32>
    %cst_19 = arith.constant 5.000000e-01 : f32
    %26 = vector.broadcast %cst_19 : f32 to vector<8x32xf32>
    %27 = arith.mulf %26, %25 : vector<8x32xf32>
    %cst_20 = arith.constant 5.000000e-01 : f32
    %28 = vector.broadcast %cst_20 : f32 to vector<8x32xf32>
    %29 = arith.addf %27, %28 : vector<8x32xf32>
    %30 = vector.extract_strided_slice %13 {offsets = [0, 64], sizes = [8, 32], strides = [1, 1]} : vector<8x128xf32> to vector<8x32xf32>
    %31 = math.tanh %30 : vector<8x32xf32>
    %32 = vector.extract_strided_slice %13 {offsets = [0, 96], sizes = [8, 32], strides = [1, 1]} : vector<8x128xf32> to vector<8x32xf32>
    %cst_21 = arith.constant 5.000000e-01 : f32
    %33 = vector.broadcast %cst_21 : f32 to vector<8x32xf32>
    %34 = arith.mulf %33, %32 : vector<8x32xf32>
    %35 = math.tanh %34 : vector<8x32xf32>
    %cst_22 = arith.constant 5.000000e-01 : f32
    %36 = vector.broadcast %cst_22 : f32 to vector<8x32xf32>
    %37 = arith.mulf %36, %35 : vector<8x32xf32>
    %cst_23 = arith.constant 5.000000e-01 : f32
    %38 = vector.broadcast %cst_23 : f32 to vector<8x32xf32>
    %39 = arith.addf %37, %38 : vector<8x32xf32>
    %40 = arith.mulf %29, %6 : vector<8x32xf32>
    %41 = arith.mulf %21, %31 : vector<8x32xf32>
    %42 = arith.addf %40, %41 : vector<8x32xf32>
    %43 = math.tanh %42 : vector<8x32xf32>
    %44 = arith.mulf %39, %43 : vector<8x32xf32>
    %c7_i32 = arith.constant 7 : i32
    %45 = arith.subi %c7_i32, %c0_i32_12 : i32
    %46 = arith.index_cast %45 : i32 to index
    %c0_24 = arith.constant 0 : index
    %c0_25 = arith.constant 0 : index
    %47 = vector.load %arg2[%46, %c0_24, %c0_25] : memref<8x8x128xf32, #tpu.memory_space<vmem>>, vector<1x8x128xf32>
    %48 = vector.shape_cast %47 : vector<1x8x128xf32> to vector<8x128xf32>
    %cst_26 = arith.constant dense<0.000000e+00> : vector<8x128xf32>
    %49 = tpu.matmul %7, %4, %cst_26 {dimension_numbers = #tpu.dot_dimension_numbers<[1], [0], [0], [1], [0, 0, 1, 1], [], []>} : vector<8x32xf32>, vector<32x128xf32>, vector<8x128xf32> -> vector<8x128xf32>
    %50 = arith.addf %48, %49 : vector<8x128xf32>
    %51 = vector.extract_strided_slice %50 {offsets = [0, 0], sizes = [8, 32], strides = [1, 1]} : vector<8x128xf32> to vector<8x32xf32>
    %cst_27 = arith.constant 5.000000e-01 : f32
    %52 = vector.broadcast %cst_27 : f32 to vector<8x32xf32>
    %53 = arith.mulf %52, %51 : vector<8x32xf32>
    %54 = math.tanh %53 : vector<8x32xf32>
    %cst_28 = arith.constant 5.000000e-01 : f32
    %55 = vector.broadcast %cst_28 : f32 to vector<8x32xf32>
    %56 = arith.mulf %55, %54 : vector<8x32xf32>
    %cst_29 = arith.constant 5.000000e-01 : f32
    %57 = vector.broadcast %cst_29 : f32 to vector<8x32xf32>
    %58 = arith.addf %56, %57 : vector<8x32xf32>
    %59 = vector.extract_strided_slice %50 {offsets = [0, 32], sizes = [8, 32], strides = [1, 1]} : vector<8x128xf32> to vector<8x32xf32>
    %cst_30 = arith.constant 5.000000e-01 : f32
    %60 = vector.broadcast %cst_30 : f32 to vector<8x32xf32>
    %61 = arith.mulf %60, %59 : vector<8x32xf32>
    %62 = math.tanh %61 : vector<8x32xf32>
    %cst_31 = arith.constant 5.000000e-01 : f32
    %63 = vector.broadcast %cst_31 : f32 to vector<8x32xf32>
    %64 = arith.mulf %63, %62 : vector<8x32xf32>
    %cst_32 = arith.constant 5.000000e-01 : f32
    %65 = vector.broadcast %cst_32 : f32 to vector<8x32xf32>
    %66 = arith.addf %64, %65 : vector<8x32xf32>
    %67 = vector.extract_strided_slice %50 {offsets = [0, 64], sizes = [8, 32], strides = [1, 1]} : vector<8x128xf32> to vector<8x32xf32>
    %68 = math.tanh %67 : vector<8x32xf32>
    %69 = vector.extract_strided_slice %50 {offsets = [0, 96], sizes = [8, 32], strides = [1, 1]} : vector<8x128xf32> to vector<8x32xf32>
    %cst_33 = arith.constant 5.000000e-01 : f32
    %70 = vector.broadcast %cst_33 : f32 to vector<8x32xf32>
    %71 = arith.mulf %70, %69 : vector<8x32xf32>
    %72 = math.tanh %71 : vector<8x32xf32>
    %cst_34 = arith.constant 5.000000e-01 : f32
    %73 = vector.broadcast %cst_34 : f32 to vector<8x32xf32>
    %74 = arith.mulf %73, %72 : vector<8x32xf32>
    %cst_35 = arith.constant 5.000000e-01 : f32
    %75 = vector.broadcast %cst_35 : f32 to vector<8x32xf32>
    %76 = arith.addf %74, %75 : vector<8x32xf32>
    %77 = arith.mulf %66, %8 : vector<8x32xf32>
    %78 = arith.mulf %58, %68 : vector<8x32xf32>
    %79 = arith.addf %77, %78 : vector<8x32xf32>
    %80 = math.tanh %79 : vector<8x32xf32>
    %81 = arith.mulf %76, %80 : vector<8x32xf32>
    %c1_i32 = arith.constant 1 : i32
    %82 = arith.index_cast %c1_i32 : i32 to index
    %c0_36 = arith.constant 0 : index
    %c0_37 = arith.constant 0 : index
    %83 = vector.load %arg1[%82, %c0_36, %c0_37] : memref<8x8x128xf32, #tpu.memory_space<vmem>>, vector<1x8x128xf32>
    %84 = vector.shape_cast %83 : vector<1x8x128xf32> to vector<8x128xf32>
    %cst_38 = arith.constant dense<0.000000e+00> : vector<8x128xf32>
    %85 = tpu.matmul %44, %3, %cst_38 {dimension_numbers = #tpu.dot_dimension_numbers<[1], [0], [0], [1], [0, 0, 1, 1], [], []>} : vector<8x32xf32>, vector<32x128xf32>, vector<8x128xf32> -> vector<8x128xf32>
    %86 = arith.addf %84, %85 : vector<8x128xf32>
    %87 = vector.extract_strided_slice %86 {offsets = [0, 0], sizes = [8, 32], strides = [1, 1]} : vector<8x128xf32> to vector<8x32xf32>
    %cst_39 = arith.constant 5.000000e-01 : f32
    %88 = vector.broadcast %cst_39 : f32 to vector<8x32xf32>
    %89 = arith.mulf %88, %87 : vector<8x32xf32>
    %90 = math.tanh %89 : vector<8x32xf32>
    %cst_40 = arith.constant 5.000000e-01 : f32
    %91 = vector.broadcast %cst_40 : f32 to vector<8x32xf32>
    %92 = arith.mulf %91, %90 : vector<8x32xf32>
    %cst_41 = arith.constant 5.000000e-01 : f32
    %93 = vector.broadcast %cst_41 : f32 to vector<8x32xf32>
    %94 = arith.addf %92, %93 : vector<8x32xf32>
    %95 = vector.extract_strided_slice %86 {offsets = [0, 32], sizes = [8, 32], strides = [1, 1]} : vector<8x128xf32> to vector<8x32xf32>
    %cst_42 = arith.constant 5.000000e-01 : f32
    %96 = vector.broadcast %cst_42 : f32 to vector<8x32xf32>
    %97 = arith.mulf %96, %95 : vector<8x32xf32>
    %98 = math.tanh %97 : vector<8x32xf32>
    %cst_43 = arith.constant 5.000000e-01 : f32
    %99 = vector.broadcast %cst_43 : f32 to vector<8x32xf32>
    %100 = arith.mulf %99, %98 : vector<8x32xf32>
    %cst_44 = arith.constant 5.000000e-01 : f32
    %101 = vector.broadcast %cst_44 : f32 to vector<8x32xf32>
    %102 = arith.addf %100, %101 : vector<8x32xf32>
    %103 = vector.extract_strided_slice %86 {offsets = [0, 64], sizes = [8, 32], strides = [1, 1]} : vector<8x128xf32> to vector<8x32xf32>
    %104 = math.tanh %103 : vector<8x32xf32>
    %105 = vector.extract_strided_slice %86 {offsets = [0, 96], sizes = [8, 32], strides = [1, 1]} : vector<8x128xf32> to vector<8x32xf32>
    %cst_45 = arith.constant 5.000000e-01 : f32
    %106 = vector.broadcast %cst_45 : f32 to vector<8x32xf32>
    %107 = arith.mulf %106, %105 : vector<8x32xf32>
    %108 = math.tanh %107 : vector<8x32xf32>
    %cst_46 = arith.constant 5.000000e-01 : f32
    %109 = vector.broadcast %cst_46 : f32 to vector<8x32xf32>
    %110 = arith.mulf %109, %108 : vector<8x32xf32>
    %cst_47 = arith.constant 5.000000e-01 : f32
    %111 = vector.broadcast %cst_47 : f32 to vector<8x32xf32>
    %112 = arith.addf %110, %111 : vector<8x32xf32>
    %113 = arith.mulf %102, %42 : vector<8x32xf32>
    %114 = arith.mulf %94, %104 : vector<8x32xf32>
    %115 = arith.addf %113, %114 : vector<8x32xf32>
    %116 = math.tanh %115 : vector<8x32xf32>
    %117 = arith.mulf %112, %116 : vector<8x32xf32>
    %c7_i32_48 = arith.constant 7 : i32
    %118 = arith.subi %c7_i32_48, %c1_i32 : i32
    %119 = arith.index_cast %118 : i32 to index
    %c0_49 = arith.constant 0 : index
    %c0_50 = arith.constant 0 : index
    %120 = vector.load %arg2[%119, %c0_49, %c0_50] : memref<8x8x128xf32, #tpu.memory_space<vmem>>, vector<1x8x128xf32>
    %121 = vector.shape_cast %120 : vector<1x8x128xf32> to vector<8x128xf32>
    %cst_51 = arith.constant dense<0.000000e+00> : vector<8x128xf32>
    %122 = tpu.matmul %81, %4, %cst_51 {dimension_numbers = #tpu.dot_dimension_numbers<[1], [0], [0], [1], [0, 0, 1, 1], [], []>} : vector<8x32xf32>, vector<32x128xf32>, vector<8x128xf32> -> vector<8x128xf32>
    %123 = arith.addf %121, %122 : vector<8x128xf32>
    %124 = vector.extract_strided_slice %123 {offsets = [0, 0], sizes = [8, 32], strides = [1, 1]} : vector<8x128xf32> to vector<8x32xf32>
    %cst_52 = arith.constant 5.000000e-01 : f32
    %125 = vector.broadcast %cst_52 : f32 to vector<8x32xf32>
    %126 = arith.mulf %125, %124 : vector<8x32xf32>
    %127 = math.tanh %126 : vector<8x32xf32>
    %cst_53 = arith.constant 5.000000e-01 : f32
    %128 = vector.broadcast %cst_53 : f32 to vector<8x32xf32>
    %129 = arith.mulf %128, %127 : vector<8x32xf32>
    %cst_54 = arith.constant 5.000000e-01 : f32
    %130 = vector.broadcast %cst_54 : f32 to vector<8x32xf32>
    %131 = arith.addf %129, %130 : vector<8x32xf32>
    %132 = vector.extract_strided_slice %123 {offsets = [0, 32], sizes = [8, 32], strides = [1, 1]} : vector<8x128xf32> to vector<8x32xf32>
    %cst_55 = arith.constant 5.000000e-01 : f32
    %133 = vector.broadcast %cst_55 : f32 to vector<8x32xf32>
    %134 = arith.mulf %133, %132 : vector<8x32xf32>
    %135 = math.tanh %134 : vector<8x32xf32>
    %cst_56 = arith.constant 5.000000e-01 : f32
    %136 = vector.broadcast %cst_56 : f32 to vector<8x32xf32>
    %137 = arith.mulf %136, %135 : vector<8x32xf32>
    %cst_57 = arith.constant 5.000000e-01 : f32
    %138 = vector.broadcast %cst_57 : f32 to vector<8x32xf32>
    %139 = arith.addf %137, %138 : vector<8x32xf32>
    %140 = vector.extract_strided_slice %123 {offsets = [0, 64], sizes = [8, 32], strides = [1, 1]} : vector<8x128xf32> to vector<8x32xf32>
    %141 = math.tanh %140 : vector<8x32xf32>
    %142 = vector.extract_strided_slice %123 {offsets = [0, 96], sizes = [8, 32], strides = [1, 1]} : vector<8x128xf32> to vector<8x32xf32>
    %cst_58 = arith.constant 5.000000e-01 : f32
    %143 = vector.broadcast %cst_58 : f32 to vector<8x32xf32>
    %144 = arith.mulf %143, %142 : vector<8x32xf32>
    %145 = math.tanh %144 : vector<8x32xf32>
    %cst_59 = arith.constant 5.000000e-01 : f32
    %146 = vector.broadcast %cst_59 : f32 to vector<8x32xf32>
    %147 = arith.mulf %146, %145 : vector<8x32xf32>
    %cst_60 = arith.constant 5.000000e-01 : f32
    %148 = vector.broadcast %cst_60 : f32 to vector<8x32xf32>
    %149 = arith.addf %147, %148 : vector<8x32xf32>
    %150 = arith.mulf %139, %79 : vector<8x32xf32>
    %151 = arith.mulf %131, %141 : vector<8x32xf32>
    %152 = arith.addf %150, %151 : vector<8x32xf32>
    %153 = math.tanh %152 : vector<8x32xf32>
    %154 = arith.mulf %149, %153 : vector<8x32xf32>
    %c2_i32 = arith.constant 2 : i32
    %155 = arith.index_cast %c2_i32 : i32 to index
    %c0_61 = arith.constant 0 : index
    %c0_62 = arith.constant 0 : index
    %156 = vector.load %arg1[%155, %c0_61, %c0_62] : memref<8x8x128xf32, #tpu.memory_space<vmem>>, vector<1x8x128xf32>
    %157 = vector.shape_cast %156 : vector<1x8x128xf32> to vector<8x128xf32>
    %cst_63 = arith.constant dense<0.000000e+00> : vector<8x128xf32>
    %158 = tpu.matmul %117, %3, %cst_63 {dimension_numbers = #tpu.dot_dimension_numbers<[1], [0], [0], [1], [0, 0, 1, 1], [], []>} : vector<8x32xf32>, vector<32x128xf32>, vector<8x128xf32> -> vector<8x128xf32>
    %159 = arith.addf %157, %158 : vector<8x128xf32>
    %160 = vector.extract_strided_slice %159 {offsets = [0, 0], sizes = [8, 32], strides = [1, 1]} : vector<8x128xf32> to vector<8x32xf32>
    %cst_64 = arith.constant 5.000000e-01 : f32
    %161 = vector.broadcast %cst_64 : f32 to vector<8x32xf32>
    %162 = arith.mulf %161, %160 : vector<8x32xf32>
    %163 = math.tanh %162 : vector<8x32xf32>
    %cst_65 = arith.constant 5.000000e-01 : f32
    %164 = vector.broadcast %cst_65 : f32 to vector<8x32xf32>
    %165 = arith.mulf %164, %163 : vector<8x32xf32>
    %cst_66 = arith.constant 5.000000e-01 : f32
    %166 = vector.broadcast %cst_66 : f32 to vector<8x32xf32>
    %167 = arith.addf %165, %166 : vector<8x32xf32>
    %168 = vector.extract_strided_slice %159 {offsets = [0, 32], sizes = [8, 32], strides = [1, 1]} : vector<8x128xf32> to vector<8x32xf32>
    %cst_67 = arith.constant 5.000000e-01 : f32
    %169 = vector.broadcast %cst_67 : f32 to vector<8x32xf32>
    %170 = arith.mulf %169, %168 : vector<8x32xf32>
    %171 = math.tanh %170 : vector<8x32xf32>
    %cst_68 = arith.constant 5.000000e-01 : f32
    %172 = vector.broadcast %cst_68 : f32 to vector<8x32xf32>
    %173 = arith.mulf %172, %171 : vector<8x32xf32>
    %cst_69 = arith.constant 5.000000e-01 : f32
    %174 = vector.broadcast %cst_69 : f32 to vector<8x32xf32>
    %175 = arith.addf %173, %174 : vector<8x32xf32>
    %176 = vector.extract_strided_slice %159 {offsets = [0, 64], sizes = [8, 32], strides = [1, 1]} : vector<8x128xf32> to vector<8x32xf32>
    %177 = math.tanh %176 : vector<8x32xf32>
    %178 = vector.extract_strided_slice %159 {offsets = [0, 96], sizes = [8, 32], strides = [1, 1]} : vector<8x128xf32> to vector<8x32xf32>
    %cst_70 = arith.constant 5.000000e-01 : f32
    %179 = vector.broadcast %cst_70 : f32 to vector<8x32xf32>
    %180 = arith.mulf %179, %178 : vector<8x32xf32>
    %181 = math.tanh %180 : vector<8x32xf32>
    %cst_71 = arith.constant 5.000000e-01 : f32
    %182 = vector.broadcast %cst_71 : f32 to vector<8x32xf32>
    %183 = arith.mulf %182, %181 : vector<8x32xf32>
    %cst_72 = arith.constant 5.000000e-01 : f32
    %184 = vector.broadcast %cst_72 : f32 to vector<8x32xf32>
    %185 = arith.addf %183, %184 : vector<8x32xf32>
    %186 = arith.mulf %175, %115 : vector<8x32xf32>
    %187 = arith.mulf %167, %177 : vector<8x32xf32>
    %188 = arith.addf %186, %187 : vector<8x32xf32>
    %189 = math.tanh %188 : vector<8x32xf32>
    %190 = arith.mulf %185, %189 : vector<8x32xf32>
    %c7_i32_73 = arith.constant 7 : i32
    %191 = arith.subi %c7_i32_73, %c2_i32 : i32
    %192 = arith.index_cast %191 : i32 to index
    %c0_74 = arith.constant 0 : index
    %c0_75 = arith.constant 0 : index
    %193 = vector.load %arg2[%192, %c0_74, %c0_75] : memref<8x8x128xf32, #tpu.memory_space<vmem>>, vector<1x8x128xf32>
    %194 = vector.shape_cast %193 : vector<1x8x128xf32> to vector<8x128xf32>
    %cst_76 = arith.constant dense<0.000000e+00> : vector<8x128xf32>
    %195 = tpu.matmul %154, %4, %cst_76 {dimension_numbers = #tpu.dot_dimension_numbers<[1], [0], [0], [1], [0, 0, 1, 1], [], []>} : vector<8x32xf32>, vector<32x128xf32>, vector<8x128xf32> -> vector<8x128xf32>
    %196 = arith.addf %194, %195 : vector<8x128xf32>
    %197 = vector.extract_strided_slice %196 {offsets = [0, 0], sizes = [8, 32], strides = [1, 1]} : vector<8x128xf32> to vector<8x32xf32>
    %cst_77 = arith.constant 5.000000e-01 : f32
    %198 = vector.broadcast %cst_77 : f32 to vector<8x32xf32>
    %199 = arith.mulf %198, %197 : vector<8x32xf32>
    %200 = math.tanh %199 : vector<8x32xf32>
    %cst_78 = arith.constant 5.000000e-01 : f32
    %201 = vector.broadcast %cst_78 : f32 to vector<8x32xf32>
    %202 = arith.mulf %201, %200 : vector<8x32xf32>
    %cst_79 = arith.constant 5.000000e-01 : f32
    %203 = vector.broadcast %cst_79 : f32 to vector<8x32xf32>
    %204 = arith.addf %202, %203 : vector<8x32xf32>
    %205 = vector.extract_strided_slice %196 {offsets = [0, 32], sizes = [8, 32], strides = [1, 1]} : vector<8x128xf32> to vector<8x32xf32>
    %cst_80 = arith.constant 5.000000e-01 : f32
    %206 = vector.broadcast %cst_80 : f32 to vector<8x32xf32>
    %207 = arith.mulf %206, %205 : vector<8x32xf32>
    %208 = math.tanh %207 : vector<8x32xf32>
    %cst_81 = arith.constant 5.000000e-01 : f32
    %209 = vector.broadcast %cst_81 : f32 to vector<8x32xf32>
    %210 = arith.mulf %209, %208 : vector<8x32xf32>
    %cst_82 = arith.constant 5.000000e-01 : f32
    %211 = vector.broadcast %cst_82 : f32 to vector<8x32xf32>
    %212 = arith.addf %210, %211 : vector<8x32xf32>
    %213 = vector.extract_strided_slice %196 {offsets = [0, 64], sizes = [8, 32], strides = [1, 1]} : vector<8x128xf32> to vector<8x32xf32>
    %214 = math.tanh %213 : vector<8x32xf32>
    %215 = vector.extract_strided_slice %196 {offsets = [0, 96], sizes = [8, 32], strides = [1, 1]} : vector<8x128xf32> to vector<8x32xf32>
    %cst_83 = arith.constant 5.000000e-01 : f32
    %216 = vector.broadcast %cst_83 : f32 to vector<8x32xf32>
    %217 = arith.mulf %216, %215 : vector<8x32xf32>
    %218 = math.tanh %217 : vector<8x32xf32>
    %cst_84 = arith.constant 5.000000e-01 : f32
    %219 = vector.broadcast %cst_84 : f32 to vector<8x32xf32>
    %220 = arith.mulf %219, %218 : vector<8x32xf32>
    %cst_85 = arith.constant 5.000000e-01 : f32
    %221 = vector.broadcast %cst_85 : f32 to vector<8x32xf32>
    %222 = arith.addf %220, %221 : vector<8x32xf32>
    %223 = arith.mulf %212, %152 : vector<8x32xf32>
    %224 = arith.mulf %204, %214 : vector<8x32xf32>
    %225 = arith.addf %223, %224 : vector<8x32xf32>
    %226 = math.tanh %225 : vector<8x32xf32>
    %227 = arith.mulf %222, %226 : vector<8x32xf32>
    %c3_i32 = arith.constant 3 : i32
    %228 = arith.index_cast %c3_i32 : i32 to index
    %c0_86 = arith.constant 0 : index
    %c0_87 = arith.constant 0 : index
    %229 = vector.load %arg1[%228, %c0_86, %c0_87] : memref<8x8x128xf32, #tpu.memory_space<vmem>>, vector<1x8x128xf32>
    %230 = vector.shape_cast %229 : vector<1x8x128xf32> to vector<8x128xf32>
    %cst_88 = arith.constant dense<0.000000e+00> : vector<8x128xf32>
    %231 = tpu.matmul %190, %3, %cst_88 {dimension_numbers = #tpu.dot_dimension_numbers<[1], [0], [0], [1], [0, 0, 1, 1], [], []>} : vector<8x32xf32>, vector<32x128xf32>, vector<8x128xf32> -> vector<8x128xf32>
    %232 = arith.addf %230, %231 : vector<8x128xf32>
    %233 = vector.extract_strided_slice %232 {offsets = [0, 0], sizes = [8, 32], strides = [1, 1]} : vector<8x128xf32> to vector<8x32xf32>
    %cst_89 = arith.constant 5.000000e-01 : f32
    %234 = vector.broadcast %cst_89 : f32 to vector<8x32xf32>
    %235 = arith.mulf %234, %233 : vector<8x32xf32>
    %236 = math.tanh %235 : vector<8x32xf32>
    %cst_90 = arith.constant 5.000000e-01 : f32
    %237 = vector.broadcast %cst_90 : f32 to vector<8x32xf32>
    %238 = arith.mulf %237, %236 : vector<8x32xf32>
    %cst_91 = arith.constant 5.000000e-01 : f32
    %239 = vector.broadcast %cst_91 : f32 to vector<8x32xf32>
    %240 = arith.addf %238, %239 : vector<8x32xf32>
    %241 = vector.extract_strided_slice %232 {offsets = [0, 32], sizes = [8, 32], strides = [1, 1]} : vector<8x128xf32> to vector<8x32xf32>
    %cst_92 = arith.constant 5.000000e-01 : f32
    %242 = vector.broadcast %cst_92 : f32 to vector<8x32xf32>
    %243 = arith.mulf %242, %241 : vector<8x32xf32>
    %244 = math.tanh %243 : vector<8x32xf32>
    %cst_93 = arith.constant 5.000000e-01 : f32
    %245 = vector.broadcast %cst_93 : f32 to vector<8x32xf32>
    %246 = arith.mulf %245, %244 : vector<8x32xf32>
    %cst_94 = arith.constant 5.000000e-01 : f32
    %247 = vector.broadcast %cst_94 : f32 to vector<8x32xf32>
    %248 = arith.addf %246, %247 : vector<8x32xf32>
    %249 = vector.extract_strided_slice %232 {offsets = [0, 64], sizes = [8, 32], strides = [1, 1]} : vector<8x128xf32> to vector<8x32xf32>
    %250 = math.tanh %249 : vector<8x32xf32>
    %251 = vector.extract_strided_slice %232 {offsets = [0, 96], sizes = [8, 32], strides = [1, 1]} : vector<8x128xf32> to vector<8x32xf32>
    %cst_95 = arith.constant 5.000000e-01 : f32
    %252 = vector.broadcast %cst_95 : f32 to vector<8x32xf32>
    %253 = arith.mulf %252, %251 : vector<8x32xf32>
    %254 = math.tanh %253 : vector<8x32xf32>
    %cst_96 = arith.constant 5.000000e-01 : f32
    %255 = vector.broadcast %cst_96 : f32 to vector<8x32xf32>
    %256 = arith.mulf %255, %254 : vector<8x32xf32>
    %cst_97 = arith.constant 5.000000e-01 : f32
    %257 = vector.broadcast %cst_97 : f32 to vector<8x32xf32>
    %258 = arith.addf %256, %257 : vector<8x32xf32>
    %259 = arith.mulf %248, %188 : vector<8x32xf32>
    %260 = arith.mulf %240, %250 : vector<8x32xf32>
    %261 = arith.addf %259, %260 : vector<8x32xf32>
    %262 = math.tanh %261 : vector<8x32xf32>
    %263 = arith.mulf %258, %262 : vector<8x32xf32>
    %c7_i32_98 = arith.constant 7 : i32
    %264 = arith.subi %c7_i32_98, %c3_i32 : i32
    %265 = arith.index_cast %264 : i32 to index
    %c0_99 = arith.constant 0 : index
    %c0_100 = arith.constant 0 : index
    %266 = vector.load %arg2[%265, %c0_99, %c0_100] : memref<8x8x128xf32, #tpu.memory_space<vmem>>, vector<1x8x128xf32>
    %267 = vector.shape_cast %266 : vector<1x8x128xf32> to vector<8x128xf32>
    %cst_101 = arith.constant dense<0.000000e+00> : vector<8x128xf32>
    %268 = tpu.matmul %227, %4, %cst_101 {dimension_numbers = #tpu.dot_dimension_numbers<[1], [0], [0], [1], [0, 0, 1, 1], [], []>} : vector<8x32xf32>, vector<32x128xf32>, vector<8x128xf32> -> vector<8x128xf32>
    %269 = arith.addf %267, %268 : vector<8x128xf32>
    %270 = vector.extract_strided_slice %269 {offsets = [0, 0], sizes = [8, 32], strides = [1, 1]} : vector<8x128xf32> to vector<8x32xf32>
    %cst_102 = arith.constant 5.000000e-01 : f32
    %271 = vector.broadcast %cst_102 : f32 to vector<8x32xf32>
    %272 = arith.mulf %271, %270 : vector<8x32xf32>
    %273 = math.tanh %272 : vector<8x32xf32>
    %cst_103 = arith.constant 5.000000e-01 : f32
    %274 = vector.broadcast %cst_103 : f32 to vector<8x32xf32>
    %275 = arith.mulf %274, %273 : vector<8x32xf32>
    %cst_104 = arith.constant 5.000000e-01 : f32
    %276 = vector.broadcast %cst_104 : f32 to vector<8x32xf32>
    %277 = arith.addf %275, %276 : vector<8x32xf32>
    %278 = vector.extract_strided_slice %269 {offsets = [0, 32], sizes = [8, 32], strides = [1, 1]} : vector<8x128xf32> to vector<8x32xf32>
    %cst_105 = arith.constant 5.000000e-01 : f32
    %279 = vector.broadcast %cst_105 : f32 to vector<8x32xf32>
    %280 = arith.mulf %279, %278 : vector<8x32xf32>
    %281 = math.tanh %280 : vector<8x32xf32>
    %cst_106 = arith.constant 5.000000e-01 : f32
    %282 = vector.broadcast %cst_106 : f32 to vector<8x32xf32>
    %283 = arith.mulf %282, %281 : vector<8x32xf32>
    %cst_107 = arith.constant 5.000000e-01 : f32
    %284 = vector.broadcast %cst_107 : f32 to vector<8x32xf32>
    %285 = arith.addf %283, %284 : vector<8x32xf32>
    %286 = vector.extract_strided_slice %269 {offsets = [0, 64], sizes = [8, 32], strides = [1, 1]} : vector<8x128xf32> to vector<8x32xf32>
    %287 = math.tanh %286 : vector<8x32xf32>
    %288 = vector.extract_strided_slice %269 {offsets = [0, 96], sizes = [8, 32], strides = [1, 1]} : vector<8x128xf32> to vector<8x32xf32>
    %cst_108 = arith.constant 5.000000e-01 : f32
    %289 = vector.broadcast %cst_108 : f32 to vector<8x32xf32>
    %290 = arith.mulf %289, %288 : vector<8x32xf32>
    %291 = math.tanh %290 : vector<8x32xf32>
    %cst_109 = arith.constant 5.000000e-01 : f32
    %292 = vector.broadcast %cst_109 : f32 to vector<8x32xf32>
    %293 = arith.mulf %292, %291 : vector<8x32xf32>
    %cst_110 = arith.constant 5.000000e-01 : f32
    %294 = vector.broadcast %cst_110 : f32 to vector<8x32xf32>
    %295 = arith.addf %293, %294 : vector<8x32xf32>
    %296 = arith.mulf %285, %225 : vector<8x32xf32>
    %297 = arith.mulf %277, %287 : vector<8x32xf32>
    %298 = arith.addf %296, %297 : vector<8x32xf32>
    %299 = math.tanh %298 : vector<8x32xf32>
    %300 = arith.mulf %295, %299 : vector<8x32xf32>
    %c4_i32 = arith.constant 4 : i32
    %301 = arith.index_cast %c4_i32 : i32 to index
    %c0_111 = arith.constant 0 : index
    %c0_112 = arith.constant 0 : index
    %302 = vector.load %arg1[%301, %c0_111, %c0_112] : memref<8x8x128xf32, #tpu.memory_space<vmem>>, vector<1x8x128xf32>
    %303 = vector.shape_cast %302 : vector<1x8x128xf32> to vector<8x128xf32>
    %cst_113 = arith.constant dense<0.000000e+00> : vector<8x128xf32>
    %304 = tpu.matmul %263, %3, %cst_113 {dimension_numbers = #tpu.dot_dimension_numbers<[1], [0], [0], [1], [0, 0, 1, 1], [], []>} : vector<8x32xf32>, vector<32x128xf32>, vector<8x128xf32> -> vector<8x128xf32>
    %305 = arith.addf %303, %304 : vector<8x128xf32>
    %306 = vector.extract_strided_slice %305 {offsets = [0, 0], sizes = [8, 32], strides = [1, 1]} : vector<8x128xf32> to vector<8x32xf32>
    %cst_114 = arith.constant 5.000000e-01 : f32
    %307 = vector.broadcast %cst_114 : f32 to vector<8x32xf32>
    %308 = arith.mulf %307, %306 : vector<8x32xf32>
    %309 = math.tanh %308 : vector<8x32xf32>
    %cst_115 = arith.constant 5.000000e-01 : f32
    %310 = vector.broadcast %cst_115 : f32 to vector<8x32xf32>
    %311 = arith.mulf %310, %309 : vector<8x32xf32>
    %cst_116 = arith.constant 5.000000e-01 : f32
    %312 = vector.broadcast %cst_116 : f32 to vector<8x32xf32>
    %313 = arith.addf %311, %312 : vector<8x32xf32>
    %314 = vector.extract_strided_slice %305 {offsets = [0, 32], sizes = [8, 32], strides = [1, 1]} : vector<8x128xf32> to vector<8x32xf32>
    %cst_117 = arith.constant 5.000000e-01 : f32
    %315 = vector.broadcast %cst_117 : f32 to vector<8x32xf32>
    %316 = arith.mulf %315, %314 : vector<8x32xf32>
    %317 = math.tanh %316 : vector<8x32xf32>
    %cst_118 = arith.constant 5.000000e-01 : f32
    %318 = vector.broadcast %cst_118 : f32 to vector<8x32xf32>
    %319 = arith.mulf %318, %317 : vector<8x32xf32>
    %cst_119 = arith.constant 5.000000e-01 : f32
    %320 = vector.broadcast %cst_119 : f32 to vector<8x32xf32>
    %321 = arith.addf %319, %320 : vector<8x32xf32>
    %322 = vector.extract_strided_slice %305 {offsets = [0, 64], sizes = [8, 32], strides = [1, 1]} : vector<8x128xf32> to vector<8x32xf32>
    %323 = math.tanh %322 : vector<8x32xf32>
    %324 = vector.extract_strided_slice %305 {offsets = [0, 96], sizes = [8, 32], strides = [1, 1]} : vector<8x128xf32> to vector<8x32xf32>
    %cst_120 = arith.constant 5.000000e-01 : f32
    %325 = vector.broadcast %cst_120 : f32 to vector<8x32xf32>
    %326 = arith.mulf %325, %324 : vector<8x32xf32>
    %327 = math.tanh %326 : vector<8x32xf32>
    %cst_121 = arith.constant 5.000000e-01 : f32
    %328 = vector.broadcast %cst_121 : f32 to vector<8x32xf32>
    %329 = arith.mulf %328, %327 : vector<8x32xf32>
    %cst_122 = arith.constant 5.000000e-01 : f32
    %330 = vector.broadcast %cst_122 : f32 to vector<8x32xf32>
    %331 = arith.addf %329, %330 : vector<8x32xf32>
    %332 = arith.mulf %321, %261 : vector<8x32xf32>
    %333 = arith.mulf %313, %323 : vector<8x32xf32>
    %334 = arith.addf %332, %333 : vector<8x32xf32>
    %335 = math.tanh %334 : vector<8x32xf32>
    %336 = arith.mulf %331, %335 : vector<8x32xf32>
    %c7_i32_123 = arith.constant 7 : i32
    %337 = arith.subi %c7_i32_123, %c4_i32 : i32
    %338 = arith.index_cast %337 : i32 to index
    %c0_124 = arith.constant 0 : index
    %c0_125 = arith.constant 0 : index
    %339 = vector.load %arg2[%338, %c0_124, %c0_125] : memref<8x8x128xf32, #tpu.memory_space<vmem>>, vector<1x8x128xf32>
    %340 = vector.shape_cast %339 : vector<1x8x128xf32> to vector<8x128xf32>
    %cst_126 = arith.constant dense<0.000000e+00> : vector<8x128xf32>
    %341 = tpu.matmul %300, %4, %cst_126 {dimension_numbers = #tpu.dot_dimension_numbers<[1], [0], [0], [1], [0, 0, 1, 1], [], []>} : vector<8x32xf32>, vector<32x128xf32>, vector<8x128xf32> -> vector<8x128xf32>
    %342 = arith.addf %340, %341 : vector<8x128xf32>
    %343 = vector.extract_strided_slice %342 {offsets = [0, 0], sizes = [8, 32], strides = [1, 1]} : vector<8x128xf32> to vector<8x32xf32>
    %cst_127 = arith.constant 5.000000e-01 : f32
    %344 = vector.broadcast %cst_127 : f32 to vector<8x32xf32>
    %345 = arith.mulf %344, %343 : vector<8x32xf32>
    %346 = math.tanh %345 : vector<8x32xf32>
    %cst_128 = arith.constant 5.000000e-01 : f32
    %347 = vector.broadcast %cst_128 : f32 to vector<8x32xf32>
    %348 = arith.mulf %347, %346 : vector<8x32xf32>
    %cst_129 = arith.constant 5.000000e-01 : f32
    %349 = vector.broadcast %cst_129 : f32 to vector<8x32xf32>
    %350 = arith.addf %348, %349 : vector<8x32xf32>
    %351 = vector.extract_strided_slice %342 {offsets = [0, 32], sizes = [8, 32], strides = [1, 1]} : vector<8x128xf32> to vector<8x32xf32>
    %cst_130 = arith.constant 5.000000e-01 : f32
    %352 = vector.broadcast %cst_130 : f32 to vector<8x32xf32>
    %353 = arith.mulf %352, %351 : vector<8x32xf32>
    %354 = math.tanh %353 : vector<8x32xf32>
    %cst_131 = arith.constant 5.000000e-01 : f32
    %355 = vector.broadcast %cst_131 : f32 to vector<8x32xf32>
    %356 = arith.mulf %355, %354 : vector<8x32xf32>
    %cst_132 = arith.constant 5.000000e-01 : f32
    %357 = vector.broadcast %cst_132 : f32 to vector<8x32xf32>
    %358 = arith.addf %356, %357 : vector<8x32xf32>
    %359 = vector.extract_strided_slice %342 {offsets = [0, 64], sizes = [8, 32], strides = [1, 1]} : vector<8x128xf32> to vector<8x32xf32>
    %360 = math.tanh %359 : vector<8x32xf32>
    %361 = vector.extract_strided_slice %342 {offsets = [0, 96], sizes = [8, 32], strides = [1, 1]} : vector<8x128xf32> to vector<8x32xf32>
    %cst_133 = arith.constant 5.000000e-01 : f32
    %362 = vector.broadcast %cst_133 : f32 to vector<8x32xf32>
    %363 = arith.mulf %362, %361 : vector<8x32xf32>
    %364 = math.tanh %363 : vector<8x32xf32>
    %cst_134 = arith.constant 5.000000e-01 : f32
    %365 = vector.broadcast %cst_134 : f32 to vector<8x32xf32>
    %366 = arith.mulf %365, %364 : vector<8x32xf32>
    %cst_135 = arith.constant 5.000000e-01 : f32
    %367 = vector.broadcast %cst_135 : f32 to vector<8x32xf32>
    %368 = arith.addf %366, %367 : vector<8x32xf32>
    %369 = arith.mulf %358, %298 : vector<8x32xf32>
    %370 = arith.mulf %350, %360 : vector<8x32xf32>
    %371 = arith.addf %369, %370 : vector<8x32xf32>
    %372 = math.tanh %371 : vector<8x32xf32>
    %373 = arith.mulf %368, %372 : vector<8x32xf32>
    %c5_i32 = arith.constant 5 : i32
    %374 = arith.index_cast %c5_i32 : i32 to index
    %c0_136 = arith.constant 0 : index
    %c0_137 = arith.constant 0 : index
    %375 = vector.load %arg1[%374, %c0_136, %c0_137] : memref<8x8x128xf32, #tpu.memory_space<vmem>>, vector<1x8x128xf32>
    %376 = vector.shape_cast %375 : vector<1x8x128xf32> to vector<8x128xf32>
    %cst_138 = arith.constant dense<0.000000e+00> : vector<8x128xf32>
    %377 = tpu.matmul %336, %3, %cst_138 {dimension_numbers = #tpu.dot_dimension_numbers<[1], [0], [0], [1], [0, 0, 1, 1], [], []>} : vector<8x32xf32>, vector<32x128xf32>, vector<8x128xf32> -> vector<8x128xf32>
    %378 = arith.addf %376, %377 : vector<8x128xf32>
    %379 = vector.extract_strided_slice %378 {offsets = [0, 0], sizes = [8, 32], strides = [1, 1]} : vector<8x128xf32> to vector<8x32xf32>
    %cst_139 = arith.constant 5.000000e-01 : f32
    %380 = vector.broadcast %cst_139 : f32 to vector<8x32xf32>
    %381 = arith.mulf %380, %379 : vector<8x32xf32>
    %382 = math.tanh %381 : vector<8x32xf32>
    %cst_140 = arith.constant 5.000000e-01 : f32
    %383 = vector.broadcast %cst_140 : f32 to vector<8x32xf32>
    %384 = arith.mulf %383, %382 : vector<8x32xf32>
    %cst_141 = arith.constant 5.000000e-01 : f32
    %385 = vector.broadcast %cst_141 : f32 to vector<8x32xf32>
    %386 = arith.addf %384, %385 : vector<8x32xf32>
    %387 = vector.extract_strided_slice %378 {offsets = [0, 32], sizes = [8, 32], strides = [1, 1]} : vector<8x128xf32> to vector<8x32xf32>
    %cst_142 = arith.constant 5.000000e-01 : f32
    %388 = vector.broadcast %cst_142 : f32 to vector<8x32xf32>
    %389 = arith.mulf %388, %387 : vector<8x32xf32>
    %390 = math.tanh %389 : vector<8x32xf32>
    %cst_143 = arith.constant 5.000000e-01 : f32
    %391 = vector.broadcast %cst_143 : f32 to vector<8x32xf32>
    %392 = arith.mulf %391, %390 : vector<8x32xf32>
    %cst_144 = arith.constant 5.000000e-01 : f32
    %393 = vector.broadcast %cst_144 : f32 to vector<8x32xf32>
    %394 = arith.addf %392, %393 : vector<8x32xf32>
    %395 = vector.extract_strided_slice %378 {offsets = [0, 64], sizes = [8, 32], strides = [1, 1]} : vector<8x128xf32> to vector<8x32xf32>
    %396 = math.tanh %395 : vector<8x32xf32>
    %397 = vector.extract_strided_slice %378 {offsets = [0, 96], sizes = [8, 32], strides = [1, 1]} : vector<8x128xf32> to vector<8x32xf32>
    %cst_145 = arith.constant 5.000000e-01 : f32
    %398 = vector.broadcast %cst_145 : f32 to vector<8x32xf32>
    %399 = arith.mulf %398, %397 : vector<8x32xf32>
    %400 = math.tanh %399 : vector<8x32xf32>
    %cst_146 = arith.constant 5.000000e-01 : f32
    %401 = vector.broadcast %cst_146 : f32 to vector<8x32xf32>
    %402 = arith.mulf %401, %400 : vector<8x32xf32>
    %cst_147 = arith.constant 5.000000e-01 : f32
    %403 = vector.broadcast %cst_147 : f32 to vector<8x32xf32>
    %404 = arith.addf %402, %403 : vector<8x32xf32>
    %405 = arith.mulf %394, %334 : vector<8x32xf32>
    %406 = arith.mulf %386, %396 : vector<8x32xf32>
    %407 = arith.addf %405, %406 : vector<8x32xf32>
    %408 = math.tanh %407 : vector<8x32xf32>
    %409 = arith.mulf %404, %408 : vector<8x32xf32>
    %c7_i32_148 = arith.constant 7 : i32
    %410 = arith.subi %c7_i32_148, %c5_i32 : i32
    %411 = arith.index_cast %410 : i32 to index
    %c0_149 = arith.constant 0 : index
    %c0_150 = arith.constant 0 : index
    %412 = vector.load %arg2[%411, %c0_149, %c0_150] : memref<8x8x128xf32, #tpu.memory_space<vmem>>, vector<1x8x128xf32>
    %413 = vector.shape_cast %412 : vector<1x8x128xf32> to vector<8x128xf32>
    %cst_151 = arith.constant dense<0.000000e+00> : vector<8x128xf32>
    %414 = tpu.matmul %373, %4, %cst_151 {dimension_numbers = #tpu.dot_dimension_numbers<[1], [0], [0], [1], [0, 0, 1, 1], [], []>} : vector<8x32xf32>, vector<32x128xf32>, vector<8x128xf32> -> vector<8x128xf32>
    %415 = arith.addf %413, %414 : vector<8x128xf32>
    %416 = vector.extract_strided_slice %415 {offsets = [0, 0], sizes = [8, 32], strides = [1, 1]} : vector<8x128xf32> to vector<8x32xf32>
    %cst_152 = arith.constant 5.000000e-01 : f32
    %417 = vector.broadcast %cst_152 : f32 to vector<8x32xf32>
    %418 = arith.mulf %417, %416 : vector<8x32xf32>
    %419 = math.tanh %418 : vector<8x32xf32>
    %cst_153 = arith.constant 5.000000e-01 : f32
    %420 = vector.broadcast %cst_153 : f32 to vector<8x32xf32>
    %421 = arith.mulf %420, %419 : vector<8x32xf32>
    %cst_154 = arith.constant 5.000000e-01 : f32
    %422 = vector.broadcast %cst_154 : f32 to vector<8x32xf32>
    %423 = arith.addf %421, %422 : vector<8x32xf32>
    %424 = vector.extract_strided_slice %415 {offsets = [0, 32], sizes = [8, 32], strides = [1, 1]} : vector<8x128xf32> to vector<8x32xf32>
    %cst_155 = arith.constant 5.000000e-01 : f32
    %425 = vector.broadcast %cst_155 : f32 to vector<8x32xf32>
    %426 = arith.mulf %425, %424 : vector<8x32xf32>
    %427 = math.tanh %426 : vector<8x32xf32>
    %cst_156 = arith.constant 5.000000e-01 : f32
    %428 = vector.broadcast %cst_156 : f32 to vector<8x32xf32>
    %429 = arith.mulf %428, %427 : vector<8x32xf32>
    %cst_157 = arith.constant 5.000000e-01 : f32
    %430 = vector.broadcast %cst_157 : f32 to vector<8x32xf32>
    %431 = arith.addf %429, %430 : vector<8x32xf32>
    %432 = vector.extract_strided_slice %415 {offsets = [0, 64], sizes = [8, 32], strides = [1, 1]} : vector<8x128xf32> to vector<8x32xf32>
    %433 = math.tanh %432 : vector<8x32xf32>
    %434 = vector.extract_strided_slice %415 {offsets = [0, 96], sizes = [8, 32], strides = [1, 1]} : vector<8x128xf32> to vector<8x32xf32>
    %cst_158 = arith.constant 5.000000e-01 : f32
    %435 = vector.broadcast %cst_158 : f32 to vector<8x32xf32>
    %436 = arith.mulf %435, %434 : vector<8x32xf32>
    %437 = math.tanh %436 : vector<8x32xf32>
    %cst_159 = arith.constant 5.000000e-01 : f32
    %438 = vector.broadcast %cst_159 : f32 to vector<8x32xf32>
    %439 = arith.mulf %438, %437 : vector<8x32xf32>
    %cst_160 = arith.constant 5.000000e-01 : f32
    %440 = vector.broadcast %cst_160 : f32 to vector<8x32xf32>
    %441 = arith.addf %439, %440 : vector<8x32xf32>
    %442 = arith.mulf %431, %371 : vector<8x32xf32>
    %443 = arith.mulf %423, %433 : vector<8x32xf32>
    %444 = arith.addf %442, %443 : vector<8x32xf32>
    %445 = math.tanh %444 : vector<8x32xf32>
    %446 = arith.mulf %441, %445 : vector<8x32xf32>
    %c6_i32 = arith.constant 6 : i32
    %447 = arith.index_cast %c6_i32 : i32 to index
    %c0_161 = arith.constant 0 : index
    %c0_162 = arith.constant 0 : index
    %448 = vector.load %arg1[%447, %c0_161, %c0_162] : memref<8x8x128xf32, #tpu.memory_space<vmem>>, vector<1x8x128xf32>
    %449 = vector.shape_cast %448 : vector<1x8x128xf32> to vector<8x128xf32>
    %cst_163 = arith.constant dense<0.000000e+00> : vector<8x128xf32>
    %450 = tpu.matmul %409, %3, %cst_163 {dimension_numbers = #tpu.dot_dimension_numbers<[1], [0], [0], [1], [0, 0, 1, 1], [], []>} : vector<8x32xf32>, vector<32x128xf32>, vector<8x128xf32> -> vector<8x128xf32>
    %451 = arith.addf %449, %450 : vector<8x128xf32>
    %452 = vector.extract_strided_slice %451 {offsets = [0, 0], sizes = [8, 32], strides = [1, 1]} : vector<8x128xf32> to vector<8x32xf32>
    %cst_164 = arith.constant 5.000000e-01 : f32
    %453 = vector.broadcast %cst_164 : f32 to vector<8x32xf32>
    %454 = arith.mulf %453, %452 : vector<8x32xf32>
    %455 = math.tanh %454 : vector<8x32xf32>
    %cst_165 = arith.constant 5.000000e-01 : f32
    %456 = vector.broadcast %cst_165 : f32 to vector<8x32xf32>
    %457 = arith.mulf %456, %455 : vector<8x32xf32>
    %cst_166 = arith.constant 5.000000e-01 : f32
    %458 = vector.broadcast %cst_166 : f32 to vector<8x32xf32>
    %459 = arith.addf %457, %458 : vector<8x32xf32>
    %460 = vector.extract_strided_slice %451 {offsets = [0, 32], sizes = [8, 32], strides = [1, 1]} : vector<8x128xf32> to vector<8x32xf32>
    %cst_167 = arith.constant 5.000000e-01 : f32
    %461 = vector.broadcast %cst_167 : f32 to vector<8x32xf32>
    %462 = arith.mulf %461, %460 : vector<8x32xf32>
    %463 = math.tanh %462 : vector<8x32xf32>
    %cst_168 = arith.constant 5.000000e-01 : f32
    %464 = vector.broadcast %cst_168 : f32 to vector<8x32xf32>
    %465 = arith.mulf %464, %463 : vector<8x32xf32>
    %cst_169 = arith.constant 5.000000e-01 : f32
    %466 = vector.broadcast %cst_169 : f32 to vector<8x32xf32>
    %467 = arith.addf %465, %466 : vector<8x32xf32>
    %468 = vector.extract_strided_slice %451 {offsets = [0, 64], sizes = [8, 32], strides = [1, 1]} : vector<8x128xf32> to vector<8x32xf32>
    %469 = math.tanh %468 : vector<8x32xf32>
    %470 = vector.extract_strided_slice %451 {offsets = [0, 96], sizes = [8, 32], strides = [1, 1]} : vector<8x128xf32> to vector<8x32xf32>
    %cst_170 = arith.constant 5.000000e-01 : f32
    %471 = vector.broadcast %cst_170 : f32 to vector<8x32xf32>
    %472 = arith.mulf %471, %470 : vector<8x32xf32>
    %473 = math.tanh %472 : vector<8x32xf32>
    %cst_171 = arith.constant 5.000000e-01 : f32
    %474 = vector.broadcast %cst_171 : f32 to vector<8x32xf32>
    %475 = arith.mulf %474, %473 : vector<8x32xf32>
    %cst_172 = arith.constant 5.000000e-01 : f32
    %476 = vector.broadcast %cst_172 : f32 to vector<8x32xf32>
    %477 = arith.addf %475, %476 : vector<8x32xf32>
    %478 = arith.mulf %467, %407 : vector<8x32xf32>
    %479 = arith.mulf %459, %469 : vector<8x32xf32>
    %480 = arith.addf %478, %479 : vector<8x32xf32>
    %481 = math.tanh %480 : vector<8x32xf32>
    %482 = arith.mulf %477, %481 : vector<8x32xf32>
    %c7_i32_173 = arith.constant 7 : i32
    %483 = arith.subi %c7_i32_173, %c6_i32 : i32
    %484 = arith.index_cast %483 : i32 to index
    %c0_174 = arith.constant 0 : index
    %c0_175 = arith.constant 0 : index
    %485 = vector.load %arg2[%484, %c0_174, %c0_175] : memref<8x8x128xf32, #tpu.memory_space<vmem>>, vector<1x8x128xf32>
    %486 = vector.shape_cast %485 : vector<1x8x128xf32> to vector<8x128xf32>
    %cst_176 = arith.constant dense<0.000000e+00> : vector<8x128xf32>
    %487 = tpu.matmul %446, %4, %cst_176 {dimension_numbers = #tpu.dot_dimension_numbers<[1], [0], [0], [1], [0, 0, 1, 1], [], []>} : vector<8x32xf32>, vector<32x128xf32>, vector<8x128xf32> -> vector<8x128xf32>
    %488 = arith.addf %486, %487 : vector<8x128xf32>
    %489 = vector.extract_strided_slice %488 {offsets = [0, 0], sizes = [8, 32], strides = [1, 1]} : vector<8x128xf32> to vector<8x32xf32>
    %cst_177 = arith.constant 5.000000e-01 : f32
    %490 = vector.broadcast %cst_177 : f32 to vector<8x32xf32>
    %491 = arith.mulf %490, %489 : vector<8x32xf32>
    %492 = math.tanh %491 : vector<8x32xf32>
    %cst_178 = arith.constant 5.000000e-01 : f32
    %493 = vector.broadcast %cst_178 : f32 to vector<8x32xf32>
    %494 = arith.mulf %493, %492 : vector<8x32xf32>
    %cst_179 = arith.constant 5.000000e-01 : f32
    %495 = vector.broadcast %cst_179 : f32 to vector<8x32xf32>
    %496 = arith.addf %494, %495 : vector<8x32xf32>
    %497 = vector.extract_strided_slice %488 {offsets = [0, 32], sizes = [8, 32], strides = [1, 1]} : vector<8x128xf32> to vector<8x32xf32>
    %cst_180 = arith.constant 5.000000e-01 : f32
    %498 = vector.broadcast %cst_180 : f32 to vector<8x32xf32>
    %499 = arith.mulf %498, %497 : vector<8x32xf32>
    %500 = math.tanh %499 : vector<8x32xf32>
    %cst_181 = arith.constant 5.000000e-01 : f32
    %501 = vector.broadcast %cst_181 : f32 to vector<8x32xf32>
    %502 = arith.mulf %501, %500 : vector<8x32xf32>
    %cst_182 = arith.constant 5.000000e-01 : f32
    %503 = vector.broadcast %cst_182 : f32 to vector<8x32xf32>
    %504 = arith.addf %502, %503 : vector<8x32xf32>
    %505 = vector.extract_strided_slice %488 {offsets = [0, 64], sizes = [8, 32], strides = [1, 1]} : vector<8x128xf32> to vector<8x32xf32>
    %506 = math.tanh %505 : vector<8x32xf32>
    %507 = vector.extract_strided_slice %488 {offsets = [0, 96], sizes = [8, 32], strides = [1, 1]} : vector<8x128xf32> to vector<8x32xf32>
    %cst_183 = arith.constant 5.000000e-01 : f32
    %508 = vector.broadcast %cst_183 : f32 to vector<8x32xf32>
    %509 = arith.mulf %508, %507 : vector<8x32xf32>
    %510 = math.tanh %509 : vector<8x32xf32>
    %cst_184 = arith.constant 5.000000e-01 : f32
    %511 = vector.broadcast %cst_184 : f32 to vector<8x32xf32>
    %512 = arith.mulf %511, %510 : vector<8x32xf32>
    %cst_185 = arith.constant 5.000000e-01 : f32
    %513 = vector.broadcast %cst_185 : f32 to vector<8x32xf32>
    %514 = arith.addf %512, %513 : vector<8x32xf32>
    %515 = arith.mulf %504, %444 : vector<8x32xf32>
    %516 = arith.mulf %496, %506 : vector<8x32xf32>
    %517 = arith.addf %515, %516 : vector<8x32xf32>
    %518 = math.tanh %517 : vector<8x32xf32>
    %519 = arith.mulf %514, %518 : vector<8x32xf32>
    %c7_i32_186 = arith.constant 7 : i32
    %520 = arith.index_cast %c7_i32_186 : i32 to index
    %c0_187 = arith.constant 0 : index
    %c0_188 = arith.constant 0 : index
    %521 = vector.load %arg1[%520, %c0_187, %c0_188] : memref<8x8x128xf32, #tpu.memory_space<vmem>>, vector<1x8x128xf32>
    %522 = vector.shape_cast %521 : vector<1x8x128xf32> to vector<8x128xf32>
    %cst_189 = arith.constant dense<0.000000e+00> : vector<8x128xf32>
    %523 = tpu.matmul %482, %3, %cst_189 {dimension_numbers = #tpu.dot_dimension_numbers<[1], [0], [0], [1], [0, 0, 1, 1], [], []>} : vector<8x32xf32>, vector<32x128xf32>, vector<8x128xf32> -> vector<8x128xf32>
    %524 = arith.addf %522, %523 : vector<8x128xf32>
    %525 = vector.extract_strided_slice %524 {offsets = [0, 0], sizes = [8, 32], strides = [1, 1]} : vector<8x128xf32> to vector<8x32xf32>
    %cst_190 = arith.constant 5.000000e-01 : f32
    %526 = vector.broadcast %cst_190 : f32 to vector<8x32xf32>
    %527 = arith.mulf %526, %525 : vector<8x32xf32>
    %528 = math.tanh %527 : vector<8x32xf32>
    %cst_191 = arith.constant 5.000000e-01 : f32
    %529 = vector.broadcast %cst_191 : f32 to vector<8x32xf32>
    %530 = arith.mulf %529, %528 : vector<8x32xf32>
    %cst_192 = arith.constant 5.000000e-01 : f32
    %531 = vector.broadcast %cst_192 : f32 to vector<8x32xf32>
    %532 = arith.addf %530, %531 : vector<8x32xf32>
    %533 = vector.extract_strided_slice %524 {offsets = [0, 32], sizes = [8, 32], strides = [1, 1]} : vector<8x128xf32> to vector<8x32xf32>
    %cst_193 = arith.constant 5.000000e-01 : f32
    %534 = vector.broadcast %cst_193 : f32 to vector<8x32xf32>
    %535 = arith.mulf %534, %533 : vector<8x32xf32>
    %536 = math.tanh %535 : vector<8x32xf32>
    %cst_194 = arith.constant 5.000000e-01 : f32
    %537 = vector.broadcast %cst_194 : f32 to vector<8x32xf32>
    %538 = arith.mulf %537, %536 : vector<8x32xf32>
    %cst_195 = arith.constant 5.000000e-01 : f32
    %539 = vector.broadcast %cst_195 : f32 to vector<8x32xf32>
    %540 = arith.addf %538, %539 : vector<8x32xf32>
    %541 = vector.extract_strided_slice %524 {offsets = [0, 64], sizes = [8, 32], strides = [1, 1]} : vector<8x128xf32> to vector<8x32xf32>
    %542 = math.tanh %541 : vector<8x32xf32>
    %543 = vector.extract_strided_slice %524 {offsets = [0, 96], sizes = [8, 32], strides = [1, 1]} : vector<8x128xf32> to vector<8x32xf32>
    %cst_196 = arith.constant 5.000000e-01 : f32
    %544 = vector.broadcast %cst_196 : f32 to vector<8x32xf32>
    %545 = arith.mulf %544, %543 : vector<8x32xf32>
    %546 = math.tanh %545 : vector<8x32xf32>
    %cst_197 = arith.constant 5.000000e-01 : f32
    %547 = vector.broadcast %cst_197 : f32 to vector<8x32xf32>
    %548 = arith.mulf %547, %546 : vector<8x32xf32>
    %cst_198 = arith.constant 5.000000e-01 : f32
    %549 = vector.broadcast %cst_198 : f32 to vector<8x32xf32>
    %550 = arith.addf %548, %549 : vector<8x32xf32>
    %551 = arith.mulf %540, %480 : vector<8x32xf32>
    %552 = arith.mulf %532, %542 : vector<8x32xf32>
    %553 = arith.addf %551, %552 : vector<8x32xf32>
    %554 = math.tanh %553 : vector<8x32xf32>
    %555 = arith.mulf %550, %554 : vector<8x32xf32>
    %c7_i32_199 = arith.constant 7 : i32
    %556 = arith.subi %c7_i32_199, %c7_i32_186 : i32
    %557 = arith.index_cast %556 : i32 to index
    %c0_200 = arith.constant 0 : index
    %c0_201 = arith.constant 0 : index
    %558 = vector.load %arg2[%557, %c0_200, %c0_201] : memref<8x8x128xf32, #tpu.memory_space<vmem>>, vector<1x8x128xf32>
    %559 = vector.shape_cast %558 : vector<1x8x128xf32> to vector<8x128xf32>
    %cst_202 = arith.constant dense<0.000000e+00> : vector<8x128xf32>
    %560 = tpu.matmul %519, %4, %cst_202 {dimension_numbers = #tpu.dot_dimension_numbers<[1], [0], [0], [1], [0, 0, 1, 1], [], []>} : vector<8x32xf32>, vector<32x128xf32>, vector<8x128xf32> -> vector<8x128xf32>
    %561 = arith.addf %559, %560 : vector<8x128xf32>
    %562 = vector.extract_strided_slice %561 {offsets = [0, 0], sizes = [8, 32], strides = [1, 1]} : vector<8x128xf32> to vector<8x32xf32>
    %cst_203 = arith.constant 5.000000e-01 : f32
    %563 = vector.broadcast %cst_203 : f32 to vector<8x32xf32>
    %564 = arith.mulf %563, %562 : vector<8x32xf32>
    %565 = math.tanh %564 : vector<8x32xf32>
    %cst_204 = arith.constant 5.000000e-01 : f32
    %566 = vector.broadcast %cst_204 : f32 to vector<8x32xf32>
    %567 = arith.mulf %566, %565 : vector<8x32xf32>
    %cst_205 = arith.constant 5.000000e-01 : f32
    %568 = vector.broadcast %cst_205 : f32 to vector<8x32xf32>
    %569 = arith.addf %567, %568 : vector<8x32xf32>
    %570 = vector.extract_strided_slice %561 {offsets = [0, 32], sizes = [8, 32], strides = [1, 1]} : vector<8x128xf32> to vector<8x32xf32>
    %cst_206 = arith.constant 5.000000e-01 : f32
    %571 = vector.broadcast %cst_206 : f32 to vector<8x32xf32>
    %572 = arith.mulf %571, %570 : vector<8x32xf32>
    %573 = math.tanh %572 : vector<8x32xf32>
    %cst_207 = arith.constant 5.000000e-01 : f32
    %574 = vector.broadcast %cst_207 : f32 to vector<8x32xf32>
    %575 = arith.mulf %574, %573 : vector<8x32xf32>
    %cst_208 = arith.constant 5.000000e-01 : f32
    %576 = vector.broadcast %cst_208 : f32 to vector<8x32xf32>
    %577 = arith.addf %575, %576 : vector<8x32xf32>
    %578 = vector.extract_strided_slice %561 {offsets = [0, 64], sizes = [8, 32], strides = [1, 1]} : vector<8x128xf32> to vector<8x32xf32>
    %579 = math.tanh %578 : vector<8x32xf32>
    %580 = vector.extract_strided_slice %561 {offsets = [0, 96], sizes = [8, 32], strides = [1, 1]} : vector<8x128xf32> to vector<8x32xf32>
    %cst_209 = arith.constant 5.000000e-01 : f32
    %581 = vector.broadcast %cst_209 : f32 to vector<8x32xf32>
    %582 = arith.mulf %581, %580 : vector<8x32xf32>
    %583 = math.tanh %582 : vector<8x32xf32>
    %cst_210 = arith.constant 5.000000e-01 : f32
    %584 = vector.broadcast %cst_210 : f32 to vector<8x32xf32>
    %585 = arith.mulf %584, %583 : vector<8x32xf32>
    %cst_211 = arith.constant 5.000000e-01 : f32
    %586 = vector.broadcast %cst_211 : f32 to vector<8x32xf32>
    %587 = arith.addf %585, %586 : vector<8x32xf32>
    %588 = arith.mulf %577, %517 : vector<8x32xf32>
    %589 = arith.mulf %569, %579 : vector<8x32xf32>
    %590 = arith.addf %588, %589 : vector<8x32xf32>
    %591 = math.tanh %590 : vector<8x32xf32>
    %592 = arith.mulf %587, %591 : vector<8x32xf32>
    %c8_i32 = arith.constant 8 : i32
    %c0_212 = arith.constant 0 : index
    %c0_213 = arith.constant 0 : index
    %593 = vector.load %arg6[%c0_212, %c0_213] : memref<8x32xf32, #tpu.memory_space<vmem>>, vector<8x32xf32>
    tpu.vector_store %arg6[%c0_212, %c0_213], %555 {strides = array<i32>} : memref<8x32xf32, #tpu.memory_space<vmem>>, vector<8x32xf32>,
    %c0_214 = arith.constant 0 : index
    %c0_215 = arith.constant 0 : index
    %594 = vector.load %arg7[%c0_214, %c0_215] : memref<8x32xf32, #tpu.memory_space<vmem>>, vector<8x32xf32>
    tpu.vector_store %arg7[%c0_214, %c0_215], %553 {strides = array<i32>} : memref<8x32xf32, #tpu.memory_space<vmem>>, vector<8x32xf32>,
    %c0_216 = arith.constant 0 : index
    %c0_217 = arith.constant 0 : index
    %595 = vector.load %arg8[%c0_216, %c0_217] : memref<8x32xf32, #tpu.memory_space<vmem>>, vector<8x32xf32>
    tpu.vector_store %arg8[%c0_216, %c0_217], %592 {strides = array<i32>} : memref<8x32xf32, #tpu.memory_space<vmem>>, vector<8x32xf32>,
    %c0_218 = arith.constant 0 : index
    %c0_219 = arith.constant 0 : index
    %596 = vector.load %arg9[%c0_218, %c0_219] : memref<8x32xf32, #tpu.memory_space<vmem>>, vector<8x32xf32>
    tpu.vector_store %arg9[%c0_218, %c0_219], %590 {strides = array<i32>} : memref<8x32xf32, #tpu.memory_space<vmem>>, vector<8x32xf32>,
    %c0_i32_220 = arith.constant 0 : i32
    %597 = arith.cmpi eq, %arg0, %c0_i32_220 : i32
    %598 = arith.extui %597 : i1 to i32
    %c0_i32_221 = arith.constant 0 : i32
    %599 = arith.cmpi ne, %598, %c0_i32_221 : i32
    scf.if %599 {
      %600 = tpu.concatenate %555, %592 in 1 : vector<8x32xf32>, vector<8x32xf32> -> vector<8x64xf32>
      %c0_222 = arith.constant 0 : index
      %c0_223 = arith.constant 0 : index
      %601 = vector.load %arg5[%c0_222, %c0_223] : memref<8x64xf32, #tpu.memory_space<vmem>>, vector<8x64xf32>
      tpu.vector_store %arg5[%c0_222, %c0_223], %600 {strides = array<i32>} : memref<8x64xf32, #tpu.memory_space<vmem>>, vector<8x64xf32>,
    } else {
    }
    return
  }
  func.func @transform_0(%arg0: i32) -> (i32, i32, i32) {
    %c0_i32 = arith.constant 0 : i32
    %c0_i32_0 = arith.constant 0 : i32
    %c0_i32_1 = arith.constant 0 : i32
    return %arg0, %c0_i32, %c0_i32_0 : i32, i32, i32
  }
  func.func @transform_1(%arg0: i32) -> (i32, i32, i32) {
    %c0_i32 = arith.constant 0 : i32
    %0 = arith.subi %c0_i32, %arg0 : i32
    %c0_i32_0 = arith.constant 0 : i32
    %c0_i32_1 = arith.constant 0 : i32
    %c0_i32_2 = arith.constant 0 : i32
    return %0, %c0_i32_0, %c0_i32_1 : i32, i32, i32
  }
  func.func @transform_2(%arg0: i32) -> (i32, i32) {
    %c0_i32 = arith.constant 0 : i32
    %c0_i32_0 = arith.constant 0 : i32
    %c0_i32_1 = arith.constant 0 : i32
    return %c0_i32, %c0_i32_0 : i32, i32
  }
  func.func @transform_3(%arg0: i32) -> (i32, i32) {
    %c0_i32 = arith.constant 0 : i32
    %c0_i32_0 = arith.constant 0 : i32
    %c0_i32_1 = arith.constant 0 : i32
    return %c0_i32, %c0_i32_0 : i32, i32
  }
  func.func @transform_4(%arg0: i32) -> (i32, i32) {
    %c0_i32 = arith.constant 0 : i32
    %c0_i32_0 = arith.constant 0 : i32
    %c0_i32_1 = arith.constant 0 : i32
    return %c0_i32, %c0_i32_0 : i32, i32
  }
}

module attributes {stable_mosaic.version = 11 : i64} {
  func.func @_bilstm_chunk_kernel(%arg0: i32, %arg1: memref<8x8x128xf32, #tpu.memory_space<vmem>>, %arg2: memref<8x8x128xf32, #tpu.memory_space<vmem>>, %arg3: memref<32x128xf32, #tpu.memory_space<vmem>>, %arg4: memref<32x128xf32, #tpu.memory_space<vmem>>, %arg5: memref<8x8x32xf32, #tpu.memory_space<vmem>>, %arg6: memref<8x8x32xf32, #tpu.memory_space<vmem>>, %arg7: memref<8x64xf32, #tpu.memory_space<vmem>>, %arg8: memref<8x32xf32, #tpu.memory_space<vmem>>, %arg9: memref<8x32xf32, #tpu.memory_space<vmem>>, %arg10: memref<8x32xf32, #tpu.memory_space<vmem>>, %arg11: memref<8x32xf32, #tpu.memory_space<vmem>>) attributes {dimension_semantics = [#tpu.dimension_semantics<arbitrary>], iteration_bounds = array<i64: 1>, scalar_prefetch = 0 : i64, scratch_operands = 4 : i64, tpu.core_type = #tpu.core_type<tc>, window_params = [{transform_indices = @transform_0, window_bounds = array<i64: 8, 8, 128>}, {transform_indices = @transform_1, window_bounds = array<i64: 8, 8, 128>}, {pipeline_mode = #tpu.pipeline_mode<synchronous>, transform_indices = @transform_2, window_bounds = array<i64: 32, 128>}, {pipeline_mode = #tpu.pipeline_mode<synchronous>, transform_indices = @transform_3, window_bounds = array<i64: 32, 128>}, {transform_indices = @transform_4, window_bounds = array<i64: 8, 8, 32>}, {transform_indices = @transform_5, window_bounds = array<i64: 8, 8, 32>}, {pipeline_mode = #tpu.pipeline_mode<synchronous>, transform_indices = @transform_6, window_bounds = array<i64: 8, 64>}]} {
    %c0_i32 = arith.constant 0 : i32
    %0 = arith.cmpi eq, %arg0, %c0_i32 : i32
    %1 = arith.extui %0 : i1 to i32
    %c0_i32_0 = arith.constant 0 : i32
    %2 = arith.cmpi ne, %1, %c0_i32_0 : i32
    scf.if %2 {
      %cst_254 = arith.constant 0.000000e+00 : f32
      %664 = vector.broadcast %cst_254 : f32 to vector<8x32xf32>
      %c0_255 = arith.constant 0 : index
      %c0_256 = arith.constant 0 : index
      %665 = vector.load %arg8[%c0_255, %c0_256] : memref<8x32xf32, #tpu.memory_space<vmem>>, vector<8x32xf32>
      tpu.vector_store %arg8[%c0_255, %c0_256], %664 {strides = array<i32>} : memref<8x32xf32, #tpu.memory_space<vmem>>, vector<8x32xf32>,
      %cst_257 = arith.constant 0.000000e+00 : f32
      %666 = vector.broadcast %cst_257 : f32 to vector<8x32xf32>
      %c0_258 = arith.constant 0 : index
      %c0_259 = arith.constant 0 : index
      %667 = vector.load %arg9[%c0_258, %c0_259] : memref<8x32xf32, #tpu.memory_space<vmem>>, vector<8x32xf32>
      tpu.vector_store %arg9[%c0_258, %c0_259], %666 {strides = array<i32>} : memref<8x32xf32, #tpu.memory_space<vmem>>, vector<8x32xf32>,
      %cst_260 = arith.constant 0.000000e+00 : f32
      %668 = vector.broadcast %cst_260 : f32 to vector<8x32xf32>
      %c0_261 = arith.constant 0 : index
      %c0_262 = arith.constant 0 : index
      %669 = vector.load %arg10[%c0_261, %c0_262] : memref<8x32xf32, #tpu.memory_space<vmem>>, vector<8x32xf32>
      tpu.vector_store %arg10[%c0_261, %c0_262], %668 {strides = array<i32>} : memref<8x32xf32, #tpu.memory_space<vmem>>, vector<8x32xf32>,
      %cst_263 = arith.constant 0.000000e+00 : f32
      %670 = vector.broadcast %cst_263 : f32 to vector<8x32xf32>
      %c0_264 = arith.constant 0 : index
      %c0_265 = arith.constant 0 : index
      %671 = vector.load %arg11[%c0_264, %c0_265] : memref<8x32xf32, #tpu.memory_space<vmem>>, vector<8x32xf32>
      tpu.vector_store %arg11[%c0_264, %c0_265], %670 {strides = array<i32>} : memref<8x32xf32, #tpu.memory_space<vmem>>, vector<8x32xf32>,
    } else {
    }
    %c0 = arith.constant 0 : index
    %c0_1 = arith.constant 0 : index
    %3 = vector.load %arg3[%c0, %c0_1] : memref<32x128xf32, #tpu.memory_space<vmem>>, vector<32x128xf32>
    %c0_2 = arith.constant 0 : index
    %c0_3 = arith.constant 0 : index
    %4 = vector.load %arg4[%c0_2, %c0_3] : memref<32x128xf32, #tpu.memory_space<vmem>>, vector<32x128xf32>
    %c0_4 = arith.constant 0 : index
    %c0_5 = arith.constant 0 : index
    %5 = vector.load %arg8[%c0_4, %c0_5] : memref<8x32xf32, #tpu.memory_space<vmem>>, vector<8x32xf32>
    %c0_6 = arith.constant 0 : index
    %c0_7 = arith.constant 0 : index
    %6 = vector.load %arg9[%c0_6, %c0_7] : memref<8x32xf32, #tpu.memory_space<vmem>>, vector<8x32xf32>
    %c0_8 = arith.constant 0 : index
    %c0_9 = arith.constant 0 : index
    %7 = vector.load %arg10[%c0_8, %c0_9] : memref<8x32xf32, #tpu.memory_space<vmem>>, vector<8x32xf32>
    %c0_10 = arith.constant 0 : index
    %c0_11 = arith.constant 0 : index
    %8 = vector.load %arg11[%c0_10, %c0_11] : memref<8x32xf32, #tpu.memory_space<vmem>>, vector<8x32xf32>
    %c0_i32_12 = arith.constant 0 : i32
    %9 = arith.index_cast %c0_i32_12 : i32 to index
    %c0_13 = arith.constant 0 : index
    %c0_14 = arith.constant 0 : index
    %10 = vector.load %arg1[%9, %c0_13, %c0_14] : memref<8x8x128xf32, #tpu.memory_space<vmem>>, vector<1x8x128xf32>
    %11 = vector.shape_cast %10 : vector<1x8x128xf32> to vector<8x128xf32>
    %cst = arith.constant dense<0.000000e+00> : vector<8x128xf32>
    %12 = tpu.matmul %5, %3, %cst {dimension_numbers = #tpu.dot_dimension_numbers<[1], [0], [0], [1], [0, 0, 1, 1], [], []>} : vector<8x32xf32>, vector<32x128xf32>, vector<8x128xf32> -> vector<8x128xf32>
    %13 = arith.addf %11, %12 : vector<8x128xf32>
    %14 = vector.extract_strided_slice %13 {offsets = [0, 0], sizes = [8, 32], strides = [1, 1]} : vector<8x128xf32> to vector<8x32xf32>
    %cst_15 = arith.constant 5.000000e-01 : f32
    %15 = vector.broadcast %cst_15 : f32 to vector<8x32xf32>
    %16 = arith.mulf %15, %14 : vector<8x32xf32>
    %17 = math.tanh %16 : vector<8x32xf32>
    %cst_16 = arith.constant 5.000000e-01 : f32
    %18 = vector.broadcast %cst_16 : f32 to vector<8x32xf32>
    %19 = arith.mulf %18, %17 : vector<8x32xf32>
    %cst_17 = arith.constant 5.000000e-01 : f32
    %20 = vector.broadcast %cst_17 : f32 to vector<8x32xf32>
    %21 = arith.addf %19, %20 : vector<8x32xf32>
    %22 = vector.extract_strided_slice %13 {offsets = [0, 32], sizes = [8, 32], strides = [1, 1]} : vector<8x128xf32> to vector<8x32xf32>
    %cst_18 = arith.constant 5.000000e-01 : f32
    %23 = vector.broadcast %cst_18 : f32 to vector<8x32xf32>
    %24 = arith.mulf %23, %22 : vector<8x32xf32>
    %25 = math.tanh %24 : vector<8x32xf32>
    %cst_19 = arith.constant 5.000000e-01 : f32
    %26 = vector.broadcast %cst_19 : f32 to vector<8x32xf32>
    %27 = arith.mulf %26, %25 : vector<8x32xf32>
    %cst_20 = arith.constant 5.000000e-01 : f32
    %28 = vector.broadcast %cst_20 : f32 to vector<8x32xf32>
    %29 = arith.addf %27, %28 : vector<8x32xf32>
    %30 = vector.extract_strided_slice %13 {offsets = [0, 64], sizes = [8, 32], strides = [1, 1]} : vector<8x128xf32> to vector<8x32xf32>
    %31 = math.tanh %30 : vector<8x32xf32>
    %32 = vector.extract_strided_slice %13 {offsets = [0, 96], sizes = [8, 32], strides = [1, 1]} : vector<8x128xf32> to vector<8x32xf32>
    %cst_21 = arith.constant 5.000000e-01 : f32
    %33 = vector.broadcast %cst_21 : f32 to vector<8x32xf32>
    %34 = arith.mulf %33, %32 : vector<8x32xf32>
    %35 = math.tanh %34 : vector<8x32xf32>
    %cst_22 = arith.constant 5.000000e-01 : f32
    %36 = vector.broadcast %cst_22 : f32 to vector<8x32xf32>
    %37 = arith.mulf %36, %35 : vector<8x32xf32>
    %cst_23 = arith.constant 5.000000e-01 : f32
    %38 = vector.broadcast %cst_23 : f32 to vector<8x32xf32>
    %39 = arith.addf %37, %38 : vector<8x32xf32>
    %40 = arith.mulf %29, %6 : vector<8x32xf32>
    %41 = arith.mulf %21, %31 : vector<8x32xf32>
    %42 = arith.addf %40, %41 : vector<8x32xf32>
    %43 = math.tanh %42 : vector<8x32xf32>
    %44 = arith.mulf %39, %43 : vector<8x32xf32>
    %45 = arith.index_cast %c0_i32_12 : i32 to index
    %c0_24 = arith.constant 0 : index
    %c0_25 = arith.constant 0 : index
    %46 = vector.load %arg5[%45, %c0_24, %c0_25] : memref<8x8x32xf32, #tpu.memory_space<vmem>>, vector<1x8x32xf32>
    %47 = vector.shape_cast %46 : vector<1x8x32xf32> to vector<8x32xf32>
    %48 = vector.shape_cast %44 : vector<8x32xf32> to vector<1x8x32xf32>
    tpu.vector_store %arg5[%45, %c0_24, %c0_25], %48 {strides = array<i32>} : memref<8x8x32xf32, #tpu.memory_space<vmem>>, vector<1x8x32xf32>,
    %c7_i32 = arith.constant 7 : i32
    %49 = arith.subi %c7_i32, %c0_i32_12 : i32
    %50 = arith.index_cast %49 : i32 to index
    %c0_26 = arith.constant 0 : index
    %c0_27 = arith.constant 0 : index
    %51 = vector.load %arg2[%50, %c0_26, %c0_27] : memref<8x8x128xf32, #tpu.memory_space<vmem>>, vector<1x8x128xf32>
    %52 = vector.shape_cast %51 : vector<1x8x128xf32> to vector<8x128xf32>
    %cst_28 = arith.constant dense<0.000000e+00> : vector<8x128xf32>
    %53 = tpu.matmul %7, %4, %cst_28 {dimension_numbers = #tpu.dot_dimension_numbers<[1], [0], [0], [1], [0, 0, 1, 1], [], []>} : vector<8x32xf32>, vector<32x128xf32>, vector<8x128xf32> -> vector<8x128xf32>
    %54 = arith.addf %52, %53 : vector<8x128xf32>
    %55 = vector.extract_strided_slice %54 {offsets = [0, 0], sizes = [8, 32], strides = [1, 1]} : vector<8x128xf32> to vector<8x32xf32>
    %cst_29 = arith.constant 5.000000e-01 : f32
    %56 = vector.broadcast %cst_29 : f32 to vector<8x32xf32>
    %57 = arith.mulf %56, %55 : vector<8x32xf32>
    %58 = math.tanh %57 : vector<8x32xf32>
    %cst_30 = arith.constant 5.000000e-01 : f32
    %59 = vector.broadcast %cst_30 : f32 to vector<8x32xf32>
    %60 = arith.mulf %59, %58 : vector<8x32xf32>
    %cst_31 = arith.constant 5.000000e-01 : f32
    %61 = vector.broadcast %cst_31 : f32 to vector<8x32xf32>
    %62 = arith.addf %60, %61 : vector<8x32xf32>
    %63 = vector.extract_strided_slice %54 {offsets = [0, 32], sizes = [8, 32], strides = [1, 1]} : vector<8x128xf32> to vector<8x32xf32>
    %cst_32 = arith.constant 5.000000e-01 : f32
    %64 = vector.broadcast %cst_32 : f32 to vector<8x32xf32>
    %65 = arith.mulf %64, %63 : vector<8x32xf32>
    %66 = math.tanh %65 : vector<8x32xf32>
    %cst_33 = arith.constant 5.000000e-01 : f32
    %67 = vector.broadcast %cst_33 : f32 to vector<8x32xf32>
    %68 = arith.mulf %67, %66 : vector<8x32xf32>
    %cst_34 = arith.constant 5.000000e-01 : f32
    %69 = vector.broadcast %cst_34 : f32 to vector<8x32xf32>
    %70 = arith.addf %68, %69 : vector<8x32xf32>
    %71 = vector.extract_strided_slice %54 {offsets = [0, 64], sizes = [8, 32], strides = [1, 1]} : vector<8x128xf32> to vector<8x32xf32>
    %72 = math.tanh %71 : vector<8x32xf32>
    %73 = vector.extract_strided_slice %54 {offsets = [0, 96], sizes = [8, 32], strides = [1, 1]} : vector<8x128xf32> to vector<8x32xf32>
    %cst_35 = arith.constant 5.000000e-01 : f32
    %74 = vector.broadcast %cst_35 : f32 to vector<8x32xf32>
    %75 = arith.mulf %74, %73 : vector<8x32xf32>
    %76 = math.tanh %75 : vector<8x32xf32>
    %cst_36 = arith.constant 5.000000e-01 : f32
    %77 = vector.broadcast %cst_36 : f32 to vector<8x32xf32>
    %78 = arith.mulf %77, %76 : vector<8x32xf32>
    %cst_37 = arith.constant 5.000000e-01 : f32
    %79 = vector.broadcast %cst_37 : f32 to vector<8x32xf32>
    %80 = arith.addf %78, %79 : vector<8x32xf32>
    %81 = arith.mulf %70, %8 : vector<8x32xf32>
    %82 = arith.mulf %62, %72 : vector<8x32xf32>
    %83 = arith.addf %81, %82 : vector<8x32xf32>
    %84 = math.tanh %83 : vector<8x32xf32>
    %85 = arith.mulf %80, %84 : vector<8x32xf32>
    %86 = arith.index_cast %49 : i32 to index
    %c0_38 = arith.constant 0 : index
    %c0_39 = arith.constant 0 : index
    %87 = vector.load %arg6[%86, %c0_38, %c0_39] : memref<8x8x32xf32, #tpu.memory_space<vmem>>, vector<1x8x32xf32>
    %88 = vector.shape_cast %87 : vector<1x8x32xf32> to vector<8x32xf32>
    %89 = vector.shape_cast %85 : vector<8x32xf32> to vector<1x8x32xf32>
    tpu.vector_store %arg6[%86, %c0_38, %c0_39], %89 {strides = array<i32>} : memref<8x8x32xf32, #tpu.memory_space<vmem>>, vector<1x8x32xf32>,
    %c1_i32 = arith.constant 1 : i32
    %90 = arith.index_cast %c1_i32 : i32 to index
    %c0_40 = arith.constant 0 : index
    %c0_41 = arith.constant 0 : index
    %91 = vector.load %arg1[%90, %c0_40, %c0_41] : memref<8x8x128xf32, #tpu.memory_space<vmem>>, vector<1x8x128xf32>
    %92 = vector.shape_cast %91 : vector<1x8x128xf32> to vector<8x128xf32>
    %cst_42 = arith.constant dense<0.000000e+00> : vector<8x128xf32>
    %93 = tpu.matmul %44, %3, %cst_42 {dimension_numbers = #tpu.dot_dimension_numbers<[1], [0], [0], [1], [0, 0, 1, 1], [], []>} : vector<8x32xf32>, vector<32x128xf32>, vector<8x128xf32> -> vector<8x128xf32>
    %94 = arith.addf %92, %93 : vector<8x128xf32>
    %95 = vector.extract_strided_slice %94 {offsets = [0, 0], sizes = [8, 32], strides = [1, 1]} : vector<8x128xf32> to vector<8x32xf32>
    %cst_43 = arith.constant 5.000000e-01 : f32
    %96 = vector.broadcast %cst_43 : f32 to vector<8x32xf32>
    %97 = arith.mulf %96, %95 : vector<8x32xf32>
    %98 = math.tanh %97 : vector<8x32xf32>
    %cst_44 = arith.constant 5.000000e-01 : f32
    %99 = vector.broadcast %cst_44 : f32 to vector<8x32xf32>
    %100 = arith.mulf %99, %98 : vector<8x32xf32>
    %cst_45 = arith.constant 5.000000e-01 : f32
    %101 = vector.broadcast %cst_45 : f32 to vector<8x32xf32>
    %102 = arith.addf %100, %101 : vector<8x32xf32>
    %103 = vector.extract_strided_slice %94 {offsets = [0, 32], sizes = [8, 32], strides = [1, 1]} : vector<8x128xf32> to vector<8x32xf32>
    %cst_46 = arith.constant 5.000000e-01 : f32
    %104 = vector.broadcast %cst_46 : f32 to vector<8x32xf32>
    %105 = arith.mulf %104, %103 : vector<8x32xf32>
    %106 = math.tanh %105 : vector<8x32xf32>
    %cst_47 = arith.constant 5.000000e-01 : f32
    %107 = vector.broadcast %cst_47 : f32 to vector<8x32xf32>
    %108 = arith.mulf %107, %106 : vector<8x32xf32>
    %cst_48 = arith.constant 5.000000e-01 : f32
    %109 = vector.broadcast %cst_48 : f32 to vector<8x32xf32>
    %110 = arith.addf %108, %109 : vector<8x32xf32>
    %111 = vector.extract_strided_slice %94 {offsets = [0, 64], sizes = [8, 32], strides = [1, 1]} : vector<8x128xf32> to vector<8x32xf32>
    %112 = math.tanh %111 : vector<8x32xf32>
    %113 = vector.extract_strided_slice %94 {offsets = [0, 96], sizes = [8, 32], strides = [1, 1]} : vector<8x128xf32> to vector<8x32xf32>
    %cst_49 = arith.constant 5.000000e-01 : f32
    %114 = vector.broadcast %cst_49 : f32 to vector<8x32xf32>
    %115 = arith.mulf %114, %113 : vector<8x32xf32>
    %116 = math.tanh %115 : vector<8x32xf32>
    %cst_50 = arith.constant 5.000000e-01 : f32
    %117 = vector.broadcast %cst_50 : f32 to vector<8x32xf32>
    %118 = arith.mulf %117, %116 : vector<8x32xf32>
    %cst_51 = arith.constant 5.000000e-01 : f32
    %119 = vector.broadcast %cst_51 : f32 to vector<8x32xf32>
    %120 = arith.addf %118, %119 : vector<8x32xf32>
    %121 = arith.mulf %110, %42 : vector<8x32xf32>
    %122 = arith.mulf %102, %112 : vector<8x32xf32>
    %123 = arith.addf %121, %122 : vector<8x32xf32>
    %124 = math.tanh %123 : vector<8x32xf32>
    %125 = arith.mulf %120, %124 : vector<8x32xf32>
    %126 = arith.index_cast %c1_i32 : i32 to index
    %c0_52 = arith.constant 0 : index
    %c0_53 = arith.constant 0 : index
    %127 = vector.load %arg5[%126, %c0_52, %c0_53] : memref<8x8x32xf32, #tpu.memory_space<vmem>>, vector<1x8x32xf32>
    %128 = vector.shape_cast %127 : vector<1x8x32xf32> to vector<8x32xf32>
    %129 = vector.shape_cast %125 : vector<8x32xf32> to vector<1x8x32xf32>
    tpu.vector_store %arg5[%126, %c0_52, %c0_53], %129 {strides = array<i32>} : memref<8x8x32xf32, #tpu.memory_space<vmem>>, vector<1x8x32xf32>,
    %c7_i32_54 = arith.constant 7 : i32
    %130 = arith.subi %c7_i32_54, %c1_i32 : i32
    %131 = arith.index_cast %130 : i32 to index
    %c0_55 = arith.constant 0 : index
    %c0_56 = arith.constant 0 : index
    %132 = vector.load %arg2[%131, %c0_55, %c0_56] : memref<8x8x128xf32, #tpu.memory_space<vmem>>, vector<1x8x128xf32>
    %133 = vector.shape_cast %132 : vector<1x8x128xf32> to vector<8x128xf32>
    %cst_57 = arith.constant dense<0.000000e+00> : vector<8x128xf32>
    %134 = tpu.matmul %85, %4, %cst_57 {dimension_numbers = #tpu.dot_dimension_numbers<[1], [0], [0], [1], [0, 0, 1, 1], [], []>} : vector<8x32xf32>, vector<32x128xf32>, vector<8x128xf32> -> vector<8x128xf32>
    %135 = arith.addf %133, %134 : vector<8x128xf32>
    %136 = vector.extract_strided_slice %135 {offsets = [0, 0], sizes = [8, 32], strides = [1, 1]} : vector<8x128xf32> to vector<8x32xf32>
    %cst_58 = arith.constant 5.000000e-01 : f32
    %137 = vector.broadcast %cst_58 : f32 to vector<8x32xf32>
    %138 = arith.mulf %137, %136 : vector<8x32xf32>
    %139 = math.tanh %138 : vector<8x32xf32>
    %cst_59 = arith.constant 5.000000e-01 : f32
    %140 = vector.broadcast %cst_59 : f32 to vector<8x32xf32>
    %141 = arith.mulf %140, %139 : vector<8x32xf32>
    %cst_60 = arith.constant 5.000000e-01 : f32
    %142 = vector.broadcast %cst_60 : f32 to vector<8x32xf32>
    %143 = arith.addf %141, %142 : vector<8x32xf32>
    %144 = vector.extract_strided_slice %135 {offsets = [0, 32], sizes = [8, 32], strides = [1, 1]} : vector<8x128xf32> to vector<8x32xf32>
    %cst_61 = arith.constant 5.000000e-01 : f32
    %145 = vector.broadcast %cst_61 : f32 to vector<8x32xf32>
    %146 = arith.mulf %145, %144 : vector<8x32xf32>
    %147 = math.tanh %146 : vector<8x32xf32>
    %cst_62 = arith.constant 5.000000e-01 : f32
    %148 = vector.broadcast %cst_62 : f32 to vector<8x32xf32>
    %149 = arith.mulf %148, %147 : vector<8x32xf32>
    %cst_63 = arith.constant 5.000000e-01 : f32
    %150 = vector.broadcast %cst_63 : f32 to vector<8x32xf32>
    %151 = arith.addf %149, %150 : vector<8x32xf32>
    %152 = vector.extract_strided_slice %135 {offsets = [0, 64], sizes = [8, 32], strides = [1, 1]} : vector<8x128xf32> to vector<8x32xf32>
    %153 = math.tanh %152 : vector<8x32xf32>
    %154 = vector.extract_strided_slice %135 {offsets = [0, 96], sizes = [8, 32], strides = [1, 1]} : vector<8x128xf32> to vector<8x32xf32>
    %cst_64 = arith.constant 5.000000e-01 : f32
    %155 = vector.broadcast %cst_64 : f32 to vector<8x32xf32>
    %156 = arith.mulf %155, %154 : vector<8x32xf32>
    %157 = math.tanh %156 : vector<8x32xf32>
    %cst_65 = arith.constant 5.000000e-01 : f32
    %158 = vector.broadcast %cst_65 : f32 to vector<8x32xf32>
    %159 = arith.mulf %158, %157 : vector<8x32xf32>
    %cst_66 = arith.constant 5.000000e-01 : f32
    %160 = vector.broadcast %cst_66 : f32 to vector<8x32xf32>
    %161 = arith.addf %159, %160 : vector<8x32xf32>
    %162 = arith.mulf %151, %83 : vector<8x32xf32>
    %163 = arith.mulf %143, %153 : vector<8x32xf32>
    %164 = arith.addf %162, %163 : vector<8x32xf32>
    %165 = math.tanh %164 : vector<8x32xf32>
    %166 = arith.mulf %161, %165 : vector<8x32xf32>
    %167 = arith.index_cast %130 : i32 to index
    %c0_67 = arith.constant 0 : index
    %c0_68 = arith.constant 0 : index
    %168 = vector.load %arg6[%167, %c0_67, %c0_68] : memref<8x8x32xf32, #tpu.memory_space<vmem>>, vector<1x8x32xf32>
    %169 = vector.shape_cast %168 : vector<1x8x32xf32> to vector<8x32xf32>
    %170 = vector.shape_cast %166 : vector<8x32xf32> to vector<1x8x32xf32>
    tpu.vector_store %arg6[%167, %c0_67, %c0_68], %170 {strides = array<i32>} : memref<8x8x32xf32, #tpu.memory_space<vmem>>, vector<1x8x32xf32>,
    %c2_i32 = arith.constant 2 : i32
    %171 = arith.index_cast %c2_i32 : i32 to index
    %c0_69 = arith.constant 0 : index
    %c0_70 = arith.constant 0 : index
    %172 = vector.load %arg1[%171, %c0_69, %c0_70] : memref<8x8x128xf32, #tpu.memory_space<vmem>>, vector<1x8x128xf32>
    %173 = vector.shape_cast %172 : vector<1x8x128xf32> to vector<8x128xf32>
    %cst_71 = arith.constant dense<0.000000e+00> : vector<8x128xf32>
    %174 = tpu.matmul %125, %3, %cst_71 {dimension_numbers = #tpu.dot_dimension_numbers<[1], [0], [0], [1], [0, 0, 1, 1], [], []>} : vector<8x32xf32>, vector<32x128xf32>, vector<8x128xf32> -> vector<8x128xf32>
    %175 = arith.addf %173, %174 : vector<8x128xf32>
    %176 = vector.extract_strided_slice %175 {offsets = [0, 0], sizes = [8, 32], strides = [1, 1]} : vector<8x128xf32> to vector<8x32xf32>
    %cst_72 = arith.constant 5.000000e-01 : f32
    %177 = vector.broadcast %cst_72 : f32 to vector<8x32xf32>
    %178 = arith.mulf %177, %176 : vector<8x32xf32>
    %179 = math.tanh %178 : vector<8x32xf32>
    %cst_73 = arith.constant 5.000000e-01 : f32
    %180 = vector.broadcast %cst_73 : f32 to vector<8x32xf32>
    %181 = arith.mulf %180, %179 : vector<8x32xf32>
    %cst_74 = arith.constant 5.000000e-01 : f32
    %182 = vector.broadcast %cst_74 : f32 to vector<8x32xf32>
    %183 = arith.addf %181, %182 : vector<8x32xf32>
    %184 = vector.extract_strided_slice %175 {offsets = [0, 32], sizes = [8, 32], strides = [1, 1]} : vector<8x128xf32> to vector<8x32xf32>
    %cst_75 = arith.constant 5.000000e-01 : f32
    %185 = vector.broadcast %cst_75 : f32 to vector<8x32xf32>
    %186 = arith.mulf %185, %184 : vector<8x32xf32>
    %187 = math.tanh %186 : vector<8x32xf32>
    %cst_76 = arith.constant 5.000000e-01 : f32
    %188 = vector.broadcast %cst_76 : f32 to vector<8x32xf32>
    %189 = arith.mulf %188, %187 : vector<8x32xf32>
    %cst_77 = arith.constant 5.000000e-01 : f32
    %190 = vector.broadcast %cst_77 : f32 to vector<8x32xf32>
    %191 = arith.addf %189, %190 : vector<8x32xf32>
    %192 = vector.extract_strided_slice %175 {offsets = [0, 64], sizes = [8, 32], strides = [1, 1]} : vector<8x128xf32> to vector<8x32xf32>
    %193 = math.tanh %192 : vector<8x32xf32>
    %194 = vector.extract_strided_slice %175 {offsets = [0, 96], sizes = [8, 32], strides = [1, 1]} : vector<8x128xf32> to vector<8x32xf32>
    %cst_78 = arith.constant 5.000000e-01 : f32
    %195 = vector.broadcast %cst_78 : f32 to vector<8x32xf32>
    %196 = arith.mulf %195, %194 : vector<8x32xf32>
    %197 = math.tanh %196 : vector<8x32xf32>
    %cst_79 = arith.constant 5.000000e-01 : f32
    %198 = vector.broadcast %cst_79 : f32 to vector<8x32xf32>
    %199 = arith.mulf %198, %197 : vector<8x32xf32>
    %cst_80 = arith.constant 5.000000e-01 : f32
    %200 = vector.broadcast %cst_80 : f32 to vector<8x32xf32>
    %201 = arith.addf %199, %200 : vector<8x32xf32>
    %202 = arith.mulf %191, %123 : vector<8x32xf32>
    %203 = arith.mulf %183, %193 : vector<8x32xf32>
    %204 = arith.addf %202, %203 : vector<8x32xf32>
    %205 = math.tanh %204 : vector<8x32xf32>
    %206 = arith.mulf %201, %205 : vector<8x32xf32>
    %207 = arith.index_cast %c2_i32 : i32 to index
    %c0_81 = arith.constant 0 : index
    %c0_82 = arith.constant 0 : index
    %208 = vector.load %arg5[%207, %c0_81, %c0_82] : memref<8x8x32xf32, #tpu.memory_space<vmem>>, vector<1x8x32xf32>
    %209 = vector.shape_cast %208 : vector<1x8x32xf32> to vector<8x32xf32>
    %210 = vector.shape_cast %206 : vector<8x32xf32> to vector<1x8x32xf32>
    tpu.vector_store %arg5[%207, %c0_81, %c0_82], %210 {strides = array<i32>} : memref<8x8x32xf32, #tpu.memory_space<vmem>>, vector<1x8x32xf32>,
    %c7_i32_83 = arith.constant 7 : i32
    %211 = arith.subi %c7_i32_83, %c2_i32 : i32
    %212 = arith.index_cast %211 : i32 to index
    %c0_84 = arith.constant 0 : index
    %c0_85 = arith.constant 0 : index
    %213 = vector.load %arg2[%212, %c0_84, %c0_85] : memref<8x8x128xf32, #tpu.memory_space<vmem>>, vector<1x8x128xf32>
    %214 = vector.shape_cast %213 : vector<1x8x128xf32> to vector<8x128xf32>
    %cst_86 = arith.constant dense<0.000000e+00> : vector<8x128xf32>
    %215 = tpu.matmul %166, %4, %cst_86 {dimension_numbers = #tpu.dot_dimension_numbers<[1], [0], [0], [1], [0, 0, 1, 1], [], []>} : vector<8x32xf32>, vector<32x128xf32>, vector<8x128xf32> -> vector<8x128xf32>
    %216 = arith.addf %214, %215 : vector<8x128xf32>
    %217 = vector.extract_strided_slice %216 {offsets = [0, 0], sizes = [8, 32], strides = [1, 1]} : vector<8x128xf32> to vector<8x32xf32>
    %cst_87 = arith.constant 5.000000e-01 : f32
    %218 = vector.broadcast %cst_87 : f32 to vector<8x32xf32>
    %219 = arith.mulf %218, %217 : vector<8x32xf32>
    %220 = math.tanh %219 : vector<8x32xf32>
    %cst_88 = arith.constant 5.000000e-01 : f32
    %221 = vector.broadcast %cst_88 : f32 to vector<8x32xf32>
    %222 = arith.mulf %221, %220 : vector<8x32xf32>
    %cst_89 = arith.constant 5.000000e-01 : f32
    %223 = vector.broadcast %cst_89 : f32 to vector<8x32xf32>
    %224 = arith.addf %222, %223 : vector<8x32xf32>
    %225 = vector.extract_strided_slice %216 {offsets = [0, 32], sizes = [8, 32], strides = [1, 1]} : vector<8x128xf32> to vector<8x32xf32>
    %cst_90 = arith.constant 5.000000e-01 : f32
    %226 = vector.broadcast %cst_90 : f32 to vector<8x32xf32>
    %227 = arith.mulf %226, %225 : vector<8x32xf32>
    %228 = math.tanh %227 : vector<8x32xf32>
    %cst_91 = arith.constant 5.000000e-01 : f32
    %229 = vector.broadcast %cst_91 : f32 to vector<8x32xf32>
    %230 = arith.mulf %229, %228 : vector<8x32xf32>
    %cst_92 = arith.constant 5.000000e-01 : f32
    %231 = vector.broadcast %cst_92 : f32 to vector<8x32xf32>
    %232 = arith.addf %230, %231 : vector<8x32xf32>
    %233 = vector.extract_strided_slice %216 {offsets = [0, 64], sizes = [8, 32], strides = [1, 1]} : vector<8x128xf32> to vector<8x32xf32>
    %234 = math.tanh %233 : vector<8x32xf32>
    %235 = vector.extract_strided_slice %216 {offsets = [0, 96], sizes = [8, 32], strides = [1, 1]} : vector<8x128xf32> to vector<8x32xf32>
    %cst_93 = arith.constant 5.000000e-01 : f32
    %236 = vector.broadcast %cst_93 : f32 to vector<8x32xf32>
    %237 = arith.mulf %236, %235 : vector<8x32xf32>
    %238 = math.tanh %237 : vector<8x32xf32>
    %cst_94 = arith.constant 5.000000e-01 : f32
    %239 = vector.broadcast %cst_94 : f32 to vector<8x32xf32>
    %240 = arith.mulf %239, %238 : vector<8x32xf32>
    %cst_95 = arith.constant 5.000000e-01 : f32
    %241 = vector.broadcast %cst_95 : f32 to vector<8x32xf32>
    %242 = arith.addf %240, %241 : vector<8x32xf32>
    %243 = arith.mulf %232, %164 : vector<8x32xf32>
    %244 = arith.mulf %224, %234 : vector<8x32xf32>
    %245 = arith.addf %243, %244 : vector<8x32xf32>
    %246 = math.tanh %245 : vector<8x32xf32>
    %247 = arith.mulf %242, %246 : vector<8x32xf32>
    %248 = arith.index_cast %211 : i32 to index
    %c0_96 = arith.constant 0 : index
    %c0_97 = arith.constant 0 : index
    %249 = vector.load %arg6[%248, %c0_96, %c0_97] : memref<8x8x32xf32, #tpu.memory_space<vmem>>, vector<1x8x32xf32>
    %250 = vector.shape_cast %249 : vector<1x8x32xf32> to vector<8x32xf32>
    %251 = vector.shape_cast %247 : vector<8x32xf32> to vector<1x8x32xf32>
    tpu.vector_store %arg6[%248, %c0_96, %c0_97], %251 {strides = array<i32>} : memref<8x8x32xf32, #tpu.memory_space<vmem>>, vector<1x8x32xf32>,
    %c3_i32 = arith.constant 3 : i32
    %252 = arith.index_cast %c3_i32 : i32 to index
    %c0_98 = arith.constant 0 : index
    %c0_99 = arith.constant 0 : index
    %253 = vector.load %arg1[%252, %c0_98, %c0_99] : memref<8x8x128xf32, #tpu.memory_space<vmem>>, vector<1x8x128xf32>
    %254 = vector.shape_cast %253 : vector<1x8x128xf32> to vector<8x128xf32>
    %cst_100 = arith.constant dense<0.000000e+00> : vector<8x128xf32>
    %255 = tpu.matmul %206, %3, %cst_100 {dimension_numbers = #tpu.dot_dimension_numbers<[1], [0], [0], [1], [0, 0, 1, 1], [], []>} : vector<8x32xf32>, vector<32x128xf32>, vector<8x128xf32> -> vector<8x128xf32>
    %256 = arith.addf %254, %255 : vector<8x128xf32>
    %257 = vector.extract_strided_slice %256 {offsets = [0, 0], sizes = [8, 32], strides = [1, 1]} : vector<8x128xf32> to vector<8x32xf32>
    %cst_101 = arith.constant 5.000000e-01 : f32
    %258 = vector.broadcast %cst_101 : f32 to vector<8x32xf32>
    %259 = arith.mulf %258, %257 : vector<8x32xf32>
    %260 = math.tanh %259 : vector<8x32xf32>
    %cst_102 = arith.constant 5.000000e-01 : f32
    %261 = vector.broadcast %cst_102 : f32 to vector<8x32xf32>
    %262 = arith.mulf %261, %260 : vector<8x32xf32>
    %cst_103 = arith.constant 5.000000e-01 : f32
    %263 = vector.broadcast %cst_103 : f32 to vector<8x32xf32>
    %264 = arith.addf %262, %263 : vector<8x32xf32>
    %265 = vector.extract_strided_slice %256 {offsets = [0, 32], sizes = [8, 32], strides = [1, 1]} : vector<8x128xf32> to vector<8x32xf32>
    %cst_104 = arith.constant 5.000000e-01 : f32
    %266 = vector.broadcast %cst_104 : f32 to vector<8x32xf32>
    %267 = arith.mulf %266, %265 : vector<8x32xf32>
    %268 = math.tanh %267 : vector<8x32xf32>
    %cst_105 = arith.constant 5.000000e-01 : f32
    %269 = vector.broadcast %cst_105 : f32 to vector<8x32xf32>
    %270 = arith.mulf %269, %268 : vector<8x32xf32>
    %cst_106 = arith.constant 5.000000e-01 : f32
    %271 = vector.broadcast %cst_106 : f32 to vector<8x32xf32>
    %272 = arith.addf %270, %271 : vector<8x32xf32>
    %273 = vector.extract_strided_slice %256 {offsets = [0, 64], sizes = [8, 32], strides = [1, 1]} : vector<8x128xf32> to vector<8x32xf32>
    %274 = math.tanh %273 : vector<8x32xf32>
    %275 = vector.extract_strided_slice %256 {offsets = [0, 96], sizes = [8, 32], strides = [1, 1]} : vector<8x128xf32> to vector<8x32xf32>
    %cst_107 = arith.constant 5.000000e-01 : f32
    %276 = vector.broadcast %cst_107 : f32 to vector<8x32xf32>
    %277 = arith.mulf %276, %275 : vector<8x32xf32>
    %278 = math.tanh %277 : vector<8x32xf32>
    %cst_108 = arith.constant 5.000000e-01 : f32
    %279 = vector.broadcast %cst_108 : f32 to vector<8x32xf32>
    %280 = arith.mulf %279, %278 : vector<8x32xf32>
    %cst_109 = arith.constant 5.000000e-01 : f32
    %281 = vector.broadcast %cst_109 : f32 to vector<8x32xf32>
    %282 = arith.addf %280, %281 : vector<8x32xf32>
    %283 = arith.mulf %272, %204 : vector<8x32xf32>
    %284 = arith.mulf %264, %274 : vector<8x32xf32>
    %285 = arith.addf %283, %284 : vector<8x32xf32>
    %286 = math.tanh %285 : vector<8x32xf32>
    %287 = arith.mulf %282, %286 : vector<8x32xf32>
    %288 = arith.index_cast %c3_i32 : i32 to index
    %c0_110 = arith.constant 0 : index
    %c0_111 = arith.constant 0 : index
    %289 = vector.load %arg5[%288, %c0_110, %c0_111] : memref<8x8x32xf32, #tpu.memory_space<vmem>>, vector<1x8x32xf32>
    %290 = vector.shape_cast %289 : vector<1x8x32xf32> to vector<8x32xf32>
    %291 = vector.shape_cast %287 : vector<8x32xf32> to vector<1x8x32xf32>
    tpu.vector_store %arg5[%288, %c0_110, %c0_111], %291 {strides = array<i32>} : memref<8x8x32xf32, #tpu.memory_space<vmem>>, vector<1x8x32xf32>,
    %c7_i32_112 = arith.constant 7 : i32
    %292 = arith.subi %c7_i32_112, %c3_i32 : i32
    %293 = arith.index_cast %292 : i32 to index
    %c0_113 = arith.constant 0 : index
    %c0_114 = arith.constant 0 : index
    %294 = vector.load %arg2[%293, %c0_113, %c0_114] : memref<8x8x128xf32, #tpu.memory_space<vmem>>, vector<1x8x128xf32>
    %295 = vector.shape_cast %294 : vector<1x8x128xf32> to vector<8x128xf32>
    %cst_115 = arith.constant dense<0.000000e+00> : vector<8x128xf32>
    %296 = tpu.matmul %247, %4, %cst_115 {dimension_numbers = #tpu.dot_dimension_numbers<[1], [0], [0], [1], [0, 0, 1, 1], [], []>} : vector<8x32xf32>, vector<32x128xf32>, vector<8x128xf32> -> vector<8x128xf32>
    %297 = arith.addf %295, %296 : vector<8x128xf32>
    %298 = vector.extract_strided_slice %297 {offsets = [0, 0], sizes = [8, 32], strides = [1, 1]} : vector<8x128xf32> to vector<8x32xf32>
    %cst_116 = arith.constant 5.000000e-01 : f32
    %299 = vector.broadcast %cst_116 : f32 to vector<8x32xf32>
    %300 = arith.mulf %299, %298 : vector<8x32xf32>
    %301 = math.tanh %300 : vector<8x32xf32>
    %cst_117 = arith.constant 5.000000e-01 : f32
    %302 = vector.broadcast %cst_117 : f32 to vector<8x32xf32>
    %303 = arith.mulf %302, %301 : vector<8x32xf32>
    %cst_118 = arith.constant 5.000000e-01 : f32
    %304 = vector.broadcast %cst_118 : f32 to vector<8x32xf32>
    %305 = arith.addf %303, %304 : vector<8x32xf32>
    %306 = vector.extract_strided_slice %297 {offsets = [0, 32], sizes = [8, 32], strides = [1, 1]} : vector<8x128xf32> to vector<8x32xf32>
    %cst_119 = arith.constant 5.000000e-01 : f32
    %307 = vector.broadcast %cst_119 : f32 to vector<8x32xf32>
    %308 = arith.mulf %307, %306 : vector<8x32xf32>
    %309 = math.tanh %308 : vector<8x32xf32>
    %cst_120 = arith.constant 5.000000e-01 : f32
    %310 = vector.broadcast %cst_120 : f32 to vector<8x32xf32>
    %311 = arith.mulf %310, %309 : vector<8x32xf32>
    %cst_121 = arith.constant 5.000000e-01 : f32
    %312 = vector.broadcast %cst_121 : f32 to vector<8x32xf32>
    %313 = arith.addf %311, %312 : vector<8x32xf32>
    %314 = vector.extract_strided_slice %297 {offsets = [0, 64], sizes = [8, 32], strides = [1, 1]} : vector<8x128xf32> to vector<8x32xf32>
    %315 = math.tanh %314 : vector<8x32xf32>
    %316 = vector.extract_strided_slice %297 {offsets = [0, 96], sizes = [8, 32], strides = [1, 1]} : vector<8x128xf32> to vector<8x32xf32>
    %cst_122 = arith.constant 5.000000e-01 : f32
    %317 = vector.broadcast %cst_122 : f32 to vector<8x32xf32>
    %318 = arith.mulf %317, %316 : vector<8x32xf32>
    %319 = math.tanh %318 : vector<8x32xf32>
    %cst_123 = arith.constant 5.000000e-01 : f32
    %320 = vector.broadcast %cst_123 : f32 to vector<8x32xf32>
    %321 = arith.mulf %320, %319 : vector<8x32xf32>
    %cst_124 = arith.constant 5.000000e-01 : f32
    %322 = vector.broadcast %cst_124 : f32 to vector<8x32xf32>
    %323 = arith.addf %321, %322 : vector<8x32xf32>
    %324 = arith.mulf %313, %245 : vector<8x32xf32>
    %325 = arith.mulf %305, %315 : vector<8x32xf32>
    %326 = arith.addf %324, %325 : vector<8x32xf32>
    %327 = math.tanh %326 : vector<8x32xf32>
    %328 = arith.mulf %323, %327 : vector<8x32xf32>
    %329 = arith.index_cast %292 : i32 to index
    %c0_125 = arith.constant 0 : index
    %c0_126 = arith.constant 0 : index
    %330 = vector.load %arg6[%329, %c0_125, %c0_126] : memref<8x8x32xf32, #tpu.memory_space<vmem>>, vector<1x8x32xf32>
    %331 = vector.shape_cast %330 : vector<1x8x32xf32> to vector<8x32xf32>
    %332 = vector.shape_cast %328 : vector<8x32xf32> to vector<1x8x32xf32>
    tpu.vector_store %arg6[%329, %c0_125, %c0_126], %332 {strides = array<i32>} : memref<8x8x32xf32, #tpu.memory_space<vmem>>, vector<1x8x32xf32>,
    %c4_i32 = arith.constant 4 : i32
    %333 = arith.index_cast %c4_i32 : i32 to index
    %c0_127 = arith.constant 0 : index
    %c0_128 = arith.constant 0 : index
    %334 = vector.load %arg1[%333, %c0_127, %c0_128] : memref<8x8x128xf32, #tpu.memory_space<vmem>>, vector<1x8x128xf32>
    %335 = vector.shape_cast %334 : vector<1x8x128xf32> to vector<8x128xf32>
    %cst_129 = arith.constant dense<0.000000e+00> : vector<8x128xf32>
    %336 = tpu.matmul %287, %3, %cst_129 {dimension_numbers = #tpu.dot_dimension_numbers<[1], [0], [0], [1], [0, 0, 1, 1], [], []>} : vector<8x32xf32>, vector<32x128xf32>, vector<8x128xf32> -> vector<8x128xf32>
    %337 = arith.addf %335, %336 : vector<8x128xf32>
    %338 = vector.extract_strided_slice %337 {offsets = [0, 0], sizes = [8, 32], strides = [1, 1]} : vector<8x128xf32> to vector<8x32xf32>
    %cst_130 = arith.constant 5.000000e-01 : f32
    %339 = vector.broadcast %cst_130 : f32 to vector<8x32xf32>
    %340 = arith.mulf %339, %338 : vector<8x32xf32>
    %341 = math.tanh %340 : vector<8x32xf32>
    %cst_131 = arith.constant 5.000000e-01 : f32
    %342 = vector.broadcast %cst_131 : f32 to vector<8x32xf32>
    %343 = arith.mulf %342, %341 : vector<8x32xf32>
    %cst_132 = arith.constant 5.000000e-01 : f32
    %344 = vector.broadcast %cst_132 : f32 to vector<8x32xf32>
    %345 = arith.addf %343, %344 : vector<8x32xf32>
    %346 = vector.extract_strided_slice %337 {offsets = [0, 32], sizes = [8, 32], strides = [1, 1]} : vector<8x128xf32> to vector<8x32xf32>
    %cst_133 = arith.constant 5.000000e-01 : f32
    %347 = vector.broadcast %cst_133 : f32 to vector<8x32xf32>
    %348 = arith.mulf %347, %346 : vector<8x32xf32>
    %349 = math.tanh %348 : vector<8x32xf32>
    %cst_134 = arith.constant 5.000000e-01 : f32
    %350 = vector.broadcast %cst_134 : f32 to vector<8x32xf32>
    %351 = arith.mulf %350, %349 : vector<8x32xf32>
    %cst_135 = arith.constant 5.000000e-01 : f32
    %352 = vector.broadcast %cst_135 : f32 to vector<8x32xf32>
    %353 = arith.addf %351, %352 : vector<8x32xf32>
    %354 = vector.extract_strided_slice %337 {offsets = [0, 64], sizes = [8, 32], strides = [1, 1]} : vector<8x128xf32> to vector<8x32xf32>
    %355 = math.tanh %354 : vector<8x32xf32>
    %356 = vector.extract_strided_slice %337 {offsets = [0, 96], sizes = [8, 32], strides = [1, 1]} : vector<8x128xf32> to vector<8x32xf32>
    %cst_136 = arith.constant 5.000000e-01 : f32
    %357 = vector.broadcast %cst_136 : f32 to vector<8x32xf32>
    %358 = arith.mulf %357, %356 : vector<8x32xf32>
    %359 = math.tanh %358 : vector<8x32xf32>
    %cst_137 = arith.constant 5.000000e-01 : f32
    %360 = vector.broadcast %cst_137 : f32 to vector<8x32xf32>
    %361 = arith.mulf %360, %359 : vector<8x32xf32>
    %cst_138 = arith.constant 5.000000e-01 : f32
    %362 = vector.broadcast %cst_138 : f32 to vector<8x32xf32>
    %363 = arith.addf %361, %362 : vector<8x32xf32>
    %364 = arith.mulf %353, %285 : vector<8x32xf32>
    %365 = arith.mulf %345, %355 : vector<8x32xf32>
    %366 = arith.addf %364, %365 : vector<8x32xf32>
    %367 = math.tanh %366 : vector<8x32xf32>
    %368 = arith.mulf %363, %367 : vector<8x32xf32>
    %369 = arith.index_cast %c4_i32 : i32 to index
    %c0_139 = arith.constant 0 : index
    %c0_140 = arith.constant 0 : index
    %370 = vector.load %arg5[%369, %c0_139, %c0_140] : memref<8x8x32xf32, #tpu.memory_space<vmem>>, vector<1x8x32xf32>
    %371 = vector.shape_cast %370 : vector<1x8x32xf32> to vector<8x32xf32>
    %372 = vector.shape_cast %368 : vector<8x32xf32> to vector<1x8x32xf32>
    tpu.vector_store %arg5[%369, %c0_139, %c0_140], %372 {strides = array<i32>} : memref<8x8x32xf32, #tpu.memory_space<vmem>>, vector<1x8x32xf32>,
    %c7_i32_141 = arith.constant 7 : i32
    %373 = arith.subi %c7_i32_141, %c4_i32 : i32
    %374 = arith.index_cast %373 : i32 to index
    %c0_142 = arith.constant 0 : index
    %c0_143 = arith.constant 0 : index
    %375 = vector.load %arg2[%374, %c0_142, %c0_143] : memref<8x8x128xf32, #tpu.memory_space<vmem>>, vector<1x8x128xf32>
    %376 = vector.shape_cast %375 : vector<1x8x128xf32> to vector<8x128xf32>
    %cst_144 = arith.constant dense<0.000000e+00> : vector<8x128xf32>
    %377 = tpu.matmul %328, %4, %cst_144 {dimension_numbers = #tpu.dot_dimension_numbers<[1], [0], [0], [1], [0, 0, 1, 1], [], []>} : vector<8x32xf32>, vector<32x128xf32>, vector<8x128xf32> -> vector<8x128xf32>
    %378 = arith.addf %376, %377 : vector<8x128xf32>
    %379 = vector.extract_strided_slice %378 {offsets = [0, 0], sizes = [8, 32], strides = [1, 1]} : vector<8x128xf32> to vector<8x32xf32>
    %cst_145 = arith.constant 5.000000e-01 : f32
    %380 = vector.broadcast %cst_145 : f32 to vector<8x32xf32>
    %381 = arith.mulf %380, %379 : vector<8x32xf32>
    %382 = math.tanh %381 : vector<8x32xf32>
    %cst_146 = arith.constant 5.000000e-01 : f32
    %383 = vector.broadcast %cst_146 : f32 to vector<8x32xf32>
    %384 = arith.mulf %383, %382 : vector<8x32xf32>
    %cst_147 = arith.constant 5.000000e-01 : f32
    %385 = vector.broadcast %cst_147 : f32 to vector<8x32xf32>
    %386 = arith.addf %384, %385 : vector<8x32xf32>
    %387 = vector.extract_strided_slice %378 {offsets = [0, 32], sizes = [8, 32], strides = [1, 1]} : vector<8x128xf32> to vector<8x32xf32>
    %cst_148 = arith.constant 5.000000e-01 : f32
    %388 = vector.broadcast %cst_148 : f32 to vector<8x32xf32>
    %389 = arith.mulf %388, %387 : vector<8x32xf32>
    %390 = math.tanh %389 : vector<8x32xf32>
    %cst_149 = arith.constant 5.000000e-01 : f32
    %391 = vector.broadcast %cst_149 : f32 to vector<8x32xf32>
    %392 = arith.mulf %391, %390 : vector<8x32xf32>
    %cst_150 = arith.constant 5.000000e-01 : f32
    %393 = vector.broadcast %cst_150 : f32 to vector<8x32xf32>
    %394 = arith.addf %392, %393 : vector<8x32xf32>
    %395 = vector.extract_strided_slice %378 {offsets = [0, 64], sizes = [8, 32], strides = [1, 1]} : vector<8x128xf32> to vector<8x32xf32>
    %396 = math.tanh %395 : vector<8x32xf32>
    %397 = vector.extract_strided_slice %378 {offsets = [0, 96], sizes = [8, 32], strides = [1, 1]} : vector<8x128xf32> to vector<8x32xf32>
    %cst_151 = arith.constant 5.000000e-01 : f32
    %398 = vector.broadcast %cst_151 : f32 to vector<8x32xf32>
    %399 = arith.mulf %398, %397 : vector<8x32xf32>
    %400 = math.tanh %399 : vector<8x32xf32>
    %cst_152 = arith.constant 5.000000e-01 : f32
    %401 = vector.broadcast %cst_152 : f32 to vector<8x32xf32>
    %402 = arith.mulf %401, %400 : vector<8x32xf32>
    %cst_153 = arith.constant 5.000000e-01 : f32
    %403 = vector.broadcast %cst_153 : f32 to vector<8x32xf32>
    %404 = arith.addf %402, %403 : vector<8x32xf32>
    %405 = arith.mulf %394, %326 : vector<8x32xf32>
    %406 = arith.mulf %386, %396 : vector<8x32xf32>
    %407 = arith.addf %405, %406 : vector<8x32xf32>
    %408 = math.tanh %407 : vector<8x32xf32>
    %409 = arith.mulf %404, %408 : vector<8x32xf32>
    %410 = arith.index_cast %373 : i32 to index
    %c0_154 = arith.constant 0 : index
    %c0_155 = arith.constant 0 : index
    %411 = vector.load %arg6[%410, %c0_154, %c0_155] : memref<8x8x32xf32, #tpu.memory_space<vmem>>, vector<1x8x32xf32>
    %412 = vector.shape_cast %411 : vector<1x8x32xf32> to vector<8x32xf32>
    %413 = vector.shape_cast %409 : vector<8x32xf32> to vector<1x8x32xf32>
    tpu.vector_store %arg6[%410, %c0_154, %c0_155], %413 {strides = array<i32>} : memref<8x8x32xf32, #tpu.memory_space<vmem>>, vector<1x8x32xf32>,
    %c5_i32 = arith.constant 5 : i32
    %414 = arith.index_cast %c5_i32 : i32 to index
    %c0_156 = arith.constant 0 : index
    %c0_157 = arith.constant 0 : index
    %415 = vector.load %arg1[%414, %c0_156, %c0_157] : memref<8x8x128xf32, #tpu.memory_space<vmem>>, vector<1x8x128xf32>
    %416 = vector.shape_cast %415 : vector<1x8x128xf32> to vector<8x128xf32>
    %cst_158 = arith.constant dense<0.000000e+00> : vector<8x128xf32>
    %417 = tpu.matmul %368, %3, %cst_158 {dimension_numbers = #tpu.dot_dimension_numbers<[1], [0], [0], [1], [0, 0, 1, 1], [], []>} : vector<8x32xf32>, vector<32x128xf32>, vector<8x128xf32> -> vector<8x128xf32>
    %418 = arith.addf %416, %417 : vector<8x128xf32>
    %419 = vector.extract_strided_slice %418 {offsets = [0, 0], sizes = [8, 32], strides = [1, 1]} : vector<8x128xf32> to vector<8x32xf32>
    %cst_159 = arith.constant 5.000000e-01 : f32
    %420 = vector.broadcast %cst_159 : f32 to vector<8x32xf32>
    %421 = arith.mulf %420, %419 : vector<8x32xf32>
    %422 = math.tanh %421 : vector<8x32xf32>
    %cst_160 = arith.constant 5.000000e-01 : f32
    %423 = vector.broadcast %cst_160 : f32 to vector<8x32xf32>
    %424 = arith.mulf %423, %422 : vector<8x32xf32>
    %cst_161 = arith.constant 5.000000e-01 : f32
    %425 = vector.broadcast %cst_161 : f32 to vector<8x32xf32>
    %426 = arith.addf %424, %425 : vector<8x32xf32>
    %427 = vector.extract_strided_slice %418 {offsets = [0, 32], sizes = [8, 32], strides = [1, 1]} : vector<8x128xf32> to vector<8x32xf32>
    %cst_162 = arith.constant 5.000000e-01 : f32
    %428 = vector.broadcast %cst_162 : f32 to vector<8x32xf32>
    %429 = arith.mulf %428, %427 : vector<8x32xf32>
    %430 = math.tanh %429 : vector<8x32xf32>
    %cst_163 = arith.constant 5.000000e-01 : f32
    %431 = vector.broadcast %cst_163 : f32 to vector<8x32xf32>
    %432 = arith.mulf %431, %430 : vector<8x32xf32>
    %cst_164 = arith.constant 5.000000e-01 : f32
    %433 = vector.broadcast %cst_164 : f32 to vector<8x32xf32>
    %434 = arith.addf %432, %433 : vector<8x32xf32>
    %435 = vector.extract_strided_slice %418 {offsets = [0, 64], sizes = [8, 32], strides = [1, 1]} : vector<8x128xf32> to vector<8x32xf32>
    %436 = math.tanh %435 : vector<8x32xf32>
    %437 = vector.extract_strided_slice %418 {offsets = [0, 96], sizes = [8, 32], strides = [1, 1]} : vector<8x128xf32> to vector<8x32xf32>
    %cst_165 = arith.constant 5.000000e-01 : f32
    %438 = vector.broadcast %cst_165 : f32 to vector<8x32xf32>
    %439 = arith.mulf %438, %437 : vector<8x32xf32>
    %440 = math.tanh %439 : vector<8x32xf32>
    %cst_166 = arith.constant 5.000000e-01 : f32
    %441 = vector.broadcast %cst_166 : f32 to vector<8x32xf32>
    %442 = arith.mulf %441, %440 : vector<8x32xf32>
    %cst_167 = arith.constant 5.000000e-01 : f32
    %443 = vector.broadcast %cst_167 : f32 to vector<8x32xf32>
    %444 = arith.addf %442, %443 : vector<8x32xf32>
    %445 = arith.mulf %434, %366 : vector<8x32xf32>
    %446 = arith.mulf %426, %436 : vector<8x32xf32>
    %447 = arith.addf %445, %446 : vector<8x32xf32>
    %448 = math.tanh %447 : vector<8x32xf32>
    %449 = arith.mulf %444, %448 : vector<8x32xf32>
    %450 = arith.index_cast %c5_i32 : i32 to index
    %c0_168 = arith.constant 0 : index
    %c0_169 = arith.constant 0 : index
    %451 = vector.load %arg5[%450, %c0_168, %c0_169] : memref<8x8x32xf32, #tpu.memory_space<vmem>>, vector<1x8x32xf32>
    %452 = vector.shape_cast %451 : vector<1x8x32xf32> to vector<8x32xf32>
    %453 = vector.shape_cast %449 : vector<8x32xf32> to vector<1x8x32xf32>
    tpu.vector_store %arg5[%450, %c0_168, %c0_169], %453 {strides = array<i32>} : memref<8x8x32xf32, #tpu.memory_space<vmem>>, vector<1x8x32xf32>,
    %c7_i32_170 = arith.constant 7 : i32
    %454 = arith.subi %c7_i32_170, %c5_i32 : i32
    %455 = arith.index_cast %454 : i32 to index
    %c0_171 = arith.constant 0 : index
    %c0_172 = arith.constant 0 : index
    %456 = vector.load %arg2[%455, %c0_171, %c0_172] : memref<8x8x128xf32, #tpu.memory_space<vmem>>, vector<1x8x128xf32>
    %457 = vector.shape_cast %456 : vector<1x8x128xf32> to vector<8x128xf32>
    %cst_173 = arith.constant dense<0.000000e+00> : vector<8x128xf32>
    %458 = tpu.matmul %409, %4, %cst_173 {dimension_numbers = #tpu.dot_dimension_numbers<[1], [0], [0], [1], [0, 0, 1, 1], [], []>} : vector<8x32xf32>, vector<32x128xf32>, vector<8x128xf32> -> vector<8x128xf32>
    %459 = arith.addf %457, %458 : vector<8x128xf32>
    %460 = vector.extract_strided_slice %459 {offsets = [0, 0], sizes = [8, 32], strides = [1, 1]} : vector<8x128xf32> to vector<8x32xf32>
    %cst_174 = arith.constant 5.000000e-01 : f32
    %461 = vector.broadcast %cst_174 : f32 to vector<8x32xf32>
    %462 = arith.mulf %461, %460 : vector<8x32xf32>
    %463 = math.tanh %462 : vector<8x32xf32>
    %cst_175 = arith.constant 5.000000e-01 : f32
    %464 = vector.broadcast %cst_175 : f32 to vector<8x32xf32>
    %465 = arith.mulf %464, %463 : vector<8x32xf32>
    %cst_176 = arith.constant 5.000000e-01 : f32
    %466 = vector.broadcast %cst_176 : f32 to vector<8x32xf32>
    %467 = arith.addf %465, %466 : vector<8x32xf32>
    %468 = vector.extract_strided_slice %459 {offsets = [0, 32], sizes = [8, 32], strides = [1, 1]} : vector<8x128xf32> to vector<8x32xf32>
    %cst_177 = arith.constant 5.000000e-01 : f32
    %469 = vector.broadcast %cst_177 : f32 to vector<8x32xf32>
    %470 = arith.mulf %469, %468 : vector<8x32xf32>
    %471 = math.tanh %470 : vector<8x32xf32>
    %cst_178 = arith.constant 5.000000e-01 : f32
    %472 = vector.broadcast %cst_178 : f32 to vector<8x32xf32>
    %473 = arith.mulf %472, %471 : vector<8x32xf32>
    %cst_179 = arith.constant 5.000000e-01 : f32
    %474 = vector.broadcast %cst_179 : f32 to vector<8x32xf32>
    %475 = arith.addf %473, %474 : vector<8x32xf32>
    %476 = vector.extract_strided_slice %459 {offsets = [0, 64], sizes = [8, 32], strides = [1, 1]} : vector<8x128xf32> to vector<8x32xf32>
    %477 = math.tanh %476 : vector<8x32xf32>
    %478 = vector.extract_strided_slice %459 {offsets = [0, 96], sizes = [8, 32], strides = [1, 1]} : vector<8x128xf32> to vector<8x32xf32>
    %cst_180 = arith.constant 5.000000e-01 : f32
    %479 = vector.broadcast %cst_180 : f32 to vector<8x32xf32>
    %480 = arith.mulf %479, %478 : vector<8x32xf32>
    %481 = math.tanh %480 : vector<8x32xf32>
    %cst_181 = arith.constant 5.000000e-01 : f32
    %482 = vector.broadcast %cst_181 : f32 to vector<8x32xf32>
    %483 = arith.mulf %482, %481 : vector<8x32xf32>
    %cst_182 = arith.constant 5.000000e-01 : f32
    %484 = vector.broadcast %cst_182 : f32 to vector<8x32xf32>
    %485 = arith.addf %483, %484 : vector<8x32xf32>
    %486 = arith.mulf %475, %407 : vector<8x32xf32>
    %487 = arith.mulf %467, %477 : vector<8x32xf32>
    %488 = arith.addf %486, %487 : vector<8x32xf32>
    %489 = math.tanh %488 : vector<8x32xf32>
    %490 = arith.mulf %485, %489 : vector<8x32xf32>
    %491 = arith.index_cast %454 : i32 to index
    %c0_183 = arith.constant 0 : index
    %c0_184 = arith.constant 0 : index
    %492 = vector.load %arg6[%491, %c0_183, %c0_184] : memref<8x8x32xf32, #tpu.memory_space<vmem>>, vector<1x8x32xf32>
    %493 = vector.shape_cast %492 : vector<1x8x32xf32> to vector<8x32xf32>
    %494 = vector.shape_cast %490 : vector<8x32xf32> to vector<1x8x32xf32>
    tpu.vector_store %arg6[%491, %c0_183, %c0_184], %494 {strides = array<i32>} : memref<8x8x32xf32, #tpu.memory_space<vmem>>, vector<1x8x32xf32>,
    %c6_i32 = arith.constant 6 : i32
    %495 = arith.index_cast %c6_i32 : i32 to index
    %c0_185 = arith.constant 0 : index
    %c0_186 = arith.constant 0 : index
    %496 = vector.load %arg1[%495, %c0_185, %c0_186] : memref<8x8x128xf32, #tpu.memory_space<vmem>>, vector<1x8x128xf32>
    %497 = vector.shape_cast %496 : vector<1x8x128xf32> to vector<8x128xf32>
    %cst_187 = arith.constant dense<0.000000e+00> : vector<8x128xf32>
    %498 = tpu.matmul %449, %3, %cst_187 {dimension_numbers = #tpu.dot_dimension_numbers<[1], [0], [0], [1], [0, 0, 1, 1], [], []>} : vector<8x32xf32>, vector<32x128xf32>, vector<8x128xf32> -> vector<8x128xf32>
    %499 = arith.addf %497, %498 : vector<8x128xf32>
    %500 = vector.extract_strided_slice %499 {offsets = [0, 0], sizes = [8, 32], strides = [1, 1]} : vector<8x128xf32> to vector<8x32xf32>
    %cst_188 = arith.constant 5.000000e-01 : f32
    %501 = vector.broadcast %cst_188 : f32 to vector<8x32xf32>
    %502 = arith.mulf %501, %500 : vector<8x32xf32>
    %503 = math.tanh %502 : vector<8x32xf32>
    %cst_189 = arith.constant 5.000000e-01 : f32
    %504 = vector.broadcast %cst_189 : f32 to vector<8x32xf32>
    %505 = arith.mulf %504, %503 : vector<8x32xf32>
    %cst_190 = arith.constant 5.000000e-01 : f32
    %506 = vector.broadcast %cst_190 : f32 to vector<8x32xf32>
    %507 = arith.addf %505, %506 : vector<8x32xf32>
    %508 = vector.extract_strided_slice %499 {offsets = [0, 32], sizes = [8, 32], strides = [1, 1]} : vector<8x128xf32> to vector<8x32xf32>
    %cst_191 = arith.constant 5.000000e-01 : f32
    %509 = vector.broadcast %cst_191 : f32 to vector<8x32xf32>
    %510 = arith.mulf %509, %508 : vector<8x32xf32>
    %511 = math.tanh %510 : vector<8x32xf32>
    %cst_192 = arith.constant 5.000000e-01 : f32
    %512 = vector.broadcast %cst_192 : f32 to vector<8x32xf32>
    %513 = arith.mulf %512, %511 : vector<8x32xf32>
    %cst_193 = arith.constant 5.000000e-01 : f32
    %514 = vector.broadcast %cst_193 : f32 to vector<8x32xf32>
    %515 = arith.addf %513, %514 : vector<8x32xf32>
    %516 = vector.extract_strided_slice %499 {offsets = [0, 64], sizes = [8, 32], strides = [1, 1]} : vector<8x128xf32> to vector<8x32xf32>
    %517 = math.tanh %516 : vector<8x32xf32>
    %518 = vector.extract_strided_slice %499 {offsets = [0, 96], sizes = [8, 32], strides = [1, 1]} : vector<8x128xf32> to vector<8x32xf32>
    %cst_194 = arith.constant 5.000000e-01 : f32
    %519 = vector.broadcast %cst_194 : f32 to vector<8x32xf32>
    %520 = arith.mulf %519, %518 : vector<8x32xf32>
    %521 = math.tanh %520 : vector<8x32xf32>
    %cst_195 = arith.constant 5.000000e-01 : f32
    %522 = vector.broadcast %cst_195 : f32 to vector<8x32xf32>
    %523 = arith.mulf %522, %521 : vector<8x32xf32>
    %cst_196 = arith.constant 5.000000e-01 : f32
    %524 = vector.broadcast %cst_196 : f32 to vector<8x32xf32>
    %525 = arith.addf %523, %524 : vector<8x32xf32>
    %526 = arith.mulf %515, %447 : vector<8x32xf32>
    %527 = arith.mulf %507, %517 : vector<8x32xf32>
    %528 = arith.addf %526, %527 : vector<8x32xf32>
    %529 = math.tanh %528 : vector<8x32xf32>
    %530 = arith.mulf %525, %529 : vector<8x32xf32>
    %531 = arith.index_cast %c6_i32 : i32 to index
    %c0_197 = arith.constant 0 : index
    %c0_198 = arith.constant 0 : index
    %532 = vector.load %arg5[%531, %c0_197, %c0_198] : memref<8x8x32xf32, #tpu.memory_space<vmem>>, vector<1x8x32xf32>
    %533 = vector.shape_cast %532 : vector<1x8x32xf32> to vector<8x32xf32>
    %534 = vector.shape_cast %530 : vector<8x32xf32> to vector<1x8x32xf32>
    tpu.vector_store %arg5[%531, %c0_197, %c0_198], %534 {strides = array<i32>} : memref<8x8x32xf32, #tpu.memory_space<vmem>>, vector<1x8x32xf32>,
    %c7_i32_199 = arith.constant 7 : i32
    %535 = arith.subi %c7_i32_199, %c6_i32 : i32
    %536 = arith.index_cast %535 : i32 to index
    %c0_200 = arith.constant 0 : index
    %c0_201 = arith.constant 0 : index
    %537 = vector.load %arg2[%536, %c0_200, %c0_201] : memref<8x8x128xf32, #tpu.memory_space<vmem>>, vector<1x8x128xf32>
    %538 = vector.shape_cast %537 : vector<1x8x128xf32> to vector<8x128xf32>
    %cst_202 = arith.constant dense<0.000000e+00> : vector<8x128xf32>
    %539 = tpu.matmul %490, %4, %cst_202 {dimension_numbers = #tpu.dot_dimension_numbers<[1], [0], [0], [1], [0, 0, 1, 1], [], []>} : vector<8x32xf32>, vector<32x128xf32>, vector<8x128xf32> -> vector<8x128xf32>
    %540 = arith.addf %538, %539 : vector<8x128xf32>
    %541 = vector.extract_strided_slice %540 {offsets = [0, 0], sizes = [8, 32], strides = [1, 1]} : vector<8x128xf32> to vector<8x32xf32>
    %cst_203 = arith.constant 5.000000e-01 : f32
    %542 = vector.broadcast %cst_203 : f32 to vector<8x32xf32>
    %543 = arith.mulf %542, %541 : vector<8x32xf32>
    %544 = math.tanh %543 : vector<8x32xf32>
    %cst_204 = arith.constant 5.000000e-01 : f32
    %545 = vector.broadcast %cst_204 : f32 to vector<8x32xf32>
    %546 = arith.mulf %545, %544 : vector<8x32xf32>
    %cst_205 = arith.constant 5.000000e-01 : f32
    %547 = vector.broadcast %cst_205 : f32 to vector<8x32xf32>
    %548 = arith.addf %546, %547 : vector<8x32xf32>
    %549 = vector.extract_strided_slice %540 {offsets = [0, 32], sizes = [8, 32], strides = [1, 1]} : vector<8x128xf32> to vector<8x32xf32>
    %cst_206 = arith.constant 5.000000e-01 : f32
    %550 = vector.broadcast %cst_206 : f32 to vector<8x32xf32>
    %551 = arith.mulf %550, %549 : vector<8x32xf32>
    %552 = math.tanh %551 : vector<8x32xf32>
    %cst_207 = arith.constant 5.000000e-01 : f32
    %553 = vector.broadcast %cst_207 : f32 to vector<8x32xf32>
    %554 = arith.mulf %553, %552 : vector<8x32xf32>
    %cst_208 = arith.constant 5.000000e-01 : f32
    %555 = vector.broadcast %cst_208 : f32 to vector<8x32xf32>
    %556 = arith.addf %554, %555 : vector<8x32xf32>
    %557 = vector.extract_strided_slice %540 {offsets = [0, 64], sizes = [8, 32], strides = [1, 1]} : vector<8x128xf32> to vector<8x32xf32>
    %558 = math.tanh %557 : vector<8x32xf32>
    %559 = vector.extract_strided_slice %540 {offsets = [0, 96], sizes = [8, 32], strides = [1, 1]} : vector<8x128xf32> to vector<8x32xf32>
    %cst_209 = arith.constant 5.000000e-01 : f32
    %560 = vector.broadcast %cst_209 : f32 to vector<8x32xf32>
    %561 = arith.mulf %560, %559 : vector<8x32xf32>
    %562 = math.tanh %561 : vector<8x32xf32>
    %cst_210 = arith.constant 5.000000e-01 : f32
    %563 = vector.broadcast %cst_210 : f32 to vector<8x32xf32>
    %564 = arith.mulf %563, %562 : vector<8x32xf32>
    %cst_211 = arith.constant 5.000000e-01 : f32
    %565 = vector.broadcast %cst_211 : f32 to vector<8x32xf32>
    %566 = arith.addf %564, %565 : vector<8x32xf32>
    %567 = arith.mulf %556, %488 : vector<8x32xf32>
    %568 = arith.mulf %548, %558 : vector<8x32xf32>
    %569 = arith.addf %567, %568 : vector<8x32xf32>
    %570 = math.tanh %569 : vector<8x32xf32>
    %571 = arith.mulf %566, %570 : vector<8x32xf32>
    %572 = arith.index_cast %535 : i32 to index
    %c0_212 = arith.constant 0 : index
    %c0_213 = arith.constant 0 : index
    %573 = vector.load %arg6[%572, %c0_212, %c0_213] : memref<8x8x32xf32, #tpu.memory_space<vmem>>, vector<1x8x32xf32>
    %574 = vector.shape_cast %573 : vector<1x8x32xf32> to vector<8x32xf32>
    %575 = vector.shape_cast %571 : vector<8x32xf32> to vector<1x8x32xf32>
    tpu.vector_store %arg6[%572, %c0_212, %c0_213], %575 {strides = array<i32>} : memref<8x8x32xf32, #tpu.memory_space<vmem>>, vector<1x8x32xf32>,
    %c7_i32_214 = arith.constant 7 : i32
    %576 = arith.index_cast %c7_i32_214 : i32 to index
    %c0_215 = arith.constant 0 : index
    %c0_216 = arith.constant 0 : index
    %577 = vector.load %arg1[%576, %c0_215, %c0_216] : memref<8x8x128xf32, #tpu.memory_space<vmem>>, vector<1x8x128xf32>
    %578 = vector.shape_cast %577 : vector<1x8x128xf32> to vector<8x128xf32>
    %cst_217 = arith.constant dense<0.000000e+00> : vector<8x128xf32>
    %579 = tpu.matmul %530, %3, %cst_217 {dimension_numbers = #tpu.dot_dimension_numbers<[1], [0], [0], [1], [0, 0, 1, 1], [], []>} : vector<8x32xf32>, vector<32x128xf32>, vector<8x128xf32> -> vector<8x128xf32>
    %580 = arith.addf %578, %579 : vector<8x128xf32>
    %581 = vector.extract_strided_slice %580 {offsets = [0, 0], sizes = [8, 32], strides = [1, 1]} : vector<8x128xf32> to vector<8x32xf32>
    %cst_218 = arith.constant 5.000000e-01 : f32
    %582 = vector.broadcast %cst_218 : f32 to vector<8x32xf32>
    %583 = arith.mulf %582, %581 : vector<8x32xf32>
    %584 = math.tanh %583 : vector<8x32xf32>
    %cst_219 = arith.constant 5.000000e-01 : f32
    %585 = vector.broadcast %cst_219 : f32 to vector<8x32xf32>
    %586 = arith.mulf %585, %584 : vector<8x32xf32>
    %cst_220 = arith.constant 5.000000e-01 : f32
    %587 = vector.broadcast %cst_220 : f32 to vector<8x32xf32>
    %588 = arith.addf %586, %587 : vector<8x32xf32>
    %589 = vector.extract_strided_slice %580 {offsets = [0, 32], sizes = [8, 32], strides = [1, 1]} : vector<8x128xf32> to vector<8x32xf32>
    %cst_221 = arith.constant 5.000000e-01 : f32
    %590 = vector.broadcast %cst_221 : f32 to vector<8x32xf32>
    %591 = arith.mulf %590, %589 : vector<8x32xf32>
    %592 = math.tanh %591 : vector<8x32xf32>
    %cst_222 = arith.constant 5.000000e-01 : f32
    %593 = vector.broadcast %cst_222 : f32 to vector<8x32xf32>
    %594 = arith.mulf %593, %592 : vector<8x32xf32>
    %cst_223 = arith.constant 5.000000e-01 : f32
    %595 = vector.broadcast %cst_223 : f32 to vector<8x32xf32>
    %596 = arith.addf %594, %595 : vector<8x32xf32>
    %597 = vector.extract_strided_slice %580 {offsets = [0, 64], sizes = [8, 32], strides = [1, 1]} : vector<8x128xf32> to vector<8x32xf32>
    %598 = math.tanh %597 : vector<8x32xf32>
    %599 = vector.extract_strided_slice %580 {offsets = [0, 96], sizes = [8, 32], strides = [1, 1]} : vector<8x128xf32> to vector<8x32xf32>
    %cst_224 = arith.constant 5.000000e-01 : f32
    %600 = vector.broadcast %cst_224 : f32 to vector<8x32xf32>
    %601 = arith.mulf %600, %599 : vector<8x32xf32>
    %602 = math.tanh %601 : vector<8x32xf32>
    %cst_225 = arith.constant 5.000000e-01 : f32
    %603 = vector.broadcast %cst_225 : f32 to vector<8x32xf32>
    %604 = arith.mulf %603, %602 : vector<8x32xf32>
    %cst_226 = arith.constant 5.000000e-01 : f32
    %605 = vector.broadcast %cst_226 : f32 to vector<8x32xf32>
    %606 = arith.addf %604, %605 : vector<8x32xf32>
    %607 = arith.mulf %596, %528 : vector<8x32xf32>
    %608 = arith.mulf %588, %598 : vector<8x32xf32>
    %609 = arith.addf %607, %608 : vector<8x32xf32>
    %610 = math.tanh %609 : vector<8x32xf32>
    %611 = arith.mulf %606, %610 : vector<8x32xf32>
    %612 = arith.index_cast %c7_i32_214 : i32 to index
    %c0_227 = arith.constant 0 : index
    %c0_228 = arith.constant 0 : index
    %613 = vector.load %arg5[%612, %c0_227, %c0_228] : memref<8x8x32xf32, #tpu.memory_space<vmem>>, vector<1x8x32xf32>
    %614 = vector.shape_cast %613 : vector<1x8x32xf32> to vector<8x32xf32>
    %615 = vector.shape_cast %611 : vector<8x32xf32> to vector<1x8x32xf32>
    tpu.vector_store %arg5[%612, %c0_227, %c0_228], %615 {strides = array<i32>} : memref<8x8x32xf32, #tpu.memory_space<vmem>>, vector<1x8x32xf32>,
    %c7_i32_229 = arith.constant 7 : i32
    %616 = arith.subi %c7_i32_229, %c7_i32_214 : i32
    %617 = arith.index_cast %616 : i32 to index
    %c0_230 = arith.constant 0 : index
    %c0_231 = arith.constant 0 : index
    %618 = vector.load %arg2[%617, %c0_230, %c0_231] : memref<8x8x128xf32, #tpu.memory_space<vmem>>, vector<1x8x128xf32>
    %619 = vector.shape_cast %618 : vector<1x8x128xf32> to vector<8x128xf32>
    %cst_232 = arith.constant dense<0.000000e+00> : vector<8x128xf32>
    %620 = tpu.matmul %571, %4, %cst_232 {dimension_numbers = #tpu.dot_dimension_numbers<[1], [0], [0], [1], [0, 0, 1, 1], [], []>} : vector<8x32xf32>, vector<32x128xf32>, vector<8x128xf32> -> vector<8x128xf32>
    %621 = arith.addf %619, %620 : vector<8x128xf32>
    %622 = vector.extract_strided_slice %621 {offsets = [0, 0], sizes = [8, 32], strides = [1, 1]} : vector<8x128xf32> to vector<8x32xf32>
    %cst_233 = arith.constant 5.000000e-01 : f32
    %623 = vector.broadcast %cst_233 : f32 to vector<8x32xf32>
    %624 = arith.mulf %623, %622 : vector<8x32xf32>
    %625 = math.tanh %624 : vector<8x32xf32>
    %cst_234 = arith.constant 5.000000e-01 : f32
    %626 = vector.broadcast %cst_234 : f32 to vector<8x32xf32>
    %627 = arith.mulf %626, %625 : vector<8x32xf32>
    %cst_235 = arith.constant 5.000000e-01 : f32
    %628 = vector.broadcast %cst_235 : f32 to vector<8x32xf32>
    %629 = arith.addf %627, %628 : vector<8x32xf32>
    %630 = vector.extract_strided_slice %621 {offsets = [0, 32], sizes = [8, 32], strides = [1, 1]} : vector<8x128xf32> to vector<8x32xf32>
    %cst_236 = arith.constant 5.000000e-01 : f32
    %631 = vector.broadcast %cst_236 : f32 to vector<8x32xf32>
    %632 = arith.mulf %631, %630 : vector<8x32xf32>
    %633 = math.tanh %632 : vector<8x32xf32>
    %cst_237 = arith.constant 5.000000e-01 : f32
    %634 = vector.broadcast %cst_237 : f32 to vector<8x32xf32>
    %635 = arith.mulf %634, %633 : vector<8x32xf32>
    %cst_238 = arith.constant 5.000000e-01 : f32
    %636 = vector.broadcast %cst_238 : f32 to vector<8x32xf32>
    %637 = arith.addf %635, %636 : vector<8x32xf32>
    %638 = vector.extract_strided_slice %621 {offsets = [0, 64], sizes = [8, 32], strides = [1, 1]} : vector<8x128xf32> to vector<8x32xf32>
    %639 = math.tanh %638 : vector<8x32xf32>
    %640 = vector.extract_strided_slice %621 {offsets = [0, 96], sizes = [8, 32], strides = [1, 1]} : vector<8x128xf32> to vector<8x32xf32>
    %cst_239 = arith.constant 5.000000e-01 : f32
    %641 = vector.broadcast %cst_239 : f32 to vector<8x32xf32>
    %642 = arith.mulf %641, %640 : vector<8x32xf32>
    %643 = math.tanh %642 : vector<8x32xf32>
    %cst_240 = arith.constant 5.000000e-01 : f32
    %644 = vector.broadcast %cst_240 : f32 to vector<8x32xf32>
    %645 = arith.mulf %644, %643 : vector<8x32xf32>
    %cst_241 = arith.constant 5.000000e-01 : f32
    %646 = vector.broadcast %cst_241 : f32 to vector<8x32xf32>
    %647 = arith.addf %645, %646 : vector<8x32xf32>
    %648 = arith.mulf %637, %569 : vector<8x32xf32>
    %649 = arith.mulf %629, %639 : vector<8x32xf32>
    %650 = arith.addf %648, %649 : vector<8x32xf32>
    %651 = math.tanh %650 : vector<8x32xf32>
    %652 = arith.mulf %647, %651 : vector<8x32xf32>
    %653 = arith.index_cast %616 : i32 to index
    %c0_242 = arith.constant 0 : index
    %c0_243 = arith.constant 0 : index
    %654 = vector.load %arg6[%653, %c0_242, %c0_243] : memref<8x8x32xf32, #tpu.memory_space<vmem>>, vector<1x8x32xf32>
    %655 = vector.shape_cast %654 : vector<1x8x32xf32> to vector<8x32xf32>
    %656 = vector.shape_cast %652 : vector<8x32xf32> to vector<1x8x32xf32>
    tpu.vector_store %arg6[%653, %c0_242, %c0_243], %656 {strides = array<i32>} : memref<8x8x32xf32, #tpu.memory_space<vmem>>, vector<1x8x32xf32>,
    %c8_i32 = arith.constant 8 : i32
    %c0_244 = arith.constant 0 : index
    %c0_245 = arith.constant 0 : index
    %657 = vector.load %arg8[%c0_244, %c0_245] : memref<8x32xf32, #tpu.memory_space<vmem>>, vector<8x32xf32>
    tpu.vector_store %arg8[%c0_244, %c0_245], %611 {strides = array<i32>} : memref<8x32xf32, #tpu.memory_space<vmem>>, vector<8x32xf32>,
    %c0_246 = arith.constant 0 : index
    %c0_247 = arith.constant 0 : index
    %658 = vector.load %arg9[%c0_246, %c0_247] : memref<8x32xf32, #tpu.memory_space<vmem>>, vector<8x32xf32>
    tpu.vector_store %arg9[%c0_246, %c0_247], %609 {strides = array<i32>} : memref<8x32xf32, #tpu.memory_space<vmem>>, vector<8x32xf32>,
    %c0_248 = arith.constant 0 : index
    %c0_249 = arith.constant 0 : index
    %659 = vector.load %arg10[%c0_248, %c0_249] : memref<8x32xf32, #tpu.memory_space<vmem>>, vector<8x32xf32>
    tpu.vector_store %arg10[%c0_248, %c0_249], %652 {strides = array<i32>} : memref<8x32xf32, #tpu.memory_space<vmem>>, vector<8x32xf32>,
    %c0_250 = arith.constant 0 : index
    %c0_251 = arith.constant 0 : index
    %660 = vector.load %arg11[%c0_250, %c0_251] : memref<8x32xf32, #tpu.memory_space<vmem>>, vector<8x32xf32>
    tpu.vector_store %arg11[%c0_250, %c0_251], %650 {strides = array<i32>} : memref<8x32xf32, #tpu.memory_space<vmem>>, vector<8x32xf32>,
    %c0_i32_252 = arith.constant 0 : i32
    %661 = arith.cmpi eq, %arg0, %c0_i32_252 : i32
    %662 = arith.extui %661 : i1 to i32
    %c0_i32_253 = arith.constant 0 : i32
    %663 = arith.cmpi ne, %662, %c0_i32_253 : i32
    scf.if %663 {
      %664 = tpu.concatenate %611, %652 in 1 : vector<8x32xf32>, vector<8x32xf32> -> vector<8x64xf32>
      %c0_254 = arith.constant 0 : index
      %c0_255 = arith.constant 0 : index
      %665 = vector.load %arg7[%c0_254, %c0_255] : memref<8x64xf32, #tpu.memory_space<vmem>>, vector<8x64xf32>
      tpu.vector_store %arg7[%c0_254, %c0_255], %664 {strides = array<i32>} : memref<8x64xf32, #tpu.memory_space<vmem>>, vector<8x64xf32>,
    } else {
    }
    return
  }
  func.func @transform_0(%arg0: i32) -> (i32, i32, i32) {
    %c0_i32 = arith.constant 0 : i32
    %c0_i32_0 = arith.constant 0 : i32
    %c0_i32_1 = arith.constant 0 : i32
    return %arg0, %c0_i32, %c0_i32_0 : i32, i32, i32
  }
  func.func @transform_1(%arg0: i32) -> (i32, i32, i32) {
    %c0_i32 = arith.constant 0 : i32
    %0 = arith.subi %c0_i32, %arg0 : i32
    %c0_i32_0 = arith.constant 0 : i32
    %c0_i32_1 = arith.constant 0 : i32
    %c0_i32_2 = arith.constant 0 : i32
    return %0, %c0_i32_0, %c0_i32_1 : i32, i32, i32
  }
  func.func @transform_2(%arg0: i32) -> (i32, i32) {
    %c0_i32 = arith.constant 0 : i32
    %c0_i32_0 = arith.constant 0 : i32
    %c0_i32_1 = arith.constant 0 : i32
    return %c0_i32, %c0_i32_0 : i32, i32
  }
  func.func @transform_3(%arg0: i32) -> (i32, i32) {
    %c0_i32 = arith.constant 0 : i32
    %c0_i32_0 = arith.constant 0 : i32
    %c0_i32_1 = arith.constant 0 : i32
    return %c0_i32, %c0_i32_0 : i32, i32
  }
  func.func @transform_4(%arg0: i32) -> (i32, i32, i32) {
    %c0_i32 = arith.constant 0 : i32
    %c0_i32_0 = arith.constant 0 : i32
    %c0_i32_1 = arith.constant 0 : i32
    return %arg0, %c0_i32, %c0_i32_0 : i32, i32, i32
  }
  func.func @transform_5(%arg0: i32) -> (i32, i32, i32) {
    %c0_i32 = arith.constant 0 : i32
    %0 = arith.subi %c0_i32, %arg0 : i32
    %c0_i32_0 = arith.constant 0 : i32
    %c0_i32_1 = arith.constant 0 : i32
    %c0_i32_2 = arith.constant 0 : i32
    return %0, %c0_i32_0, %c0_i32_1 : i32, i32, i32
  }
  func.func @transform_6(%arg0: i32) -> (i32, i32) {
    %c0_i32 = arith.constant 0 : i32
    %c0_i32_0 = arith.constant 0 : i32
    %c0_i32_1 = arith.constant 0 : i32
    return %c0_i32, %c0_i32_0 : i32, i32
  }
}

</mosaic_0001>

<bundles_post_ra>
// kernel: encoder_for_classification_forward.3
= control target key start
LH: loop header
LB: loop body
LE: loop exit
PB: predicated region body
PF: predicated region fallthrough
CT: control target
= control target key end

     0   :  { %vm43_vm0 = vcmask 261120   ;;  %v2089_v0 = vmov 0.0   ;;  %vm2090_vm1 = vmmov 0   ;;  %s2092_s8 = smov 64   ;;  %vm1690_vm2 = vcmask 523264   ;;  %s2514_s2 = inlined_call_operand.vmem [shape: f32[32,128], index: 2, kind: input, shape index: {}]   ;;  %s2515_s3 = inlined_call_operand.vmem [shape: f32[32,128], index: 3, kind: input, shape index: {}]   ;;  %s2516_s0 = inlined_call_operand.vmem [shape: f32[8,8,128], index: 0, kind: input, shape index: {}]   ;;  %s2517_s1 = inlined_call_operand.vmem [shape: f32[8,8,128], index: 1, kind: input, shape index: {}]   ;;  %s2518_s4 = inlined_call_operand.vmem [shape: f32[8,64], index: 4, kind: output, shape index: {}]  }
   0x1   :  { %1812 = vmatprep.subr.mxu0 %v2089_v0  ;;  %v2123_v1 = vld [vmem:[%s2514_s2 + $0x18] sm:$0xff]  ;;  %1823 = vmatprep.subr.mxu1 %v2089_v0  ;;  %v2129_v2 = vld [vmem:[%s2514_s2 + $0x10] sm:$0xff]  ;;  %44 = vst.msk [vmem:[#allocation2] sm:$0xff] %vm43_vm0, %v2089_v0  ;;  %45 = vst.msk [vmem:[#allocation3] sm:$0xff] %vm43_vm0, %v2089_v0 }
   0x2   :  { %v2134_v3 = vld [vmem:[%s2515_s3 + $0x18] sm:$0xff]  ;;  %46 = vst.msk [vmem:[#allocation4] sm:$0xff] %vm43_vm0, %v2089_v0  ;;  %47 = vst.msk [vmem:[#allocation5] sm:$0xff] %vm43_vm0, %v2089_v0  ;;  %1813 = vmatpush3.msra.mxu0 %v2123_v1  ;;  %v2149_v4 = vld [vmem:[%s2515_s3 + $0x10] sm:$0xff]  ;;  %1820 = vmatprep.mubr.msk.f32.mxu0 %vm2090_vm1, %v2089_v0 }
   0x3   :  { %1824 = vmatpush3.msra.mxu1 %v2134_v3  ;;  %1814 = vmatprep.subr.mxu0 %v2089_v0  ;;  %v2156_v5 = vld [vmem:[%s2514_s2 + $0x8] sm:$0xff]  ;;  %v2170_v7 = vld [vmem:[%s2514_s2] sm:$0xff]  ;;  %s2091_s2 = smov 32   ;;  %v1703_v15 = vld [vmem:[%s2517_s1 + $0x38] sm:$0xff] }
   0x4   :  { %1825 = vmatprep.subr.mxu1 %v2089_v0  ;;  %1815 = vmatpush3.msra.mxu0 %v2129_v2  ;;  %v2163_v6 = vld [vmem:[%s2515_s3 + $0x8] sm:$0xff]  ;;  %v2178_v8 = vld [vmem:[%s2515_s3] sm:$0xff]  ;;  %v1707_v55 = vld [vmem:[%s2517_s1 + $0x30] sm:$0xff] }
   0x5   :  { %1826 = vmatpush3.msra.mxu1 %v2149_v4  ;;  %1816 = vmatprep.subr.mxu0 %v2089_v0  ;;  %v60_v13 = vld [vmem:[%s2516_s0] sm:$0xff]  ;;  %v1705_v51 = vld [vmem:[%s2516_s0 + $0x8] sm:$0xff] }
   0x6   :  { %1827 = vmatprep.subr.mxu1 %v2089_v0  ;;  %1817 = vmatpush3.msra.mxu0 %v2156_v5 }
   0x7   :  { %1818 = vmatprep.subr.mxu0 %v2089_v0  ;;  %1828 = vmatpush3.msra.mxu1 %v2163_v6 }
   0x8   :  { %1819 = vmatpush3.msra.mxu0 %v2170_v7  ;;  %v56_v9 = vld [vmem:[#allocation2] sm:$0xff]  ;;  %1829 = vmatprep.subr.mxu1 %v2089_v0  ;;  %v57_v11 = vld [vmem:[#allocation3] sm:$0xff] }
   0x9   :  { %v58_v10 = vld [vmem:[#allocation4] sm:$0xff]  ;;  %1821 = vmatmul.mubr.msk.f32.vlgmr.msra.gmra.mxu0 %vm43_vm0, %v56_v9  ;;  %1830 = vmatpush3.msra.mxu1 %v2178_v8  ;;  %v59_v12 = vld [vmem:[#allocation5] sm:$0xff] }
   0xa   :  { %1831 = vmatprep.mubr.msk.f32.mxu1 %vm2090_vm1, %v2089_v0  ;;  %142 = vrot.lane.b32.xlu1 %v57_v11, %s2091_s2 }
   0xb   :  { %1832 = vmatmul.mubr.msk.f32.vlgmr.msra.gmra.mxu1 %vm43_vm0, %v58_v10  ;;  %1834 = vmatprep.subr.mxu0 %v2089_v0 }
   0xc   :  { %1835 = vmatpush3.msra.mxu0 %v2123_v1  ;;  %1845 = vmatprep.subr.mxu1 %v2089_v0 }
   0xd   :  { %1836 = vmatprep.subr.mxu0 %v2089_v0  ;;  %1846 = vmatpush3.msra.mxu1 %v2134_v3 }
   0xe   :  { %244 = vrot.lane.b32.xlu1 %v59_v12, %s2091_s2  ;;  %1837 = vmatpush3.msra.mxu0 %v2129_v2 }
   0xf   :  { %1838 = vmatprep.subr.mxu0 %v2089_v0  ;;  %1847 = vmatprep.subr.mxu1 %v2089_v0 }
  0x10   :  { %1839 = vmatpush3.msra.mxu0 %v2156_v5  ;;  %1842 = vmatprep.mubr.msk.f32.mxu0 %vm2090_vm1, %v2089_v0 }
  0x11   :  { %1840 = vmatprep.subr.mxu0 %v2089_v0  ;;  %1848 = vmatpush3.msra.mxu1 %v2149_v4 }
  0x12   :  { %1841 = vmatpush3.msra.mxu0 %v2170_v7  ;;  %1849 = vmatprep.subr.mxu1 %v2089_v0 }
  0x13   :  { %1850 = vmatpush3.msra.mxu1 %v2163_v6  ;;  %1853 = vmatprep.mubr.msk.f32.mxu1 %vm2090_vm1, %v2089_v0 }
  0x14   :  { %1851 = vmatprep.subr.mxu1 %v2089_v0  ;;  %1856 = vmatprep.subr.mxu0 %v2089_v0 }
  0x15   :  { %1852 = vmatpush3.msra.mxu1 %v2178_v8 }
  0x16   :  { %1867 = vmatprep.subr.mxu1 %v2089_v0 }
  0x7c   :  { %v143_v35 = vpop.permute.xlu1 %142 }
  0x80   :  { %v245_v37 = vpop.permute.xlu1 %244 }
  0xc9   :  { %v131_v14 = vpop.f32.mrf.mxu0 }
  0xca   :  { %v135_v16 = vadd.f32 %v131_v14, %v60_v13 }
  0xcb   :  { %v1822_v17 = vpop.f32.mrf.mxu0  ;;  %v233_v18 = vpop.f32.mrf.mxu1 }
  0xcc   :  { %1993 = vtanh.f32 %v135_v16  ;;  %v237_v19 = vadd.f32 %v1703_v15, %v233_v18  ;;  %v136_v23 = vmul.f32 0.5, %v135_v16 }
  0xcd   :  { %v1833_v20 = vpop.f32.mrf.mxu1 }
  0xce   :  { %1995 = vtanh.f32 %v237_v19  ;;  %v238_v24 = vmul.f32 0.5, %v237_v19 }
  0xcf   :  { %1997 = vtanh.f32 %v136_v23 }
  0xd0   :  { %1999 = vtanh.f32 %v238_v24 }
  0xd9   :  { %v1994_v21 = vpop.eup %1993 }
  0xda   :  { %147 = vrot.lane.b32.xlu0 %v1994_v21, %s2092_s8 }
  0xdb   :  { %v1996_v22 = vpop.eup %1995 }
  0xdc   :  { %v1998_v25 = vpop.eup %1997 }
  0xdd   :  { %v138_v26 = vmul.f32 0.5, %v1998_v25  ;;  %v2000_v27 = vpop.eup %1999 }
  0xde   :  { %249 = vrot.lane.b32.xlu0 %v1996_v22, %s2092_s8  ;;  %v240_v29 = vmul.f32 0.5, %v2000_v27 }
  0xdf   :  { %v139_v28 = vadd.f32 0.5, %v138_v26 }
  0xe0   :  { %v241_v32 = vadd.f32 0.5, %v240_v29 }
  0xe1   :  { %v145_v36 = vmul.f32 %v143_v35, %v139_v28 }
  0xe2   :  { %v247_v40 = vmul.f32 %v245_v37, %v241_v32 }
 0x14c   :  { %v148_v30 = vpop.permute.xlu0 %147 }
 0x14d   :  { %v150_v31 = vmul.f32 %v148_v30, %v139_v28 }
 0x14f   :  { %152 = vrot.lane.b32.xlu0 %v150_v31, %s2091_s2 }
 0x150   :  { %v250_v33 = vpop.permute.xlu0 %249 }
 0x151   :  { %v252_v34 = vmul.f32 %v250_v33, %v241_v32 }
 0x153   :  { %254 = vrot.lane.b32.xlu1 %v252_v34, %s2091_s2 }
 0x1c1   :  { %v153_v38 = vpop.permute.xlu0 %152 }
 0x1c2   :  { %v2223_v39 = vadd.f32 %v153_v38, %v145_v36  ;;  %v1711_v36 = vld [vmem:[%s2517_s1 + $0x28] sm:$0xff] }
 0x1c4   :  { %2001 = vtanh.f32 %v2223_v39 }
 0x1c5   :  { %v255_v41 = vpop.permute.xlu1 %254 }
 0x1c6   :  { %v2226_v42 = vadd.f32 %v255_v41, %v247_v40 }
 0x1c8   :  { %2003 = vtanh.f32 %v2226_v42 }
 0x1d1   :  { %v2002_v43 = vpop.eup %2001 }
 0x1d2   :  { %158 = vrot.lane.b32.xlu0 %v2002_v43, %s2092_s8 }
 0x1d5   :  { %v2004_v44 = vpop.eup %2003 }
 0x1d6   :  { %260 = vrot.lane.b32.xlu1 %v2004_v44, %s2092_s8 }
 0x244   :  { %v159_v45 = vpop.permute.xlu0 %158 }
 0x245   :  { %v161_v46 = vmul.f32 %v159_v45, %v139_v28 }
 0x247   :  { %267 = vrot.lane.b32.xlu0 %v161_v46, %s2091_s2 }
 0x248   :  { %v261_v47 = vpop.permute.xlu1 %260 }
 0x249   :  { %v263_v48 = vmul.f32 %v261_v47, %v241_v32  ;;  %v1709_v32 = vld [vmem:[%s2516_s0 + $0x10] sm:$0xff] }
 0x24b   :  { %367 = vrot.lane.b32.xlu1 %v263_v48, %s2091_s2 }
 0x2b9   :  { %v268_v49 = vpop.permute.xlu0 %267 }
 0x2ba   :  { %1843 = vmatmul.mubr.msk.f32.vlgmr.msra.gmra.mxu0 %vm43_vm0, %v268_v49 }
 0x2bb   :  { %1857 = vmatpush3.msra.mxu0 %v2123_v1  ;;  %1864 = vmatprep.mubr.msk.f32.mxu0 %vm2090_vm1, %v2089_v0 }
 0x2bc   :  { %1858 = vmatprep.subr.mxu0 %v2089_v0 }
 0x2bd   :  { %v368_v50 = vpop.permute.xlu1 %367  ;;  %1859 = vmatpush3.msra.mxu0 %v2129_v2 }
 0x2be   :  { %1854 = vmatmul.mubr.msk.f32.vlgmr.msra.gmra.mxu1 %vm43_vm0, %v368_v50  ;;  %1860 = vmatprep.subr.mxu0 %v2089_v0 }
 0x2bf   :  { %1861 = vmatpush3.msra.mxu0 %v2156_v5  ;;  %1868 = vmatpush3.msra.mxu1 %v2134_v3 }
 0x2c0   :  { %1862 = vmatprep.subr.mxu0 %v2089_v0  ;;  %1869 = vmatprep.subr.mxu1 %v2089_v0 }
 0x2c1   :  { %1863 = vmatpush3.msra.mxu0 %v2170_v7  ;;  %1870 = vmatpush3.msra.mxu1 %v2149_v4 }
 0x2c2   :  { %1871 = vmatprep.subr.mxu1 %v2089_v0  ;;  %1875 = vmatprep.mubr.msk.f32.mxu1 %vm2090_vm1, %v2089_v0 }
 0x2c3   :  { %1872 = vmatpush3.msra.mxu1 %v2163_v6  ;;  %1878 = vmatprep.subr.mxu0 %v2089_v0 }
 0x2c4   :  { %1873 = vmatprep.subr.mxu1 %v2089_v0 }
 0x2c5   :  { %1874 = vmatpush3.msra.mxu1 %v2178_v8 }
 0x2c6   :  { %1889 = vmatprep.subr.mxu1 %v2089_v0 }
 0x37a   :  { %v337_v52 = vpop.f32.mrf.mxu0 }
 0x37b   :  { %v341_v53 = vadd.f32 %v1705_v51, %v337_v52 }
 0x37c   :  { %v1844_v54 = vpop.f32.mrf.mxu0 }
 0x37d   :  { %2005 = vtanh.f32 %v341_v53  ;;  %v342_v61 = vmul.f32 0.5, %v341_v53 }
 0x37e   :  { %v437_v56 = vpop.f32.mrf.mxu1 }
 0x37f   :  { %v441_v57 = vadd.f32 %v1707_v55, %v437_v56 }
 0x380   :  { %v1855_v58 = vpop.f32.mrf.mxu1 }
 0x381   :  { %2007 = vtanh.f32 %v441_v57  ;;  %v442_v62 = vmul.f32 0.5, %v441_v57 }
 0x382   :  { %2009 = vtanh.f32 %v342_v61 }
 0x383   :  { %2011 = vtanh.f32 %v442_v62 }
 0x38a   :  { %v2006_v59 = vpop.eup %2005 }
 0x38b   :  { %349 = vrot.lane.b32.xlu0 %v2006_v59, %s2092_s8 }
 0x38e   :  { %v2008_v60 = vpop.eup %2007 }
 0x38f   :  { %449 = vrot.lane.b32.xlu1 %v2008_v60, %s2092_s8  ;;  %v2010_v63 = vpop.eup %2009 }
 0x390   :  { %v344_v9 = vmul.f32 0.5, %v2010_v63  ;;  %v2012_v10 = vpop.eup %2011 }
 0x391   :  { %v444_v12 = vmul.f32 0.5, %v2012_v10 }
 0x392   :  { %v345_v11 = vadd.f32 0.5, %v344_v9 }
 0x393   :  { %v445_v15 = vadd.f32 0.5, %v444_v12 }
 0x394   :  { %v347_v18 = vmul.f32 %v345_v11, %v2223_v39 }
 0x395   :  { %v447_v21 = vmul.f32 %v445_v15, %v2226_v42 }
 0x3fd   :  { %v350_v13 = vpop.permute.xlu0 %349 }
 0x3fe   :  { %v352_v14 = vmul.f32 %v350_v13, %v345_v11  ;;  %v1713_v13 = vld [vmem:[%s2516_s0 + $0x18] sm:$0xff] }
 0x400   :  { %354 = vrot.lane.b32.xlu0 %v352_v14, %s2091_s2 }
 0x401   :  { %v450_v16 = vpop.permute.xlu1 %449 }
 0x402   :  { %v452_v17 = vmul.f32 %v450_v16, %v445_v15 }
 0x404   :  { %454 = vrot.lane.b32.xlu1 %v452_v17, %s2091_s2  ;;  %v1715_v17 = vld [vmem:[%s2517_s1 + $0x20] sm:$0xff] }
 0x472   :  { %v355_v19 = vpop.permute.xlu0 %354 }
 0x473   :  { %v2266_v20 = vadd.f32 %v355_v19, %v347_v18 }
 0x475   :  { %2013 = vtanh.f32 %v2266_v20 }
 0x476   :  { %v455_v22 = vpop.permute.xlu1 %454 }
 0x477   :  { %v2270_v23 = vadd.f32 %v455_v22, %v447_v21 }
 0x479   :  { %2015 = vtanh.f32 %v2270_v23 }
 0x482   :  { %v2014_v24 = vpop.eup %2013 }
 0x483   :  { %360 = vrot.lane.b32.xlu0 %v2014_v24, %s2092_s8 }
 0x486   :  { %v2016_v25 = vpop.eup %2015 }
 0x487   :  { %460 = vrot.lane.b32.xlu1 %v2016_v25, %s2092_s8 }
 0x4f5   :  { %v361_v26 = vpop.permute.xlu0 %360 }
 0x4f6   :  { %v363_v27 = vmul.f32 %v361_v26, %v345_v11 }
 0x4f8   :  { %467 = vrot.lane.b32.xlu0 %v363_v27, %s2091_s2 }
 0x4f9   :  { %v461_v28 = vpop.permute.xlu1 %460 }
 0x4fa   :  { %v463_v29 = vmul.f32 %v461_v28, %v445_v15 }
 0x4fc   :  { %567 = vrot.lane.b32.xlu1 %v463_v29, %s2091_s2 }
 0x56a   :  { %v468_v30 = vpop.permute.xlu0 %467 }
 0x56b   :  { %1865 = vmatmul.mubr.msk.f32.vlgmr.msra.gmra.mxu0 %vm43_vm0, %v468_v30 }
 0x56c   :  { %1879 = vmatpush3.msra.mxu0 %v2123_v1  ;;  %1886 = vmatprep.mubr.msk.f32.mxu0 %vm2090_vm1, %v2089_v0 }
 0x56d   :  { %1880 = vmatprep.subr.mxu0 %v2089_v0 }
 0x56e   :  { %v568_v31 = vpop.permute.xlu1 %567  ;;  %1881 = vmatpush3.msra.mxu0 %v2129_v2 }
 0x56f   :  { %1876 = vmatmul.mubr.msk.f32.vlgmr.msra.gmra.mxu1 %vm43_vm0, %v568_v31  ;;  %1882 = vmatprep.subr.mxu0 %v2089_v0 }
 0x570   :  { %1883 = vmatpush3.msra.mxu0 %v2156_v5  ;;  %1890 = vmatpush3.msra.mxu1 %v2134_v3 }
 0x571   :  { %1884 = vmatprep.subr.mxu0 %v2089_v0  ;;  %1891 = vmatprep.subr.mxu1 %v2089_v0 }
 0x572   :  { %1885 = vmatpush3.msra.mxu0 %v2170_v7  ;;  %1892 = vmatpush3.msra.mxu1 %v2149_v4 }
 0x573   :  { %1893 = vmatprep.subr.mxu1 %v2089_v0  ;;  %1897 = vmatprep.mubr.msk.f32.mxu1 %vm2090_vm1, %v2089_v0 }
 0x574   :  { %1894 = vmatpush3.msra.mxu1 %v2163_v6  ;;  %1900 = vmatprep.subr.mxu0 %v2089_v0 }
 0x575   :  { %1895 = vmatprep.subr.mxu1 %v2089_v0 }
 0x576   :  { %1896 = vmatpush3.msra.mxu1 %v2178_v8 }
 0x577   :  { %1911 = vmatprep.subr.mxu1 %v2089_v0 }
 0x62b   :  { %v537_v33 = vpop.f32.mrf.mxu0 }
 0x62c   :  { %v541_v34 = vadd.f32 %v1709_v32, %v537_v33 }
 0x62d   :  { %v1866_v35 = vpop.f32.mrf.mxu0 }
 0x62e   :  { %2017 = vtanh.f32 %v541_v34  ;;  %v542_v42 = vmul.f32 0.5, %v541_v34 }
 0x62f   :  { %v637_v37 = vpop.f32.mrf.mxu1 }
 0x630   :  { %v641_v38 = vadd.f32 %v1711_v36, %v637_v37 }
 0x631   :  { %v1877_v39 = vpop.f32.mrf.mxu1 }
 0x632   :  { %2019 = vtanh.f32 %v641_v38  ;;  %v642_v43 = vmul.f32 0.5, %v641_v38 }
 0x633   :  { %2021 = vtanh.f32 %v542_v42 }
 0x634   :  { %2023 = vtanh.f32 %v642_v43 }
 0x63b   :  { %v2018_v40 = vpop.eup %2017 }
 0x63c   :  { %549 = vrot.lane.b32.xlu0 %v2018_v40, %s2092_s8 }
 0x63f   :  { %v2020_v41 = vpop.eup %2019 }
 0x640   :  { %649 = vrot.lane.b32.xlu1 %v2020_v41, %s2092_s8  ;;  %v2022_v44 = vpop.eup %2021 }
 0x641   :  { %v544_v45 = vmul.f32 0.5, %v2022_v44  ;;  %v2024_v46 = vpop.eup %2023 }
 0x642   :  { %v644_v48 = vmul.f32 0.5, %v2024_v46 }
 0x643   :  { %v545_v47 = vadd.f32 0.5, %v544_v45 }
 0x644   :  { %v645_v51 = vadd.f32 0.5, %v644_v48 }
 0x645   :  { %v547_v54 = vmul.f32 %v545_v47, %v2266_v20 }
 0x646   :  { %v647_v57 = vmul.f32 %v645_v51, %v2270_v23 }
 0x6ae   :  { %v550_v49 = vpop.permute.xlu0 %549 }
 0x6af   :  { %v552_v50 = vmul.f32 %v550_v49, %v545_v47  ;;  %v1717_v49 = vld [vmem:[%s2516_s0 + $0x20] sm:$0xff] }
 0x6b1   :  { %554 = vrot.lane.b32.xlu0 %v552_v50, %s2091_s2 }
 0x6b2   :  { %v650_v52 = vpop.permute.xlu1 %649 }
 0x6b3   :  { %v652_v53 = vmul.f32 %v650_v52, %v645_v51 }
 0x6b5   :  { %654 = vrot.lane.b32.xlu1 %v652_v53, %s2091_s2  ;;  %v1719_v53 = vld [vmem:[%s2517_s1 + $0x18] sm:$0xff] }
 0x723   :  { %v555_v55 = vpop.permute.xlu0 %554 }
 0x724   :  { %v2310_v56 = vadd.f32 %v555_v55, %v547_v54 }
 0x726   :  { %2025 = vtanh.f32 %v2310_v56 }
 0x727   :  { %v655_v58 = vpop.permute.xlu1 %654 }
 0x728   :  { %v2314_v59 = vadd.f32 %v655_v58, %v647_v57 }
 0x72a   :  { %2027 = vtanh.f32 %v2314_v59 }
 0x733   :  { %v2026_v60 = vpop.eup %2025 }
 0x734   :  { %560 = vrot.lane.b32.xlu0 %v2026_v60, %s2092_s8 }
 0x737   :  { %v2028_v61 = vpop.eup %2027 }
 0x738   :  { %660 = vrot.lane.b32.xlu1 %v2028_v61, %s2092_s8 }
 0x7a6   :  { %v561_v62 = vpop.permute.xlu0 %560 }
 0x7a7   :  { %v563_v63 = vmul.f32 %v561_v62, %v545_v47 }
 0x7a9   :  { %667 = vrot.lane.b32.xlu0 %v563_v63, %s2091_s2 }
 0x7aa   :  { %v661_v9 = vpop.permute.xlu1 %660 }
 0x7ab   :  { %v663_v10 = vmul.f32 %v661_v9, %v645_v51 }
 0x7ad   :  { %767 = vrot.lane.b32.xlu1 %v663_v10, %s2091_s2 }
 0x81b   :  { %v668_v11 = vpop.permute.xlu0 %667 }
 0x81c   :  { %1887 = vmatmul.mubr.msk.f32.vlgmr.msra.gmra.mxu0 %vm43_vm0, %v668_v11 }
 0x81d   :  { %1901 = vmatpush3.msra.mxu0 %v2123_v1  ;;  %1908 = vmatprep.mubr.msk.f32.mxu0 %vm2090_vm1, %v2089_v0 }
 0x81e   :  { %1902 = vmatprep.subr.mxu0 %v2089_v0 }
 0x81f   :  { %v768_v12 = vpop.permute.xlu1 %767  ;;  %1903 = vmatpush3.msra.mxu0 %v2129_v2 }
 0x820   :  { %1898 = vmatmul.mubr.msk.f32.vlgmr.msra.gmra.mxu1 %vm43_vm0, %v768_v12  ;;  %1904 = vmatprep.subr.mxu0 %v2089_v0 }
 0x821   :  { %1905 = vmatpush3.msra.mxu0 %v2156_v5  ;;  %1912 = vmatpush3.msra.mxu1 %v2134_v3 }
 0x822   :  { %1906 = vmatprep.subr.mxu0 %v2089_v0  ;;  %1913 = vmatprep.subr.mxu1 %v2089_v0 }
 0x823   :  { %1907 = vmatpush3.msra.mxu0 %v2170_v7  ;;  %1914 = vmatpush3.msra.mxu1 %v2149_v4 }
 0x824   :  { %1915 = vmatprep.subr.mxu1 %v2089_v0  ;;  %1919 = vmatprep.mubr.msk.f32.mxu1 %vm2090_vm1, %v2089_v0 }
 0x825   :  { %1916 = vmatpush3.msra.mxu1 %v2163_v6  ;;  %1922 = vmatprep.subr.mxu0 %v2089_v0 }
 0x826   :  { %1917 = vmatprep.subr.mxu1 %v2089_v0 }
 0x827   :  { %1918 = vmatpush3.msra.mxu1 %v2178_v8 }
 0x828   :  { %1933 = vmatprep.subr.mxu1 %v2089_v0 }
 0x8dc   :  { %v737_v14 = vpop.f32.mrf.mxu0 }
 0x8dd   :  { %v741_v15 = vadd.f32 %v1713_v13, %v737_v14 }
 0x8de   :  { %v1888_v16 = vpop.f32.mrf.mxu0 }
 0x8df   :  { %2029 = vtanh.f32 %v741_v15  ;;  %v742_v23 = vmul.f32 0.5, %v741_v15 }
 0x8e0   :  { %v837_v18 = vpop.f32.mrf.mxu1 }
 0x8e1   :  { %v841_v19 = vadd.f32 %v1715_v17, %v837_v18 }
 0x8e2   :  { %v1899_v20 = vpop.f32.mrf.mxu1 }
 0x8e3   :  { %2031 = vtanh.f32 %v841_v19  ;;  %v842_v24 = vmul.f32 0.5, %v841_v19 }
 0x8e4   :  { %2033 = vtanh.f32 %v742_v23 }
 0x8e5   :  { %2035 = vtanh.f32 %v842_v24 }
 0x8ec   :  { %v2030_v21 = vpop.eup %2029 }
 0x8ed   :  { %749 = vrot.lane.b32.xlu0 %v2030_v21, %s2092_s8 }
 0x8f0   :  { %v2032_v22 = vpop.eup %2031 }
 0x8f1   :  { %849 = vrot.lane.b32.xlu1 %v2032_v22, %s2092_s8  ;;  %v2034_v25 = vpop.eup %2033 }
 0x8f2   :  { %v744_v26 = vmul.f32 0.5, %v2034_v25  ;;  %v2036_v27 = vpop.eup %2035 }
 0x8f3   :  { %v844_v29 = vmul.f32 0.5, %v2036_v27 }
 0x8f4   :  { %v745_v28 = vadd.f32 0.5, %v744_v26 }
 0x8f5   :  { %v845_v32 = vadd.f32 0.5, %v844_v29 }
 0x8f6   :  { %v747_v35 = vmul.f32 %v745_v28, %v2310_v56 }
 0x8f7   :  { %v847_v38 = vmul.f32 %v845_v32, %v2314_v59 }
 0x95f   :  { %v750_v30 = vpop.permute.xlu0 %749 }
 0x960   :  { %v752_v31 = vmul.f32 %v750_v30, %v745_v28  ;;  %v1721_v30 = vld [vmem:[%s2516_s0 + $0x28] sm:$0xff] }
 0x962   :  { %754 = vrot.lane.b32.xlu0 %v752_v31, %s2091_s2 }
 0x963   :  { %v850_v33 = vpop.permute.xlu1 %849 }
 0x964   :  { %v852_v34 = vmul.f32 %v850_v33, %v845_v32 }
 0x966   :  { %854 = vrot.lane.b32.xlu1 %v852_v34, %s2091_s2  ;;  %v1723_v34 = vld [vmem:[%s2517_s1 + $0x10] sm:$0xff] }
 0x9d4   :  { %v755_v36 = vpop.permute.xlu0 %754 }
 0x9d5   :  { %v2354_v37 = vadd.f32 %v755_v36, %v747_v35 }
 0x9d7   :  { %2037 = vtanh.f32 %v2354_v37 }
 0x9d8   :  { %v855_v39 = vpop.permute.xlu1 %854 }
 0x9d9   :  { %v2358_v40 = vadd.f32 %v855_v39, %v847_v38 }
 0x9db   :  { %2039 = vtanh.f32 %v2358_v40 }
 0x9e4   :  { %v2038_v41 = vpop.eup %2037 }
 0x9e5   :  { %760 = vrot.lane.b32.xlu0 %v2038_v41, %s2092_s8 }
 0x9e8   :  { %v2040_v42 = vpop.eup %2039 }
 0x9e9   :  { %860 = vrot.lane.b32.xlu1 %v2040_v42, %s2092_s8 }
 0xa57   :  { %v761_v43 = vpop.permute.xlu0 %760 }
 0xa58   :  { %v763_v44 = vmul.f32 %v761_v43, %v745_v28 }
 0xa5a   :  { %867 = vrot.lane.b32.xlu0 %v763_v44, %s2091_s2 }
 0xa5b   :  { %v861_v45 = vpop.permute.xlu1 %860 }
 0xa5c   :  { %v863_v46 = vmul.f32 %v861_v45, %v845_v32 }
 0xa5e   :  { %967 = vrot.lane.b32.xlu1 %v863_v46, %s2091_s2 }
 0xacc   :  { %v868_v47 = vpop.permute.xlu0 %867 }
 0xacd   :  { %1909 = vmatmul.mubr.msk.f32.vlgmr.msra.gmra.mxu0 %vm43_vm0, %v868_v47 }
 0xace   :  { %1923 = vmatpush3.msra.mxu0 %v2123_v1  ;;  %1930 = vmatprep.mubr.msk.f32.mxu0 %vm2090_vm1, %v2089_v0 }
 0xacf   :  { %1924 = vmatprep.subr.mxu0 %v2089_v0 }
 0xad0   :  { %v968_v48 = vpop.permute.xlu1 %967  ;;  %1925 = vmatpush3.msra.mxu0 %v2129_v2 }
 0xad1   :  { %1920 = vmatmul.mubr.msk.f32.vlgmr.msra.gmra.mxu1 %vm43_vm0, %v968_v48  ;;  %1926 = vmatprep.subr.mxu0 %v2089_v0 }
 0xad2   :  { %1927 = vmatpush3.msra.mxu0 %v2156_v5  ;;  %1934 = vmatpush3.msra.mxu1 %v2134_v3 }
 0xad3   :  { %1928 = vmatprep.subr.mxu0 %v2089_v0  ;;  %1935 = vmatprep.subr.mxu1 %v2089_v0 }
 0xad4   :  { %1929 = vmatpush3.msra.mxu0 %v2170_v7  ;;  %1936 = vmatpush3.msra.mxu1 %v2149_v4 }
 0xad5   :  { %1937 = vmatprep.subr.mxu1 %v2089_v0  ;;  %1941 = vmatprep.mubr.msk.f32.mxu1 %vm2090_vm1, %v2089_v0 }
 0xad6   :  { %1938 = vmatpush3.msra.mxu1 %v2163_v6  ;;  %1944 = vmatprep.subr.mxu0 %v2089_v0 }
 0xad7   :  { %1939 = vmatprep.subr.mxu1 %v2089_v0 }
 0xad8   :  { %1940 = vmatpush3.msra.mxu1 %v2178_v8 }
 0xad9   :  { %1955 = vmatprep.subr.mxu1 %v2089_v0 }
 0xb8d   :  { %v937_v50 = vpop.f32.mrf.mxu0 }
 0xb8e   :  { %v941_v51 = vadd.f32 %v1717_v49, %v937_v50 }
 0xb8f   :  { %v1910_v52 = vpop.f32.mrf.mxu0 }
 0xb90   :  { %2041 = vtanh.f32 %v941_v51  ;;  %v942_v59 = vmul.f32 0.5, %v941_v51 }
 0xb91   :  { %v1037_v54 = vpop.f32.mrf.mxu1 }
 0xb92   :  { %v1041_v55 = vadd.f32 %v1719_v53, %v1037_v54 }
 0xb93   :  { %v1921_v56 = vpop.f32.mrf.mxu1 }
 0xb94   :  { %2043 = vtanh.f32 %v1041_v55  ;;  %v1042_v60 = vmul.f32 0.5, %v1041_v55 }
 0xb95   :  { %2045 = vtanh.f32 %v942_v59 }
 0xb96   :  { %2047 = vtanh.f32 %v1042_v60 }
 0xb9d   :  { %v2042_v57 = vpop.eup %2041 }
 0xb9e   :  { %949 = vrot.lane.b32.xlu0 %v2042_v57, %s2092_s8 }
 0xba1   :  { %v2044_v58 = vpop.eup %2043 }
 0xba2   :  { %1049 = vrot.lane.b32.xlu1 %v2044_v58, %s2092_s8  ;;  %v2046_v61 = vpop.eup %2045 }
 0xba3   :  { %v944_v62 = vmul.f32 0.5, %v2046_v61  ;;  %v2048_v63 = vpop.eup %2047 }
 0xba4   :  { %v1044_v10 = vmul.f32 0.5, %v2048_v63 }
 0xba5   :  { %v945_v9 = vadd.f32 0.5, %v944_v62 }
 0xba6   :  { %v1045_v13 = vadd.f32 0.5, %v1044_v10 }
 0xba7   :  { %v947_v16 = vmul.f32 %v945_v9, %v2354_v37 }
 0xba8   :  { %v1047_v19 = vmul.f32 %v1045_v13, %v2358_v40 }
 0xc10   :  { %v950_v11 = vpop.permute.xlu0 %949 }
 0xc11   :  { %v952_v12 = vmul.f32 %v950_v11, %v945_v9 }
 0xc13   :  { %954 = vrot.lane.b32.xlu0 %v952_v12, %s2091_s2 }
 0xc14   :  { %v1050_v14 = vpop.permute.xlu1 %1049 }
 0xc15   :  { %v1052_v15 = vmul.f32 %v1050_v14, %v1045_v13 }
 0xc17   :  { %1054 = vrot.lane.b32.xlu1 %v1052_v15, %s2091_s2 }
 0xc85   :  { %v955_v17 = vpop.permute.xlu0 %954 }
 0xc86   :  { %v2398_v18 = vadd.f32 %v955_v17, %v947_v16 }
 0xc88   :  { %2049 = vtanh.f32 %v2398_v18 }
 0xc89   :  { %v1055_v20 = vpop.permute.xlu1 %1054 }
 0xc8a   :  { %v2402_v21 = vadd.f32 %v1055_v20, %v1047_v19 }
 0xc8c   :  { %2051 = vtanh.f32 %v2402_v21 }
 0xc95   :  { %v2050_v22 = vpop.eup %2049 }
 0xc96   :  { %960 = vrot.lane.b32.xlu0 %v2050_v22, %s2092_s8 }
 0xc99   :  { %v2052_v23 = vpop.eup %2051 }
 0xc9a   :  { %1060 = vrot.lane.b32.xlu1 %v2052_v23, %s2092_s8 }
 0xd08   :  { %v961_v24 = vpop.permute.xlu0 %960 }
 0xd09   :  { %v963_v25 = vmul.f32 %v961_v24, %v945_v9 }
 0xd0b   :  { %1067 = vrot.lane.b32.xlu0 %v963_v25, %s2091_s2 }
 0xd0c   :  { %v1061_v26 = vpop.permute.xlu1 %1060 }
 0xd0d   :  { %v1063_v27 = vmul.f32 %v1061_v26, %v1045_v13 }
 0xd0f   :  { %1167 = vrot.lane.b32.xlu1 %v1063_v27, %s2091_s2 }
 0xd7d   :  { %v1068_v28 = vpop.permute.xlu0 %1067 }
 0xd7e   :  { %1931 = vmatmul.mubr.msk.f32.vlgmr.msra.gmra.mxu0 %vm43_vm0, %v1068_v28 }
 0xd7f   :  { %1945 = vmatpush3.msra.mxu0 %v2123_v1  ;;  %1952 = vmatprep.mubr.msk.f32.mxu0 %vm2090_vm1, %v2089_v0 }
 0xd80   :  { %1946 = vmatprep.subr.mxu0 %v2089_v0 }
 0xd81   :  { %v1168_v29 = vpop.permute.xlu1 %1167  ;;  %1947 = vmatpush3.msra.mxu0 %v2129_v2 }
 0xd82   :  { %1942 = vmatmul.mubr.msk.f32.vlgmr.msra.gmra.mxu1 %vm43_vm0, %v1168_v29  ;;  %1948 = vmatprep.subr.mxu0 %v2089_v0 }
 0xd83   :  { %1949 = vmatpush3.msra.mxu0 %v2156_v5  ;;  %1956 = vmatpush3.msra.mxu1 %v2134_v3 }
 0xd84   :  { %1950 = vmatprep.subr.mxu0 %v2089_v0  ;;  %1957 = vmatprep.subr.mxu1 %v2089_v0 }
 0xd85   :  { %1951 = vmatpush3.msra.mxu0 %v2170_v7  ;;  %1958 = vmatpush3.msra.mxu1 %v2149_v4 }
 0xd86   :  { %1959 = vmatprep.subr.mxu1 %v2089_v0  ;;  %1963 = vmatprep.mubr.msk.f32.mxu1 %vm2090_vm1, %v2089_v0 }
 0xd87   :  { %1960 = vmatpush3.msra.mxu1 %v2163_v6  ;;  %1966 = vmatprep.subr.mxu0 %v2089_v0 }
 0xd88   :  { %1961 = vmatprep.subr.mxu1 %v2089_v0 }
 0xd89   :  { %1962 = vmatpush3.msra.mxu1 %v2178_v8 }
 0xd8a   :  { %1977 = vmatprep.subr.mxu1 %v2089_v0 }
 0xe3e   :  { %v1137_v31 = vpop.f32.mrf.mxu0 }
 0xe3f   :  { %v1141_v32 = vadd.f32 %v1721_v30, %v1137_v31 }
 0xe40   :  { %v1932_v33 = vpop.f32.mrf.mxu0 }
 0xe41   :  { %2053 = vtanh.f32 %v1141_v32  ;;  %v1142_v40 = vmul.f32 0.5, %v1141_v32 }
 0xe42   :  { %v1237_v35 = vpop.f32.mrf.mxu1 }
 0xe43   :  { %v1241_v36 = vadd.f32 %v1723_v34, %v1237_v35 }
 0xe44   :  { %v1943_v37 = vpop.f32.mrf.mxu1 }
 0xe45   :  { %2055 = vtanh.f32 %v1241_v36  ;;  %v1242_v41 = vmul.f32 0.5, %v1241_v36 }
 0xe46   :  { %2057 = vtanh.f32 %v1142_v40 }
 0xe47   :  { %2059 = vtanh.f32 %v1242_v41 }
 0xe4e   :  { %v2054_v38 = vpop.eup %2053 }
 0xe4f   :  { %1149 = vrot.lane.b32.xlu0 %v2054_v38, %s2092_s8  ;;  %v1729_v38 = vld [vmem:[%s2516_s0 + $0x38] sm:$0xff] }
 0xe52   :  { %v2056_v39 = vpop.eup %2055 }
 0xe53   :  { %1249 = vrot.lane.b32.xlu1 %v2056_v39, %s2092_s8  ;;  %v2058_v42 = vpop.eup %2057 }
 0xe54   :  { %v1144_v43 = vmul.f32 0.5, %v2058_v42  ;;  %v2060_v44 = vpop.eup %2059  ;;  %v1564_v42 = vld [vmem:[%s2517_s1] sm:$0xff] }
 0xe55   :  { %v1244_v46 = vmul.f32 0.5, %v2060_v44 }
 0xe56   :  { %v1145_v45 = vadd.f32 0.5, %v1144_v43 }
 0xe57   :  { %v1245_v49 = vadd.f32 0.5, %v1244_v46 }
 0xe58   :  { %v1147_v52 = vmul.f32 %v1145_v45, %v2398_v18 }
 0xe59   :  { %v1247_v55 = vmul.f32 %v1245_v49, %v2402_v21 }
 0xec1   :  { %v1150_v47 = vpop.permute.xlu0 %1149 }
 0xec2   :  { %v1152_v48 = vmul.f32 %v1150_v47, %v1145_v45 }
 0xec4   :  { %1154 = vrot.lane.b32.xlu0 %v1152_v48, %s2091_s2 }
 0xec5   :  { %v1250_v50 = vpop.permute.xlu1 %1249 }
 0xec6   :  { %v1252_v51 = vmul.f32 %v1250_v50, %v1245_v49 }
 0xec8   :  { %1254 = vrot.lane.b32.xlu1 %v1252_v51, %s2091_s2 }
 0xf36   :  { %v1155_v53 = vpop.permute.xlu0 %1154 }
 0xf37   :  { %v2442_v54 = vadd.f32 %v1155_v53, %v1147_v52 }
 0xf39   :  { %2061 = vtanh.f32 %v2442_v54 }
 0xf3a   :  { %v1255_v56 = vpop.permute.xlu1 %1254 }
 0xf3b   :  { %v2446_v57 = vadd.f32 %v1255_v56, %v1247_v55 }
 0xf3d   :  { %2063 = vtanh.f32 %v2446_v57 }
 0xf46   :  { %v2062_v58 = vpop.eup %2061 }
 0xf47   :  { %1160 = vrot.lane.b32.xlu0 %v2062_v58, %s2092_s8 }
 0xf4a   :  { %v2064_v59 = vpop.eup %2063 }
 0xf4b   :  { %1260 = vrot.lane.b32.xlu1 %v2064_v59, %s2092_s8 }
 0xfb9   :  { %v1161_v60 = vpop.permute.xlu0 %1160 }
 0xfba   :  { %v1163_v61 = vmul.f32 %v1161_v60, %v1145_v45 }
 0xfbc   :  { %1267 = vrot.lane.b32.xlu0 %v1163_v61, %s2091_s2 }
 0xfbd   :  { %v1261_v62 = vpop.permute.xlu1 %1260 }
 0xfbe   :  { %v1263_v63 = vmul.f32 %v1261_v62, %v1245_v49 }
 0xfc0   :  { %1367 = vrot.lane.b32.xlu1 %v1263_v63, %s2091_s2 }
0x102e   :  { %v1268_v9 = vpop.permute.xlu0 %1267 }
0x102f   :  { %1953 = vmatmul.mubr.msk.f32.vlgmr.msra.gmra.mxu0 %vm43_vm0, %v1268_v9 }
0x1030   :  { %1967 = vmatpush3.msra.mxu0 %v2123_v1  ;;  %1974 = vmatprep.mubr.msk.f32.mxu0 %vm2090_vm1, %v2089_v0  ;;  %v1725_v1 = vld [vmem:[%s2516_s0 + $0x30] sm:$0xff]  ;;  %s2093_s0 = smov 96  }
0x1031   :  { %1968 = vmatprep.subr.mxu0 %v2089_v0 }
0x1032   :  { %v1368_v10 = vpop.permute.xlu1 %1367  ;;  %1969 = vmatpush3.msra.mxu0 %v2129_v2 }
0x1033   :  { %1964 = vmatmul.mubr.msk.f32.vlgmr.msra.gmra.mxu1 %vm43_vm0, %v1368_v10  ;;  %1970 = vmatprep.subr.mxu0 %v2089_v0 }
0x1034   :  { %1971 = vmatpush3.msra.mxu0 %v2156_v5  ;;  %1978 = vmatpush3.msra.mxu1 %v2134_v3 }
0x1035   :  { %1972 = vmatprep.subr.mxu0 %v2089_v0  ;;  %1979 = vmatprep.subr.mxu1 %v2089_v0 }
0x1036   :  { %1973 = vmatpush3.msra.mxu0 %v2170_v7  ;;  %1980 = vmatpush3.msra.mxu1 %v2149_v4  ;;  %v1727_v4 = vld [vmem:[%s2517_s1 + $0x8] sm:$0xff] }
0x1037   :  { %1981 = vmatprep.subr.mxu1 %v2089_v0  ;;  %1985 = vmatprep.mubr.msk.f32.mxu1 %vm2090_vm1, %v2089_v0 }
0x1038   :  { %1982 = vmatpush3.msra.mxu1 %v2163_v6 }
0x1039   :  { %1983 = vmatprep.subr.mxu1 %v2089_v0 }
0x103a   :  { %1984 = vmatpush3.msra.mxu1 %v2178_v8 }
0x10ef   :  { %v1337_v2 = vpop.f32.mrf.mxu0 }
0x10f0   :  { %v1341_v3 = vadd.f32 %v1725_v1, %v1337_v2 }
0x10f1   :  { %v1954_v5 = vpop.f32.mrf.mxu0 }
0x10f2   :  { %2065 = vtanh.f32 %v1341_v3  ;;  %v1342_v8 = vmul.f32 0.5, %v1341_v3 }
0x10f3   :  { %v1437_v7 = vpop.f32.mrf.mxu1 }
0x10f4   :  { %v1441_v11 = vadd.f32 %v1727_v4, %v1437_v7 }
0x10f5   :  { %v1965_v12 = vpop.f32.mrf.mxu1 }
0x10f6   :  { %2067 = vtanh.f32 %v1441_v11  ;;  %v1442_v13 = vmul.f32 0.5, %v1441_v11 }
0x10f7   :  { %2069 = vtanh.f32 %v1342_v8 }
0x10f8   :  { %2071 = vtanh.f32 %v1442_v13 }
0x10ff   :  { %v2066_v6 = vpop.eup %2065 }
0x1100   :  { %1349 = vrot.lane.b32.xlu0 %v2066_v6, %s2092_s8 }
0x1103   :  { %v2068_v0 = vpop.eup %2067 }
0x1104   :  { %1449 = vrot.lane.b32.xlu1 %v2068_v0, %s2092_s8  ;;  %v2070_v14 = vpop.eup %2069 }
0x1105   :  { %v1344_v15 = vmul.f32 0.5, %v2070_v14  ;;  %v2072_v16 = vpop.eup %2071 }
0x1106   :  { %v1444_v18 = vmul.f32 0.5, %v2072_v16 }
0x1107   :  { %v1345_v17 = vadd.f32 0.5, %v1344_v15 }
0x1108   :  { %v1445_v21 = vadd.f32 0.5, %v1444_v18 }
0x1109   :  { %v1347_v24 = vmul.f32 %v1345_v17, %v2442_v54 }
0x110a   :  { %v1447_v27 = vmul.f32 %v1445_v21, %v2446_v57 }
0x1172   :  { %v1350_v19 = vpop.permute.xlu0 %1349 }
0x1173   :  { %v1352_v20 = vmul.f32 %v1350_v19, %v1345_v17 }
0x1175   :  { %1354 = vrot.lane.b32.xlu0 %v1352_v20, %s2091_s2 }
0x1176   :  { %v1450_v22 = vpop.permute.xlu1 %1449 }
0x1177   :  { %v1452_v23 = vmul.f32 %v1450_v22, %v1445_v21 }
0x1179   :  { %1454 = vrot.lane.b32.xlu1 %v1452_v23, %s2091_s2 }
0x11e7   :  { %v1355_v25 = vpop.permute.xlu0 %1354 }
0x11e8   :  { %v1357_v26 = vadd.f32 %v1355_v25, %v1347_v24 }
0x11ea   :  { %2073 = vtanh.f32 %v1357_v26 }
0x11eb   :  { %v1455_v28 = vpop.permute.xlu1 %1454 }
0x11ec   :  { %v1457_v29 = vadd.f32 %v1455_v28, %v1447_v27 }
0x11ee   :  { %2075 = vtanh.f32 %v1457_v29 }
0x11f7   :  { %v2074_v30 = vpop.eup %2073 }
0x11f8   :  { %1360 = vrot.lane.b32.xlu0 %v2074_v30, %s2092_s8 }
0x11fb   :  { %v2076_v31 = vpop.eup %2075 }
0x11fc   :  { %1460 = vrot.lane.b32.xlu1 %v2076_v31, %s2092_s8 }
0x126a   :  { %v1361_v32 = vpop.permute.xlu0 %1360 }
0x126b   :  { %v1363_v33 = vmul.f32 %v1361_v32, %v1345_v17 }
0x126d   :  { %1467 = vrot.lane.b32.xlu0 %v1363_v33, %s2091_s2 }
0x126e   :  { %v1461_v34 = vpop.permute.xlu1 %1460 }
0x126f   :  { %v1463_v35 = vmul.f32 %v1461_v34, %v1445_v21 }
0x1271   :  { %1566 = vrot.lane.b32.xlu1 %v1463_v35, %s2091_s2 }
0x12df   :  { %v1468_v36 = vpop.permute.xlu0 %1467 }
0x12e0   :  { %1975 = vmatmul.mubr.msk.f32.vlgmr.msra.gmra.mxu0 %vm43_vm0, %v1468_v36 }
0x12e3   :  { %v1567_v37 = vpop.permute.xlu1 %1566 }
0x12e4   :  { %1986 = vmatmul.mubr.msk.f32.vlgmr.msra.gmra.mxu1 %vm43_vm0, %v1567_v37 }
0x13a0   :  { %v1537_v39 = vpop.f32.mrf.mxu0 }
0x13a1   :  { %v1541_v40 = vadd.f32 %v1729_v38, %v1537_v39 }
0x13a2   :  { %v1976_v41 = vpop.f32.mrf.mxu0 }
0x13a3   :  { %2077 = vtanh.f32 %v1541_v40  ;;  %v1542_v48 = vmul.f32 0.5, %v1541_v40 }
0x13a4   :  { %v1636_v43 = vpop.f32.mrf.mxu1 }
0x13a5   :  { %v1640_v44 = vadd.f32 %v1636_v43, %v1564_v42 }
0x13a6   :  { %v1987_v45 = vpop.f32.mrf.mxu1 }
0x13a7   :  { %2079 = vtanh.f32 %v1640_v44  ;;  %v1641_v49 = vmul.f32 0.5, %v1640_v44 }
0x13a8   :  { %2081 = vtanh.f32 %v1542_v48 }
0x13a9   :  { %2083 = vtanh.f32 %v1641_v49 }
0x13b0   :  { %v2078_v46 = vpop.eup %2077 }
0x13b1   :  { %1549 = vrot.lane.b32.xlu0 %v2078_v46, %s2092_s8 }
0x13b4   :  { %v2080_v47 = vpop.eup %2079 }
0x13b5   :  { %1648 = vrot.lane.b32.xlu1 %v2080_v47, %s2092_s8  ;;  %v2082_v50 = vpop.eup %2081 }
0x13b6   :  { %v1544_v51 = vmul.f32 0.5, %v2082_v50  ;;  %v2084_v52 = vpop.eup %2083 }
0x13b7   :  { %v1643_v54 = vmul.f32 0.5, %v2084_v52 }
0x13b8   :  { %v1545_v53 = vadd.f32 0.5, %v1544_v51 }
0x13b9   :  { %v1644_v57 = vadd.f32 0.5, %v1643_v54 }
0x13ba   :  { %v1547_v60 = vmul.f32 %v1545_v53, %v1357_v26 }
0x13bb   :  { %v1646_v63 = vmul.f32 %v1644_v57, %v1457_v29 }
0x1423   :  { %v1550_v55 = vpop.permute.xlu0 %1549 }
0x1424   :  { %v1552_v56 = vmul.f32 %v1550_v55, %v1545_v53 }
0x1426   :  { %1554 = vrot.lane.b32.xlu0 %v1552_v56, %s2091_s2 }
0x1427   :  { %v1649_v58 = vpop.permute.xlu1 %1648 }
0x1428   :  { %v1651_v59 = vmul.f32 %v1649_v58, %v1644_v57 }
0x142a   :  { %1653 = vrot.lane.b32.xlu1 %v1651_v59, %s2091_s2 }
0x1498   :  { %v1555_v61 = vpop.permute.xlu0 %1554 }
0x1499   :  { %v1557_v62 = vadd.f32 %v1555_v61, %v1547_v60 }
0x149b   :  { %2085 = vtanh.f32 %v1557_v62 }
0x149c   :  { %v1654_v9 = vpop.permute.xlu1 %1653 }
0x149d   :  { %v1656_v10 = vadd.f32 %v1654_v9, %v1646_v63 }
0x149f   :  { %2087 = vtanh.f32 %v1656_v10 }
0x14a8   :  { %v2086_v1 = vpop.eup %2085 }
0x14a9   :  { %1560 = vrot.lane.b32.xlu0 %v2086_v1, %s2092_s8 }
0x14ac   :  { %v2088_v2 = vpop.eup %2087 }
0x14ad   :  { %1659 = vrot.lane.b32.xlu1 %v2088_v2, %s2092_s8  ;;  %1669 = vrot.lane.b32.xlu0 %v1557_v62, %s2093_s0 }
0x151b   :  { %v1561_v3 = vpop.permute.xlu0 %1560 }
0x151c   :  { %v1563_v5 = vmul.f32 %v1561_v3, %v1545_v53 }
0x151e   :  { %1664 = vrot.lane.b32.xlu0 %v1563_v5, %s2091_s2 }
0x151f   :  { %v1660_v4 = vpop.permute.xlu1 %1659  ;;  %v1670_v7 = vpop.permute.xlu0 %1669 }
0x1520   :  { %v1662_v11 = vmul.f32 %v1660_v4, %v1644_v57  ;;  %1672 = vst.msk [vmem:[#allocation3] sm:$0xff] %vm43_vm0, %v1670_v7 }
0x1522   :  { %1686 = vrot.lane.b32.xlu1 %v1662_v11, %s2092_s8  ;;  %1679 = vrot.lane.b32.xlu0 %v1656_v10, %s2093_s0 }
0x1526   :  { %1674 = vrot.lane.b32.xlu1 %v1662_v11, %s2091_s2 }
0x1590   :  { %v1665_v12 = vpop.permute.xlu0 %1664 }
0x1591   :  { %1667 = vst.msk [vmem:[#allocation2] sm:$0xff] %vm43_vm0, %v1665_v12 }
0x1594   :  { %v1687_v6 = vpop.permute.xlu1 %1686  ;;  %v1680_v0 = vpop.permute.xlu0 %1679 }
0x1595   :  { %v1689_v8 = vsel %vm43_vm0, %v1665_v12, %v1687_v6  ;;  %1682 = vst.msk [vmem:[#allocation5] sm:$0xff] %vm43_vm0, %v1680_v0 }
0x1596   :  { %1691 = vst.msk [vmem:[%s2518_s4] sm:$0xff] %vm1690_vm2, %v1689_v8 }
0x1598   :  { %v1675_v13 = vpop.permute.xlu1 %1674 }
0x1599   :  { %1677 = vst.msk [vmem:[#allocation4] sm:$0xff] %vm43_vm0, %v1675_v13 }

// kernel: encoder_for_classification_forward.2
= control target key start
LH: loop header
LB: loop body
LE: loop exit
PB: predicated region body
PF: predicated region fallthrough
CT: control target
= control target key end

     0   :  { %vm61_vm0 = vcmask 261120   ;;  %v2228_v2 = vmov 0.0   ;;  %s2728_s0 = inlined_call_operand.vmem [shape: f32[8,8,128], index: 0, kind: input, shape index: {}]   ;;  %s2729_s1 = inlined_call_operand.vmem [shape: f32[8,8,128], index: 1, kind: input, shape index: {}]   ;;  %s2730_s2 = inlined_call_operand.vmem [shape: f32[32,128], index: 2, kind: input, shape index: {}]   ;;  %s2731_s3 = inlined_call_operand.vmem [shape: f32[32,128], index: 3, kind: input, shape index: {}]   ;;  %s2732_s4 = inlined_call_operand.vmem [shape: f32[8,8,32], index: 4, kind: output, shape index: {0}]   ;;  %s2733_s5 = inlined_call_operand.vmem [shape: f32[8,8,32], index: 5, kind: output, shape index: {1}]   ;;  %s2734_s6 = inlined_call_operand.hbm [shape: f32[8,64], index: 6, kind: output, shape index: {2}]  }
   0x1   :  { %v2272_v0 = vld [vmem:[%s2730_s2 + $0x18] sm:$0xff]  ;;  %1928 = vmatprep.subr.mxu0 %v2228_v2  ;;  %1939 = vmatprep.subr.mxu1 %v2228_v2  ;;  %v2284_v3 = vld [vmem:[%s2730_s2 + $0x10] sm:$0xff]  ;;  %62 = vst.msk [vmem:[#allocation2] sm:$0xff] %vm61_vm0, %v2228_v2  ;;  %63 = vst.msk [vmem:[#allocation3] sm:$0xff] %vm61_vm0, %v2228_v2 }
   0x2   :  { %v2277_v1 = vld [vmem:[%s2731_s3 + $0x18] sm:$0xff]  ;;  %v2289_v4 = vld [vmem:[%s2731_s3 + $0x10] sm:$0xff]  ;;  %64 = vst.msk [vmem:[#allocation4] sm:$0xff] %vm61_vm0, %v2228_v2  ;;  %65 = vst.msk [vmem:[#allocation5] sm:$0xff] %vm61_vm0, %v2228_v2  ;;  %1929 = vmatpush3.msra.mxu0 %v2272_v0 }
   0x3   :  { %1940 = vmatpush3.msra.mxu1 %v2277_v1  ;;  %1930 = vmatprep.subr.mxu0 %v2228_v2  ;;  %v2306_v5 = vld [vmem:[%s2730_s2 + $0x8] sm:$0xff] }
   0x4   :  { %1941 = vmatprep.subr.mxu1 %v2228_v2 }
   0x5   :  { %12 = vsyncpa [#allocation7], 0  ;;  %1931 = vmatpush3.msra.mxu0 %v2284_v3  ;;  %1942 = vmatpush3.msra.mxu1 %v2289_v4  ;;  %v2313_v6 = vld [vmem:[%s2731_s3 + $0x8] sm:$0xff]  ;;  %v2320_v7 = vld [vmem:[%s2730_s2] sm:$0xff]  ;;  %vm2229_vm1 = vmmov 0   ;;  %s2230_s2 = smov 32  }
   0x6   :  { %1932 = vmatprep.subr.mxu0 %v2228_v2  ;;  %1943 = vmatprep.subr.mxu1 %v2228_v2  ;;  %v2328_v8 = vld [vmem:[%s2731_s3] sm:$0xff]  ;;  %v1805_v15 = vld [vmem:[%s2729_s1 + $0x38] sm:$0xff]  ;;  %s2231_s16 = smov 64   ;;  %v1808_v51 = vld [vmem:[%s2728_s0 + $0x8] sm:$0xff]  ;;  %s2233_s26 = smov [#allocation6]   ;;  %vm1752_vm2 = vcmask 523264  }
   0x7   :  { %1933 = vmatpush3.msra.mxu0 %v2306_v5  ;;  %1936 = vmatprep.mubr.msk.f32.mxu0 %vm2229_vm1, %v2228_v2  ;;  %v78_v13 = vld [vmem:[%s2728_s0] sm:$0xff]  ;;  %v1811_v55 = vld [vmem:[%s2729_s1 + $0x30] sm:$0xff]  ;;  %s1772_s27 = sshll.u32 %s2233_s26, 4  ;;  %s1773_s27 = int_to_ptr.vmem [resolvable:$true] %s1772_s27 }
   0x8   :  { %1934 = vmatprep.subr.mxu0 %v2228_v2  ;;  %1944 = vmatpush3.msra.mxu1 %v2313_v6  ;;  %v74_v9 = vld [vmem:[#allocation2] sm:$0xff]  ;;  %v75_v11 = vld [vmem:[#allocation3] sm:$0xff]  ;;  %s2206_s28 = scalar_lea.vmem %s1773_s27, 128  ;;  %p2211_p1 = scmp.lt.s32.totalorder %s1773_s27, %s1773_s27 }
   0x9   :  { %1935 = vmatpush3.msra.mxu0 %v2320_v7  ;;  %1945 = vmatprep.subr.mxu1 %v2228_v2  ;;  %v76_v10 = vld [vmem:[#allocation4] sm:$0xff]  ;;  %v77_v12 = vld [vmem:[#allocation5] sm:$0xff]  ;;  %p2207_p0 = scmp.ne.s32.totalorder %s1773_s27, %s2206_s28  ;;  %p2212_p2 = scmp.lt.s32.totalorder %s2206_s28, %s2206_s28 }
   0xa   :  { %1937 = vmatmul.mubr.msk.f32.vlgmr.msra.gmra.mxu0 %vm61_vm0, %v74_v9  ;;  %1946 = vmatpush3.msra.mxu1 %v2328_v8 }
   0xb   :  { %1947 = vmatprep.mubr.msk.f32.mxu1 %vm2229_vm1, %v2228_v2  ;;  %160 = vrot.lane.b32.xlu1 %v75_v11, %s2230_s2  ;;  %p2213_p3 = por %p2212_p2, %p2211_p1 }
   0xc   :  { %1948 = vmatmul.mubr.msk.f32.vlgmr.msra.gmra.mxu1 %vm61_vm0, %v76_v10  ;;  %1950 = vmatprep.subr.mxu0 %v2228_v2 }
   0xd   :  { %1951 = vmatpush3.msra.mxu0 %v2272_v0  ;;  %1961 = vmatprep.subr.mxu1 %v2228_v2  ;;  %p2214_p4 = pnand %p2213_p3, %p2207_p0 }
   0xe   :  { %1952 = vmatprep.subr.mxu0 %v2228_v2  ;;  %1962 = vmatpush3.msra.mxu1 %v2277_v1 }
   0xf   :  { %267 = vrot.lane.b32.xlu1 %v77_v12, %s2230_s2  ;;  %1953 = vmatpush3.msra.mxu0 %v2284_v3 }
  0x10   :  { %1954 = vmatprep.subr.mxu0 %v2228_v2  ;;  %1963 = vmatprep.subr.mxu1 %v2228_v2 }
  0x11   :  { %1955 = vmatpush3.msra.mxu0 %v2306_v5  ;;  %1958 = vmatprep.mubr.msk.f32.mxu0 %vm2229_vm1, %v2228_v2 }
  0x12   :  { %1956 = vmatprep.subr.mxu0 %v2228_v2  ;;  %1964 = vmatpush3.msra.mxu1 %v2289_v4 }
  0x13   :  { %1957 = vmatpush3.msra.mxu0 %v2320_v7  ;;  %1965 = vmatprep.subr.mxu1 %v2228_v2 }
  0x14   :  { %1966 = vmatpush3.msra.mxu1 %v2313_v6  ;;  %1969 = vmatprep.mubr.msk.f32.mxu1 %vm2229_vm1, %v2228_v2 }
  0x15   :  { %1967 = vmatprep.subr.mxu1 %v2228_v2  ;;  %1972 = vmatprep.subr.mxu0 %v2228_v2 }
  0x16   :  { %1968 = vmatpush3.msra.mxu1 %v2328_v8 }
  0x17   :  { %1983 = vmatprep.subr.mxu1 %v2228_v2 }
  0x7d   :  { %v161_v35 = vpop.permute.xlu1 %160 }
  0x81   :  { %v268_v37 = vpop.permute.xlu1 %267 }
  0xca   :  { %v149_v14 = vpop.f32.mrf.mxu0 }
  0xcb   :  { %v153_v16 = vadd.f32 %v149_v14, %v78_v13 }
  0xcc   :  { %v1938_v17 = vpop.f32.mrf.mxu0  ;;  %v256_v18 = vpop.f32.mrf.mxu1 }
  0xcd   :  { %2110 = vtanh.f32 %v153_v16  ;;  %v260_v19 = vadd.f32 %v1805_v15, %v256_v18  ;;  %v154_v23 = vmul.f32 0.5, %v153_v16 }
  0xce   :  { %v1949_v20 = vpop.f32.mrf.mxu1 }
  0xcf   :  { %2112 = vtanh.f32 %v260_v19  ;;  %v261_v24 = vmul.f32 0.5, %v260_v19 }
  0xd0   :  { %2114 = vtanh.f32 %v154_v23 }
  0xd1   :  { %2116 = vtanh.f32 %v261_v24 }
  0xda   :  { %v2111_v21 = vpop.eup %2110 }
  0xdb   :  { %165 = vrot.lane.b32.xlu0 %v2111_v21, %s2231_s16 }
  0xdc   :  { %v2113_v22 = vpop.eup %2112 }
  0xdd   :  { %v2115_v25 = vpop.eup %2114 }
  0xde   :  { %v156_v26 = vmul.f32 0.5, %v2115_v25  ;;  %v2117_v27 = vpop.eup %2116 }
  0xdf   :  { %272 = vrot.lane.b32.xlu0 %v2113_v22, %s2231_s16  ;;  %v263_v29 = vmul.f32 0.5, %v2117_v27 }
  0xe0   :  { %v157_v28 = vadd.f32 0.5, %v156_v26 }
  0xe1   :  { %v264_v32 = vadd.f32 0.5, %v263_v29 }
  0xe2   :  { %v163_v36 = vmul.f32 %v161_v35, %v157_v28 }
  0xe3   :  { %v270_v40 = vmul.f32 %v268_v37, %v264_v32 }
 0x14d   :  { %v166_v30 = vpop.permute.xlu0 %165 }
 0x14e   :  { %v168_v31 = vmul.f32 %v166_v30, %v157_v28 }
 0x150   :  { %170 = vrot.lane.b32.xlu0 %v168_v31, %s2230_s2 }
 0x151   :  { %v273_v33 = vpop.permute.xlu0 %272 }
 0x152   :  { %v275_v34 = vmul.f32 %v273_v33, %v264_v32 }
 0x154   :  { %277 = vrot.lane.b32.xlu1 %v275_v34, %s2230_s2 }
 0x1c2   :  { %v171_v38 = vpop.permute.xlu0 %170 }
 0x1c3   :  { %v2373_v39 = vadd.f32 %v171_v38, %v163_v36  ;;  %v1817_v36 = vld [vmem:[%s2729_s1 + $0x28] sm:$0xff] }
 0x1c5   :  { %2118 = vtanh.f32 %v2373_v39 }
 0x1c6   :  { %v278_v41 = vpop.permute.xlu1 %277 }
 0x1c7   :  { %v2376_v42 = vadd.f32 %v278_v41, %v270_v40 }
 0x1c9   :  { %2120 = vtanh.f32 %v2376_v42 }
 0x1d2   :  { %v2119_v43 = vpop.eup %2118 }
 0x1d3   :  { %176 = vrot.lane.b32.xlu0 %v2119_v43, %s2231_s16 }
 0x1d6   :  { %v2121_v44 = vpop.eup %2120 }
 0x1d7   :  { %283 = vrot.lane.b32.xlu1 %v2121_v44, %s2231_s16 }
 0x245   :  { %v177_v45 = vpop.permute.xlu0 %176 }
 0x246   :  { %v179_v46 = vmul.f32 %v177_v45, %v157_v28 }
 0x248   :  { %181 = vrot.lane.b32.xlu0 %v179_v46, %s2230_s2 }
 0x249   :  { %v284_v47 = vpop.permute.xlu1 %283 }
 0x24a   :  { %v286_v48 = vmul.f32 %v284_v47, %v264_v32  ;;  %v1814_v32 = vld [vmem:[%s2728_s0 + $0x10] sm:$0xff] }
 0x24c   :  { %288 = vrot.lane.b32.xlu1 %v286_v48, %s2230_s2 }
 0x2ba   :  { %v182_v49 = vpop.permute.xlu0 %181 }
 0x2bb   :  { %184 = vst.msk [vmem:[%s2732_s4] sm:$0xff] %vm61_vm0, %v182_v49  ;;  %1959 = vmatmul.mubr.msk.f32.vlgmr.msra.gmra.mxu0 %vm61_vm0, %v182_v49 }
 0x2bc   :  { %1973 = vmatpush3.msra.mxu0 %v2272_v0  ;;  %1980 = vmatprep.mubr.msk.f32.mxu0 %vm2229_vm1, %v2228_v2 }
 0x2bd   :  { %1974 = vmatprep.subr.mxu0 %v2228_v2 }
 0x2be   :  { %v289_v50 = vpop.permute.xlu1 %288  ;;  %1975 = vmatpush3.msra.mxu0 %v2284_v3 }
 0x2bf   :  { %1807 = vst.msk [vmem:[%s2733_s5 + $0x38] sm:$0xff] %vm61_vm0, %v289_v50  ;;  %1970 = vmatmul.mubr.msk.f32.vlgmr.msra.gmra.mxu1 %vm61_vm0, %v289_v50  ;;  %1976 = vmatprep.subr.mxu0 %v2228_v2 }
 0x2c0   :  { %1977 = vmatpush3.msra.mxu0 %v2306_v5  ;;  %1984 = vmatpush3.msra.mxu1 %v2277_v1 }
 0x2c1   :  { %1978 = vmatprep.subr.mxu0 %v2228_v2  ;;  %1985 = vmatprep.subr.mxu1 %v2228_v2 }
 0x2c2   :  { %1979 = vmatpush3.msra.mxu0 %v2320_v7  ;;  %1986 = vmatpush3.msra.mxu1 %v2289_v4 }
 0x2c3   :  { %1987 = vmatprep.subr.mxu1 %v2228_v2  ;;  %1991 = vmatprep.mubr.msk.f32.mxu1 %vm2229_vm1, %v2228_v2 }
 0x2c4   :  { %1988 = vmatpush3.msra.mxu1 %v2313_v6  ;;  %1994 = vmatprep.subr.mxu0 %v2228_v2 }
 0x2c5   :  { %1989 = vmatprep.subr.mxu1 %v2228_v2 }
 0x2c6   :  { %1990 = vmatpush3.msra.mxu1 %v2328_v8 }
 0x2c7   :  { %2005 = vmatprep.subr.mxu1 %v2228_v2 }
 0x37b   :  { %v363_v52 = vpop.f32.mrf.mxu0 }
 0x37c   :  { %v367_v53 = vadd.f32 %v1808_v51, %v363_v52 }
 0x37d   :  { %v1960_v54 = vpop.f32.mrf.mxu0 }
 0x37e   :  { %2122 = vtanh.f32 %v367_v53  ;;  %v368_v61 = vmul.f32 0.5, %v367_v53 }
 0x37f   :  { %v466_v56 = vpop.f32.mrf.mxu1 }
 0x380   :  { %v470_v57 = vadd.f32 %v1811_v55, %v466_v56 }
 0x381   :  { %v1971_v58 = vpop.f32.mrf.mxu1 }
 0x382   :  { %2124 = vtanh.f32 %v470_v57  ;;  %v471_v62 = vmul.f32 0.5, %v470_v57 }
 0x383   :  { %2126 = vtanh.f32 %v368_v61 }
 0x384   :  { %2128 = vtanh.f32 %v471_v62 }
 0x38b   :  { %v2123_v59 = vpop.eup %2122 }
 0x38c   :  { %375 = vrot.lane.b32.xlu0 %v2123_v59, %s2231_s16 }
 0x38f   :  { %v2125_v60 = vpop.eup %2124 }
 0x390   :  { %478 = vrot.lane.b32.xlu1 %v2125_v60, %s2231_s16  ;;  %v2127_v63 = vpop.eup %2126 }
 0x391   :  { %v370_v9 = vmul.f32 0.5, %v2127_v63  ;;  %v2129_v10 = vpop.eup %2128 }
 0x392   :  { %v473_v12 = vmul.f32 0.5, %v2129_v10 }
 0x393   :  { %v371_v11 = vadd.f32 0.5, %v370_v9 }
 0x394   :  { %v474_v15 = vadd.f32 0.5, %v473_v12 }
 0x395   :  { %v373_v18 = vmul.f32 %v371_v11, %v2373_v39 }
 0x396   :  { %v476_v21 = vmul.f32 %v474_v15, %v2376_v42 }
 0x3fe   :  { %v376_v13 = vpop.permute.xlu0 %375 }
 0x3ff   :  { %v378_v14 = vmul.f32 %v376_v13, %v371_v11  ;;  %v1820_v13 = vld [vmem:[%s2728_s0 + $0x18] sm:$0xff] }
 0x401   :  { %380 = vrot.lane.b32.xlu0 %v378_v14, %s2230_s2 }
 0x402   :  { %v479_v16 = vpop.permute.xlu1 %478 }
 0x403   :  { %v481_v17 = vmul.f32 %v479_v16, %v474_v15 }
 0x405   :  { %483 = vrot.lane.b32.xlu1 %v481_v17, %s2230_s2  ;;  %v1823_v17 = vld [vmem:[%s2729_s1 + $0x20] sm:$0xff] }
 0x473   :  { %v381_v19 = vpop.permute.xlu0 %380 }
 0x474   :  { %v2424_v20 = vadd.f32 %v381_v19, %v373_v18 }
 0x476   :  { %2130 = vtanh.f32 %v2424_v20 }
 0x477   :  { %v484_v22 = vpop.permute.xlu1 %483 }
 0x478   :  { %v2428_v23 = vadd.f32 %v484_v22, %v476_v21 }
 0x47a   :  { %2132 = vtanh.f32 %v2428_v23 }
 0x483   :  { %v2131_v24 = vpop.eup %2130 }
 0x484   :  { %386 = vrot.lane.b32.xlu0 %v2131_v24, %s2231_s16 }
 0x487   :  { %v2133_v25 = vpop.eup %2132 }
 0x488   :  { %489 = vrot.lane.b32.xlu1 %v2133_v25, %s2231_s16 }
 0x4f6   :  { %v387_v26 = vpop.permute.xlu0 %386 }
 0x4f7   :  { %v389_v27 = vmul.f32 %v387_v26, %v371_v11 }
 0x4f9   :  { %391 = vrot.lane.b32.xlu0 %v389_v27, %s2230_s2 }
 0x4fa   :  { %v490_v28 = vpop.permute.xlu1 %489 }
 0x4fb   :  { %v492_v29 = vmul.f32 %v490_v28, %v474_v15 }
 0x4fd   :  { %494 = vrot.lane.b32.xlu1 %v492_v29, %s2230_s2 }
 0x56b   :  { %v392_v30 = vpop.permute.xlu0 %391 }
 0x56c   :  { %1810 = vst.msk [vmem:[%s2732_s4 + $0x8] sm:$0xff] %vm61_vm0, %v392_v30  ;;  %1981 = vmatmul.mubr.msk.f32.vlgmr.msra.gmra.mxu0 %vm61_vm0, %v392_v30 }
 0x56d   :  { %1995 = vmatpush3.msra.mxu0 %v2272_v0  ;;  %2002 = vmatprep.mubr.msk.f32.mxu0 %vm2229_vm1, %v2228_v2 }
 0x56e   :  { %1996 = vmatprep.subr.mxu0 %v2228_v2 }
 0x56f   :  { %v495_v31 = vpop.permute.xlu1 %494  ;;  %1997 = vmatpush3.msra.mxu0 %v2284_v3 }
 0x570   :  { %1813 = vst.msk [vmem:[%s2733_s5 + $0x30] sm:$0xff] %vm61_vm0, %v495_v31  ;;  %1992 = vmatmul.mubr.msk.f32.vlgmr.msra.gmra.mxu1 %vm61_vm0, %v495_v31  ;;  %1998 = vmatprep.subr.mxu0 %v2228_v2 }
 0x571   :  { %1999 = vmatpush3.msra.mxu0 %v2306_v5  ;;  %2006 = vmatpush3.msra.mxu1 %v2277_v1 }
 0x572   :  { %2000 = vmatprep.subr.mxu0 %v2228_v2  ;;  %2007 = vmatprep.subr.mxu1 %v2228_v2 }
 0x573   :  { %2001 = vmatpush3.msra.mxu0 %v2320_v7  ;;  %2008 = vmatpush3.msra.mxu1 %v2289_v4 }
 0x574   :  { %2009 = vmatprep.subr.mxu1 %v2228_v2  ;;  %2013 = vmatprep.mubr.msk.f32.mxu1 %vm2229_vm1, %v2228_v2 }
 0x575   :  { %2010 = vmatpush3.msra.mxu1 %v2313_v6  ;;  %2016 = vmatprep.subr.mxu0 %v2228_v2 }
 0x576   :  { %2011 = vmatprep.subr.mxu1 %v2228_v2 }
 0x577   :  { %2012 = vmatpush3.msra.mxu1 %v2328_v8 }
 0x578   :  { %2027 = vmatprep.subr.mxu1 %v2228_v2 }
 0x62c   :  { %v569_v33 = vpop.f32.mrf.mxu0 }
 0x62d   :  { %v573_v34 = vadd.f32 %v1814_v32, %v569_v33 }
 0x62e   :  { %v1982_v35 = vpop.f32.mrf.mxu0 }
 0x62f   :  { %2134 = vtanh.f32 %v573_v34  ;;  %v574_v42 = vmul.f32 0.5, %v573_v34 }
 0x630   :  { %v672_v37 = vpop.f32.mrf.mxu1 }
 0x631   :  { %v676_v38 = vadd.f32 %v1817_v36, %v672_v37 }
 0x632   :  { %v1993_v39 = vpop.f32.mrf.mxu1 }
 0x633   :  { %2136 = vtanh.f32 %v676_v38  ;;  %v677_v43 = vmul.f32 0.5, %v676_v38 }
 0x634   :  { %2138 = vtanh.f32 %v574_v42 }
 0x635   :  { %2140 = vtanh.f32 %v677_v43 }
 0x63c   :  { %v2135_v40 = vpop.eup %2134 }
 0x63d   :  { %581 = vrot.lane.b32.xlu0 %v2135_v40, %s2231_s16 }
 0x640   :  { %v2137_v41 = vpop.eup %2136 }
 0x641   :  { %684 = vrot.lane.b32.xlu1 %v2137_v41, %s2231_s16  ;;  %v2139_v44 = vpop.eup %2138 }
 0x642   :  { %v576_v45 = vmul.f32 0.5, %v2139_v44  ;;  %v2141_v46 = vpop.eup %2140 }
 0x643   :  { %v679_v48 = vmul.f32 0.5, %v2141_v46 }
 0x644   :  { %v577_v47 = vadd.f32 0.5, %v576_v45 }
 0x645   :  { %v680_v51 = vadd.f32 0.5, %v679_v48 }
 0x646   :  { %v579_v54 = vmul.f32 %v577_v47, %v2424_v20 }
 0x647   :  { %v682_v57 = vmul.f32 %v680_v51, %v2428_v23 }
 0x6af   :  { %v582_v49 = vpop.permute.xlu0 %581 }
 0x6b0   :  { %v584_v50 = vmul.f32 %v582_v49, %v577_v47  ;;  %v1826_v49 = vld [vmem:[%s2728_s0 + $0x20] sm:$0xff] }
 0x6b2   :  { %586 = vrot.lane.b32.xlu0 %v584_v50, %s2230_s2 }
 0x6b3   :  { %v685_v52 = vpop.permute.xlu1 %684 }
 0x6b4   :  { %v687_v53 = vmul.f32 %v685_v52, %v680_v51 }
 0x6b6   :  { %689 = vrot.lane.b32.xlu1 %v687_v53, %s2230_s2  ;;  %v1829_v53 = vld [vmem:[%s2729_s1 + $0x18] sm:$0xff] }
 0x724   :  { %v587_v55 = vpop.permute.xlu0 %586 }
 0x725   :  { %v2476_v56 = vadd.f32 %v587_v55, %v579_v54 }
 0x727   :  { %2142 = vtanh.f32 %v2476_v56 }
 0x728   :  { %v690_v58 = vpop.permute.xlu1 %689 }
 0x729   :  { %v2480_v59 = vadd.f32 %v690_v58, %v682_v57 }
 0x72b   :  { %2144 = vtanh.f32 %v2480_v59 }
 0x734   :  { %v2143_v60 = vpop.eup %2142 }
 0x735   :  { %592 = vrot.lane.b32.xlu0 %v2143_v60, %s2231_s16 }
 0x738   :  { %v2145_v61 = vpop.eup %2144 }
 0x739   :  { %695 = vrot.lane.b32.xlu1 %v2145_v61, %s2231_s16 }
 0x7a7   :  { %v593_v62 = vpop.permute.xlu0 %592 }
 0x7a8   :  { %v595_v63 = vmul.f32 %v593_v62, %v577_v47 }
 0x7aa   :  { %597 = vrot.lane.b32.xlu0 %v595_v63, %s2230_s2 }
 0x7ab   :  { %v696_v9 = vpop.permute.xlu1 %695 }
 0x7ac   :  { %v698_v10 = vmul.f32 %v696_v9, %v680_v51 }
 0x7ae   :  { %700 = vrot.lane.b32.xlu1 %v698_v10, %s2230_s2 }
 0x81c   :  { %v598_v11 = vpop.permute.xlu0 %597 }
 0x81d   :  { %1816 = vst.msk [vmem:[%s2732_s4 + $0x10] sm:$0xff] %vm61_vm0, %v598_v11  ;;  %2003 = vmatmul.mubr.msk.f32.vlgmr.msra.gmra.mxu0 %vm61_vm0, %v598_v11 }
 0x81e   :  { %2017 = vmatpush3.msra.mxu0 %v2272_v0  ;;  %2024 = vmatprep.mubr.msk.f32.mxu0 %vm2229_vm1, %v2228_v2 }
 0x81f   :  { %2018 = vmatprep.subr.mxu0 %v2228_v2 }
 0x820   :  { %v701_v12 = vpop.permute.xlu1 %700  ;;  %2019 = vmatpush3.msra.mxu0 %v2284_v3 }
 0x821   :  { %1819 = vst.msk [vmem:[%s2733_s5 + $0x28] sm:$0xff] %vm61_vm0, %v701_v12  ;;  %2014 = vmatmul.mubr.msk.f32.vlgmr.msra.gmra.mxu1 %vm61_vm0, %v701_v12  ;;  %2020 = vmatprep.subr.mxu0 %v2228_v2 }
 0x822   :  { %2021 = vmatpush3.msra.mxu0 %v2306_v5  ;;  %2028 = vmatpush3.msra.mxu1 %v2277_v1 }
 0x823   :  { %2022 = vmatprep.subr.mxu0 %v2228_v2  ;;  %2029 = vmatprep.subr.mxu1 %v2228_v2 }
 0x824   :  { %2023 = vmatpush3.msra.mxu0 %v2320_v7  ;;  %2030 = vmatpush3.msra.mxu1 %v2289_v4 }
 0x825   :  { %2031 = vmatprep.subr.mxu1 %v2228_v2  ;;  %2035 = vmatprep.mubr.msk.f32.mxu1 %vm2229_vm1, %v2228_v2 }
 0x826   :  { %2032 = vmatpush3.msra.mxu1 %v2313_v6  ;;  %2038 = vmatprep.subr.mxu0 %v2228_v2 }
 0x827   :  { %2033 = vmatprep.subr.mxu1 %v2228_v2 }
 0x828   :  { %2034 = vmatpush3.msra.mxu1 %v2328_v8 }
 0x829   :  { %2049 = vmatprep.subr.mxu1 %v2228_v2 }
 0x8dd   :  { %v775_v14 = vpop.f32.mrf.mxu0 }
 0x8de   :  { %v779_v15 = vadd.f32 %v1820_v13, %v775_v14 }
 0x8df   :  { %v2004_v16 = vpop.f32.mrf.mxu0 }
 0x8e0   :  { %2146 = vtanh.f32 %v779_v15  ;;  %v780_v23 = vmul.f32 0.5, %v779_v15 }
 0x8e1   :  { %v878_v18 = vpop.f32.mrf.mxu1 }
 0x8e2   :  { %v882_v19 = vadd.f32 %v1823_v17, %v878_v18 }
 0x8e3   :  { %v2015_v20 = vpop.f32.mrf.mxu1 }
 0x8e4   :  { %2148 = vtanh.f32 %v882_v19  ;;  %v883_v24 = vmul.f32 0.5, %v882_v19 }
 0x8e5   :  { %2150 = vtanh.f32 %v780_v23 }
 0x8e6   :  { %2152 = vtanh.f32 %v883_v24 }
 0x8ed   :  { %v2147_v21 = vpop.eup %2146 }
 0x8ee   :  { %787 = vrot.lane.b32.xlu0 %v2147_v21, %s2231_s16 }
 0x8f1   :  { %v2149_v22 = vpop.eup %2148 }
 0x8f2   :  { %890 = vrot.lane.b32.xlu1 %v2149_v22, %s2231_s16  ;;  %v2151_v25 = vpop.eup %2150 }
 0x8f3   :  { %v782_v26 = vmul.f32 0.5, %v2151_v25  ;;  %v2153_v27 = vpop.eup %2152 }
 0x8f4   :  { %v885_v29 = vmul.f32 0.5, %v2153_v27 }
 0x8f5   :  { %v783_v28 = vadd.f32 0.5, %v782_v26 }
 0x8f6   :  { %v886_v32 = vadd.f32 0.5, %v885_v29 }
 0x8f7   :  { %v785_v35 = vmul.f32 %v783_v28, %v2476_v56 }
 0x8f8   :  { %v888_v38 = vmul.f32 %v886_v32, %v2480_v59 }
 0x960   :  { %v788_v30 = vpop.permute.xlu0 %787 }
 0x961   :  { %v790_v31 = vmul.f32 %v788_v30, %v783_v28  ;;  %v1832_v30 = vld [vmem:[%s2728_s0 + $0x28] sm:$0xff] }
 0x963   :  { %792 = vrot.lane.b32.xlu0 %v790_v31, %s2230_s2 }
 0x964   :  { %v891_v33 = vpop.permute.xlu1 %890 }
 0x965   :  { %v893_v34 = vmul.f32 %v891_v33, %v886_v32 }
 0x967   :  { %895 = vrot.lane.b32.xlu1 %v893_v34, %s2230_s2  ;;  %v1835_v34 = vld [vmem:[%s2729_s1 + $0x10] sm:$0xff] }
 0x9d5   :  { %v793_v36 = vpop.permute.xlu0 %792 }
 0x9d6   :  { %v2528_v37 = vadd.f32 %v793_v36, %v785_v35 }
 0x9d8   :  { %2154 = vtanh.f32 %v2528_v37 }
 0x9d9   :  { %v896_v39 = vpop.permute.xlu1 %895 }
 0x9da   :  { %v2532_v40 = vadd.f32 %v896_v39, %v888_v38 }
 0x9dc   :  { %2156 = vtanh.f32 %v2532_v40 }
 0x9e5   :  { %v2155_v41 = vpop.eup %2154 }
 0x9e6   :  { %798 = vrot.lane.b32.xlu0 %v2155_v41, %s2231_s16 }
 0x9e9   :  { %v2157_v42 = vpop.eup %2156 }
 0x9ea   :  { %901 = vrot.lane.b32.xlu1 %v2157_v42, %s2231_s16 }
 0xa58   :  { %v799_v43 = vpop.permute.xlu0 %798 }
 0xa59   :  { %v801_v44 = vmul.f32 %v799_v43, %v783_v28 }
 0xa5b   :  { %803 = vrot.lane.b32.xlu0 %v801_v44, %s2230_s2 }
 0xa5c   :  { %v902_v45 = vpop.permute.xlu1 %901 }
 0xa5d   :  { %v904_v46 = vmul.f32 %v902_v45, %v886_v32 }
 0xa5f   :  { %906 = vrot.lane.b32.xlu1 %v904_v46, %s2230_s2 }
 0xacd   :  { %v804_v47 = vpop.permute.xlu0 %803 }
 0xace   :  { %1822 = vst.msk [vmem:[%s2732_s4 + $0x18] sm:$0xff] %vm61_vm0, %v804_v47  ;;  %2025 = vmatmul.mubr.msk.f32.vlgmr.msra.gmra.mxu0 %vm61_vm0, %v804_v47 }
 0xacf   :  { %2039 = vmatpush3.msra.mxu0 %v2272_v0  ;;  %2046 = vmatprep.mubr.msk.f32.mxu0 %vm2229_vm1, %v2228_v2 }
 0xad0   :  { %2040 = vmatprep.subr.mxu0 %v2228_v2 }
 0xad1   :  { %v907_v48 = vpop.permute.xlu1 %906  ;;  %2041 = vmatpush3.msra.mxu0 %v2284_v3 }
 0xad2   :  { %1825 = vst.msk [vmem:[%s2733_s5 + $0x20] sm:$0xff] %vm61_vm0, %v907_v48  ;;  %2036 = vmatmul.mubr.msk.f32.vlgmr.msra.gmra.mxu1 %vm61_vm0, %v907_v48  ;;  %2042 = vmatprep.subr.mxu0 %v2228_v2 }
 0xad3   :  { %2043 = vmatpush3.msra.mxu0 %v2306_v5  ;;  %2050 = vmatpush3.msra.mxu1 %v2277_v1 }
 0xad4   :  { %2044 = vmatprep.subr.mxu0 %v2228_v2  ;;  %2051 = vmatprep.subr.mxu1 %v2228_v2 }
 0xad5   :  { %2045 = vmatpush3.msra.mxu0 %v2320_v7  ;;  %2052 = vmatpush3.msra.mxu1 %v2289_v4 }
 0xad6   :  { %2053 = vmatprep.subr.mxu1 %v2228_v2  ;;  %2057 = vmatprep.mubr.msk.f32.mxu1 %vm2229_vm1, %v2228_v2 }
 0xad7   :  { %2054 = vmatpush3.msra.mxu1 %v2313_v6  ;;  %2060 = vmatprep.subr.mxu0 %v2228_v2 }
 0xad8   :  { %2055 = vmatprep.subr.mxu1 %v2228_v2 }
 0xad9   :  { %2056 = vmatpush3.msra.mxu1 %v2328_v8 }
 0xada   :  { %2071 = vmatprep.subr.mxu1 %v2228_v2 }
 0xb8e   :  { %v981_v50 = vpop.f32.mrf.mxu0 }
 0xb8f   :  { %v985_v51 = vadd.f32 %v1826_v49, %v981_v50 }
 0xb90   :  { %v2026_v52 = vpop.f32.mrf.mxu0 }
 0xb91   :  { %2158 = vtanh.f32 %v985_v51  ;;  %v986_v59 = vmul.f32 0.5, %v985_v51 }
 0xb92   :  { %v1084_v54 = vpop.f32.mrf.mxu1 }
 0xb93   :  { %v1088_v55 = vadd.f32 %v1829_v53, %v1084_v54 }
 0xb94   :  { %v2037_v56 = vpop.f32.mrf.mxu1 }
 0xb95   :  { %2160 = vtanh.f32 %v1088_v55  ;;  %v1089_v60 = vmul.f32 0.5, %v1088_v55 }
 0xb96   :  { %2162 = vtanh.f32 %v986_v59 }
 0xb97   :  { %2164 = vtanh.f32 %v1089_v60 }
 0xb9e   :  { %v2159_v57 = vpop.eup %2158 }
 0xb9f   :  { %993 = vrot.lane.b32.xlu0 %v2159_v57, %s2231_s16 }
 0xba2   :  { %v2161_v58 = vpop.eup %2160 }
 0xba3   :  { %1096 = vrot.lane.b32.xlu1 %v2161_v58, %s2231_s16  ;;  %v2163_v61 = vpop.eup %2162 }
 0xba4   :  { %v988_v62 = vmul.f32 0.5, %v2163_v61  ;;  %v2165_v63 = vpop.eup %2164 }
 0xba5   :  { %v1091_v10 = vmul.f32 0.5, %v2165_v63 }
 0xba6   :  { %v989_v9 = vadd.f32 0.5, %v988_v62 }
 0xba7   :  { %v1092_v13 = vadd.f32 0.5, %v1091_v10 }
 0xba8   :  { %v991_v16 = vmul.f32 %v989_v9, %v2528_v37 }
 0xba9   :  { %v1094_v19 = vmul.f32 %v1092_v13, %v2532_v40 }
 0xc11   :  { %v994_v11 = vpop.permute.xlu0 %993 }
 0xc12   :  { %v996_v12 = vmul.f32 %v994_v11, %v989_v9 }
 0xc14   :  { %998 = vrot.lane.b32.xlu0 %v996_v12, %s2230_s2 }
 0xc15   :  { %v1097_v14 = vpop.permute.xlu1 %1096 }
 0xc16   :  { %v1099_v15 = vmul.f32 %v1097_v14, %v1092_v13 }
 0xc18   :  { %1101 = vrot.lane.b32.xlu1 %v1099_v15, %s2230_s2 }
 0xc86   :  { %v999_v17 = vpop.permute.xlu0 %998 }
 0xc87   :  { %v2580_v18 = vadd.f32 %v999_v17, %v991_v16 }
 0xc89   :  { %2166 = vtanh.f32 %v2580_v18 }
 0xc8a   :  { %v1102_v20 = vpop.permute.xlu1 %1101 }
 0xc8b   :  { %v2584_v21 = vadd.f32 %v1102_v20, %v1094_v19 }
 0xc8d   :  { %2168 = vtanh.f32 %v2584_v21 }
 0xc96   :  { %v2167_v22 = vpop.eup %2166 }
 0xc97   :  { %1004 = vrot.lane.b32.xlu0 %v2167_v22, %s2231_s16 }
 0xc9a   :  { %v2169_v23 = vpop.eup %2168 }
 0xc9b   :  { %1107 = vrot.lane.b32.xlu1 %v2169_v23, %s2231_s16 }
 0xd09   :  { %v1005_v24 = vpop.permute.xlu0 %1004 }
 0xd0a   :  { %v1007_v25 = vmul.f32 %v1005_v24, %v989_v9 }
 0xd0c   :  { %1009 = vrot.lane.b32.xlu0 %v1007_v25, %s2230_s2 }
 0xd0d   :  { %v1108_v26 = vpop.permute.xlu1 %1107 }
 0xd0e   :  { %v1110_v27 = vmul.f32 %v1108_v26, %v1092_v13 }
 0xd10   :  { %1112 = vrot.lane.b32.xlu1 %v1110_v27, %s2230_s2 }
 0xd7e   :  { %v1010_v28 = vpop.permute.xlu0 %1009 }
 0xd7f   :  { %1828 = vst.msk [vmem:[%s2732_s4 + $0x20] sm:$0xff] %vm61_vm0, %v1010_v28  ;;  %2047 = vmatmul.mubr.msk.f32.vlgmr.msra.gmra.mxu0 %vm61_vm0, %v1010_v28 }
 0xd80   :  { %2061 = vmatpush3.msra.mxu0 %v2272_v0  ;;  %2068 = vmatprep.mubr.msk.f32.mxu0 %vm2229_vm1, %v2228_v2 }
 0xd81   :  { %2062 = vmatprep.subr.mxu0 %v2228_v2 }
 0xd82   :  { %v1113_v29 = vpop.permute.xlu1 %1112  ;;  %2063 = vmatpush3.msra.mxu0 %v2284_v3 }
 0xd83   :  { %1831 = vst.msk [vmem:[%s2733_s5 + $0x18] sm:$0xff] %vm61_vm0, %v1113_v29  ;;  %2058 = vmatmul.mubr.msk.f32.vlgmr.msra.gmra.mxu1 %vm61_vm0, %v1113_v29  ;;  %2064 = vmatprep.subr.mxu0 %v2228_v2 }
 0xd84   :  { %2065 = vmatpush3.msra.mxu0 %v2306_v5  ;;  %2072 = vmatpush3.msra.mxu1 %v2277_v1 }
 0xd85   :  { %2066 = vmatprep.subr.mxu0 %v2228_v2  ;;  %2073 = vmatprep.subr.mxu1 %v2228_v2 }
 0xd86   :  { %2067 = vmatpush3.msra.mxu0 %v2320_v7  ;;  %2074 = vmatpush3.msra.mxu1 %v2289_v4 }
 0xd87   :  { %2075 = vmatprep.subr.mxu1 %v2228_v2  ;;  %2079 = vmatprep.mubr.msk.f32.mxu1 %vm2229_vm1, %v2228_v2 }
 0xd88   :  { %2076 = vmatpush3.msra.mxu1 %v2313_v6  ;;  %2082 = vmatprep.subr.mxu0 %v2228_v2 }
 0xd89   :  { %2077 = vmatprep.subr.mxu1 %v2228_v2 }
 0xd8a   :  { %2078 = vmatpush3.msra.mxu1 %v2328_v8 }
 0xd8b   :  { %2093 = vmatprep.subr.mxu1 %v2228_v2 }
 0xe3f   :  { %v1187_v31 = vpop.f32.mrf.mxu0 }
 0xe40   :  { %v1191_v32 = vadd.f32 %v1832_v30, %v1187_v31 }
 0xe41   :  { %v2048_v33 = vpop.f32.mrf.mxu0 }
 0xe42   :  { %2170 = vtanh.f32 %v1191_v32  ;;  %v1192_v40 = vmul.f32 0.5, %v1191_v32 }
 0xe43   :  { %v1290_v35 = vpop.f32.mrf.mxu1 }
 0xe44   :  { %v1294_v36 = vadd.f32 %v1835_v34, %v1290_v35 }
 0xe45   :  { %v2059_v37 = vpop.f32.mrf.mxu1 }
 0xe46   :  { %2172 = vtanh.f32 %v1294_v36  ;;  %v1295_v41 = vmul.f32 0.5, %v1294_v36 }
 0xe47   :  { %2174 = vtanh.f32 %v1192_v40 }
 0xe48   :  { %2176 = vtanh.f32 %v1295_v41 }
 0xe4f   :  { %v2171_v38 = vpop.eup %2170 }
 0xe50   :  { %1199 = vrot.lane.b32.xlu0 %v2171_v38, %s2231_s16  ;;  %v1844_v38 = vld [vmem:[%s2728_s0 + $0x38] sm:$0xff] }
 0xe53   :  { %v2173_v39 = vpop.eup %2172 }
 0xe54   :  { %1302 = vrot.lane.b32.xlu1 %v2173_v39, %s2231_s16  ;;  %v2175_v42 = vpop.eup %2174 }
 0xe55   :  { %v1194_v43 = vmul.f32 0.5, %v2175_v42  ;;  %v2177_v44 = vpop.eup %2176  ;;  %v1632_v42 = vld [vmem:[%s2729_s1] sm:$0xff] }
 0xe56   :  { %v1297_v46 = vmul.f32 0.5, %v2177_v44 }
 0xe57   :  { %v1195_v45 = vadd.f32 0.5, %v1194_v43 }
 0xe58   :  { %v1298_v49 = vadd.f32 0.5, %v1297_v46 }
 0xe59   :  { %v1197_v52 = vmul.f32 %v1195_v45, %v2580_v18 }
 0xe5a   :  { %v1300_v55 = vmul.f32 %v1298_v49, %v2584_v21 }
 0xec2   :  { %v1200_v47 = vpop.permute.xlu0 %1199 }
 0xec3   :  { %v1202_v48 = vmul.f32 %v1200_v47, %v1195_v45 }
 0xec5   :  { %1204 = vrot.lane.b32.xlu0 %v1202_v48, %s2230_s2 }
 0xec6   :  { %v1303_v50 = vpop.permute.xlu1 %1302 }
 0xec7   :  { %v1305_v51 = vmul.f32 %v1303_v50, %v1298_v49 }
 0xec9   :  { %1307 = vrot.lane.b32.xlu1 %v1305_v51, %s2230_s2 }
 0xf37   :  { %v1205_v53 = vpop.permute.xlu0 %1204 }
 0xf38   :  { %v2632_v54 = vadd.f32 %v1205_v53, %v1197_v52 }
 0xf3a   :  { %2178 = vtanh.f32 %v2632_v54 }
 0xf3b   :  { %v1308_v56 = vpop.permute.xlu1 %1307 }
 0xf3c   :  { %v2636_v57 = vadd.f32 %v1308_v56, %v1300_v55 }
 0xf3e   :  { %2180 = vtanh.f32 %v2636_v57 }
 0xf47   :  { %v2179_v58 = vpop.eup %2178 }
 0xf48   :  { %1210 = vrot.lane.b32.xlu0 %v2179_v58, %s2231_s16 }
 0xf4b   :  { %v2181_v59 = vpop.eup %2180 }
 0xf4c   :  { %1313 = vrot.lane.b32.xlu1 %v2181_v59, %s2231_s16 }
 0xfba   :  { %v1211_v60 = vpop.permute.xlu0 %1210 }
 0xfbb   :  { %v1213_v61 = vmul.f32 %v1211_v60, %v1195_v45 }
 0xfbd   :  { %1215 = vrot.lane.b32.xlu0 %v1213_v61, %s2230_s2 }
 0xfbe   :  { %v1314_v62 = vpop.permute.xlu1 %1313 }
 0xfbf   :  { %v1316_v63 = vmul.f32 %v1314_v62, %v1298_v49 }
 0xfc1   :  { %1318 = vrot.lane.b32.xlu1 %v1316_v63, %s2230_s2 }
0x102f   :  { %v1216_v9 = vpop.permute.xlu0 %1215 }
0x1030   :  { %1834 = vst.msk [vmem:[%s2732_s4 + $0x28] sm:$0xff] %vm61_vm0, %v1216_v9  ;;  %2069 = vmatmul.mubr.msk.f32.vlgmr.msra.gmra.mxu0 %vm61_vm0, %v1216_v9 }
0x1031   :  { %2083 = vmatpush3.msra.mxu0 %v2272_v0  ;;  %2090 = vmatprep.mubr.msk.f32.mxu0 %vm2229_vm1, %v2228_v2  ;;  %v1838_v0 = vld [vmem:[%s2728_s0 + $0x30] sm:$0xff]  ;;  %s2232_s0 = smov 96  }
0x1032   :  { %2084 = vmatprep.subr.mxu0 %v2228_v2 }
0x1033   :  { %v1319_v10 = vpop.permute.xlu1 %1318  ;;  %2085 = vmatpush3.msra.mxu0 %v2284_v3 }
0x1034   :  { %1837 = vst.msk [vmem:[%s2733_s5 + $0x10] sm:$0xff] %vm61_vm0, %v1319_v10  ;;  %2080 = vmatmul.mubr.msk.f32.vlgmr.msra.gmra.mxu1 %vm61_vm0, %v1319_v10  ;;  %2086 = vmatprep.subr.mxu0 %v2228_v2 }
0x1035   :  { %2087 = vmatpush3.msra.mxu0 %v2306_v5  ;;  %2094 = vmatpush3.msra.mxu1 %v2277_v1 }
0x1036   :  { %2088 = vmatprep.subr.mxu0 %v2228_v2  ;;  %2095 = vmatprep.subr.mxu1 %v2228_v2 }
0x1037   :  { %2089 = vmatpush3.msra.mxu0 %v2320_v7  ;;  %2096 = vmatpush3.msra.mxu1 %v2289_v4  ;;  %v1841_v4 = vld [vmem:[%s2729_s1 + $0x8] sm:$0xff] }
0x1038   :  { %2097 = vmatprep.subr.mxu1 %v2228_v2  ;;  %2101 = vmatprep.mubr.msk.f32.mxu1 %vm2229_vm1, %v2228_v2 }
0x1039   :  { %2098 = vmatpush3.msra.mxu1 %v2313_v6 }
0x103a   :  { %2099 = vmatprep.subr.mxu1 %v2228_v2 }
0x103b   :  { %2100 = vmatpush3.msra.mxu1 %v2328_v8 }
0x10f0   :  { %v1393_v1 = vpop.f32.mrf.mxu0 }
0x10f1   :  { %v1397_v3 = vadd.f32 %v1838_v0, %v1393_v1 }
0x10f2   :  { %v2070_v5 = vpop.f32.mrf.mxu0 }
0x10f3   :  { %2182 = vtanh.f32 %v1397_v3  ;;  %v1398_v8 = vmul.f32 0.5, %v1397_v3 }
0x10f4   :  { %v1496_v7 = vpop.f32.mrf.mxu1 }
0x10f5   :  { %v1500_v11 = vadd.f32 %v1841_v4, %v1496_v7 }
0x10f6   :  { %v2081_v12 = vpop.f32.mrf.mxu1 }
0x10f7   :  { %2184 = vtanh.f32 %v1500_v11  ;;  %v1501_v13 = vmul.f32 0.5, %v1500_v11 }
0x10f8   :  { %2186 = vtanh.f32 %v1398_v8 }
0x10f9   :  { %2188 = vtanh.f32 %v1501_v13 }
0x1100   :  { %v2183_v6 = vpop.eup %2182 }
0x1101   :  { %1405 = vrot.lane.b32.xlu0 %v2183_v6, %s2231_s16 }
0x1104   :  { %v2185_v2 = vpop.eup %2184 }
0x1105   :  { %1508 = vrot.lane.b32.xlu1 %v2185_v2, %s2231_s16  ;;  %v2187_v14 = vpop.eup %2186 }
0x1106   :  { %v1400_v15 = vmul.f32 0.5, %v2187_v14  ;;  %v2189_v16 = vpop.eup %2188 }
0x1107   :  { %v1503_v18 = vmul.f32 0.5, %v2189_v16 }
0x1108   :  { %v1401_v17 = vadd.f32 0.5, %v1400_v15 }
0x1109   :  { %v1504_v21 = vadd.f32 0.5, %v1503_v18 }
0x110a   :  { %v1403_v24 = vmul.f32 %v1401_v17, %v2632_v54 }
0x110b   :  { %v1506_v27 = vmul.f32 %v1504_v21, %v2636_v57 }
0x1173   :  { %v1406_v19 = vpop.permute.xlu0 %1405 }
0x1174   :  { %v1408_v20 = vmul.f32 %v1406_v19, %v1401_v17 }
0x1176   :  { %1410 = vrot.lane.b32.xlu0 %v1408_v20, %s2230_s2 }
0x1177   :  { %v1509_v22 = vpop.permute.xlu1 %1508 }
0x1178   :  { %v1511_v23 = vmul.f32 %v1509_v22, %v1504_v21 }
0x117a   :  { %1513 = vrot.lane.b32.xlu1 %v1511_v23, %s2230_s2 }
0x11e8   :  { %v1411_v25 = vpop.permute.xlu0 %1410 }
0x11e9   :  { %v1413_v26 = vadd.f32 %v1411_v25, %v1403_v24 }
0x11eb   :  { %2190 = vtanh.f32 %v1413_v26 }
0x11ec   :  { %v1514_v28 = vpop.permute.xlu1 %1513 }
0x11ed   :  { %v1516_v29 = vadd.f32 %v1514_v28, %v1506_v27 }
0x11ef   :  { %2192 = vtanh.f32 %v1516_v29 }
0x11f8   :  { %v2191_v30 = vpop.eup %2190 }
0x11f9   :  { %1416 = vrot.lane.b32.xlu0 %v2191_v30, %s2231_s16 }
0x11fc   :  { %v2193_v31 = vpop.eup %2192 }
0x11fd   :  { %1519 = vrot.lane.b32.xlu1 %v2193_v31, %s2231_s16 }
0x126b   :  { %v1417_v32 = vpop.permute.xlu0 %1416 }
0x126c   :  { %v1419_v33 = vmul.f32 %v1417_v32, %v1401_v17 }
0x126e   :  { %1421 = vrot.lane.b32.xlu0 %v1419_v33, %s2230_s2 }
0x126f   :  { %v1520_v34 = vpop.permute.xlu1 %1519 }
0x1270   :  { %v1522_v35 = vmul.f32 %v1520_v34, %v1504_v21 }
0x1272   :  { %1524 = vrot.lane.b32.xlu1 %v1522_v35, %s2230_s2 }
0x12e0   :  { %v1422_v36 = vpop.permute.xlu0 %1421 }
0x12e1   :  { %1840 = vst.msk [vmem:[%s2732_s4 + $0x30] sm:$0xff] %vm61_vm0, %v1422_v36  ;;  %2091 = vmatmul.mubr.msk.f32.vlgmr.msra.gmra.mxu0 %vm61_vm0, %v1422_v36 }
0x12e4   :  { %v1525_v37 = vpop.permute.xlu1 %1524 }
0x12e5   :  { %1843 = vst.msk [vmem:[%s2733_s5 + $0x8] sm:$0xff] %vm61_vm0, %v1525_v37  ;;  %2102 = vmatmul.mubr.msk.f32.vlgmr.msra.gmra.mxu1 %vm61_vm0, %v1525_v37 }
0x13a1   :  { %v1599_v39 = vpop.f32.mrf.mxu0 }
0x13a2   :  { %v1603_v40 = vadd.f32 %v1844_v38, %v1599_v39 }
0x13a3   :  { %v2092_v41 = vpop.f32.mrf.mxu0 }
0x13a4   :  { %2194 = vtanh.f32 %v1603_v40  ;;  %v1604_v48 = vmul.f32 0.5, %v1603_v40 }
0x13a5   :  { %v1701_v43 = vpop.f32.mrf.mxu1 }
0x13a6   :  { %v1705_v44 = vadd.f32 %v1701_v43, %v1632_v42 }
0x13a7   :  { %v2103_v45 = vpop.f32.mrf.mxu1 }
0x13a8   :  { %2196 = vtanh.f32 %v1705_v44  ;;  %v1706_v49 = vmul.f32 0.5, %v1705_v44 }
0x13a9   :  { %2198 = vtanh.f32 %v1604_v48 }
0x13aa   :  { %2200 = vtanh.f32 %v1706_v49 }
0x13b1   :  { %v2195_v46 = vpop.eup %2194 }
0x13b2   :  { %1611 = vrot.lane.b32.xlu0 %v2195_v46, %s2231_s16 }
0x13b5   :  { %v2197_v47 = vpop.eup %2196 }
0x13b6   :  { %1713 = vrot.lane.b32.xlu1 %v2197_v47, %s2231_s16  ;;  %v2199_v50 = vpop.eup %2198 }
0x13b7   :  { %v1606_v51 = vmul.f32 0.5, %v2199_v50  ;;  %v2201_v52 = vpop.eup %2200 }
0x13b8   :  { %v1708_v54 = vmul.f32 0.5, %v2201_v52 }
0x13b9   :  { %v1607_v53 = vadd.f32 0.5, %v1606_v51 }
0x13ba   :  { %v1709_v57 = vadd.f32 0.5, %v1708_v54 }
0x13bb   :  { %v1609_v60 = vmul.f32 %v1607_v53, %v1413_v26 }
0x13bc   :  { %v1711_v63 = vmul.f32 %v1709_v57, %v1516_v29 }
0x1424   :  { %v1612_v55 = vpop.permute.xlu0 %1611 }
0x1425   :  { %v1614_v56 = vmul.f32 %v1612_v55, %v1607_v53 }
0x1427   :  { %1616 = vrot.lane.b32.xlu0 %v1614_v56, %s2230_s2 }
0x1428   :  { %v1714_v58 = vpop.permute.xlu1 %1713 }
0x1429   :  { %v1716_v59 = vmul.f32 %v1714_v58, %v1709_v57 }
0x142b   :  { %1718 = vrot.lane.b32.xlu1 %v1716_v59, %s2230_s2 }
0x1499   :  { %v1617_v61 = vpop.permute.xlu0 %1616 }
0x149a   :  { %v1619_v62 = vadd.f32 %v1617_v61, %v1609_v60 }
0x149c   :  { %2202 = vtanh.f32 %v1619_v62 }
0x149d   :  { %v1719_v9 = vpop.permute.xlu1 %1718 }
0x149e   :  { %v1721_v10 = vadd.f32 %v1719_v9, %v1711_v63 }
0x14a0   :  { %2204 = vtanh.f32 %v1721_v10 }
0x14a9   :  { %v2203_v0 = vpop.eup %2202 }
0x14aa   :  { %1622 = vrot.lane.b32.xlu0 %v2203_v0, %s2231_s16 }
0x14ad   :  { %v2205_v1 = vpop.eup %2204 }
0x14ae   :  { %1724 = vrot.lane.b32.xlu1 %v2205_v1, %s2231_s16 }
0x151c   :  { %v1623_v3 = vpop.permute.xlu0 %1622 }
0x151d   :  { %v1625_v5 = vmul.f32 %v1623_v3, %v1607_v53 }
0x151f   :  { %1627 = vrot.lane.b32.xlu0 %v1625_v5, %s2230_s2 }
0x1520   :  { %v1725_v4 = vpop.permute.xlu1 %1724 }
0x1521   :  { %v1727_v7 = vmul.f32 %v1725_v4, %v1709_v57 }
0x1523   :  { %1748 = vrot.lane.b32.xlu1 %v1727_v7, %s2231_s16  ;;  %1729 = vrot.lane.b32.xlu0 %v1727_v7, %s2230_s2 }
0x1527   :  { %1735 = vrot.lane.b32.xlu1 %v1619_v62, %s2232_s0  ;;  %1741 = vrot.lane.b32.xlu0 %v1721_v10, %s2232_s0 }
0x1591   :  { %v1628_v11 = vpop.permute.xlu0 %1627 }
0x1592   :  { %1846 = vst.msk [vmem:[%s2732_s4 + $0x38] sm:$0xff] %vm61_vm0, %v1628_v11  ;;  %1733 = vst.msk [vmem:[#allocation2] sm:$0xff] %vm61_vm0, %v1628_v11 }
0x1595   :  { %v1749_v12 = vpop.permute.xlu1 %1748  ;;  %v1730_v6 = vpop.permute.xlu0 %1729 }
0x1596   :  { %v1751_v2 = vsel %vm61_vm0, %v1628_v11, %v1749_v12  ;;  %1732 = vst.msk [vmem:[%s2733_s5] sm:$0xff] %vm61_vm0, %v1730_v6  ;;  %1739 = vst.msk [vmem:[#allocation4] sm:$0xff] %vm61_vm0, %v1730_v6 }
0x1597   :  { %1753 = vst.msk [vmem:[#allocation6] sm:$0xff] %vm1752_vm2, %v1751_v2 }
0x1598   :  { %2217 = shalt.err (!%p2214_p4)
}
0x1599   :  { %1775 = dma.vmem_to_hbm [thread:$0]  %s1773_s27, 128, %s2734_s6, [#allocation7]   ;;  %v1736_v8 = vpop.permute.xlu1 %1735  ;;  %v1742_v13 = vpop.permute.xlu0 %1741 }
0x159a   :  { %1738 = vst.msk [vmem:[#allocation3] sm:$0xff] %vm61_vm0, %v1736_v8  ;;  %1744 = vst.msk [vmem:[#allocation5] sm:$0xff] %vm61_vm0, %v1742_v13 }
0x159b   :  { %2226 = dma.done.wait [#allocation7], 128  }
0x159c   :  { %2227 = vsyncadd [#allocation7], 4294967168 }
0x159d   :  { %1789 = vsyncpa [#allocation7], 1 }

</bundles_post_ra>
